<compile_context>
chip_gen: v5e
topology: v5e:2x2
jax: 0.10.0
libtpu: 0.0.40
codegen_flags: <defaults>
</compile_context>

<pallas_src>
import math
import numpy as np
import jax
import jax.numpy as jnp
from jax.experimental import pallas as pl
from jax.experimental.pallas import tpu as pltpu


def _round_up(n, m):
    return ((n + m - 1) // m) * m


# ------------------------------ kernel ---------------------------------------
def _make_decoder_kernel(d_model, kernel_size, mxu_dtype):
    inv_sqrt_d = 1.0 / math.sqrt(d_model)       # true d_model, not padded
    pad = (kernel_size - 1) // 2
    inv_k = 1.0 / kernel_size

    def kernel(x_ref, cross_ref,
               wqkv1_ref, wo1_ref, wq2_ref, wkv2_ref, wo2_ref,
               w1_ref, w2_ref, wp_ref,
               xout_ref, trend_ref):
        Bt, L, Dp = x_ref.shape
        Lc = cross_ref.shape[1]
        Cp3 = wp_ref.shape[1]
        Cp = Cp3 // 3

        x = x_ref[...]            # (Bt, L, Dp)  f32, zero padded beyond d_model
        cross = cross_ref[...]    # (Bt, Lc, Dp) f32

        # time-index mask, hoisted once and reused by all three decompositions
        t_idx = jax.lax.broadcasted_iota(jnp.int32, (1, L, Dp), 1)

        def mm(a2d, w):           # (M,K)@(K,N): bf16 operands, f32 accumulate
            return jnp.dot(a2d.astype(mxu_dtype), w.astype(mxu_dtype),
                           preferred_element_type=jnp.float32)

        def attn_scores(q, k):    # (Bt,L,Dp),(Bt,M,Dp) -> (Bt,L,M)
            return jax.lax.dot_general(
                q.astype(mxu_dtype), k.astype(mxu_dtype),
                (((2,), (2,)), ((0,), (0,))),
                preferred_element_type=jnp.float32)

        def attn_apply(p, v):     # (Bt,L,M),(Bt,M,Dp) -> (Bt,L,Dp)
            return jax.lax.dot_general(
                p.astype(mxu_dtype), v.astype(mxu_dtype),
                (((2,), (1,)), ((0,), (0,))),
                preferred_element_type=jnp.float32)

        def softmax(s):           # f32 elementwise, EUP reciprocal
            s = s - jnp.max(s, axis=-1, keepdims=True)
            p = jnp.exp(s)
            inv = pl.reciprocal(jnp.sum(p, axis=-1, keepdims=True), approx=True)
            return p * inv

        def moving_avg(z):
            # Exact replicate-padded moving mean over time as a k-tap
            # shifted-add: rolls use the XLU, selects/adds the VPU.  No MXU
            # work and no (L, L) averaging matrix.
            first = jnp.broadcast_to(z[:, :1, :], z.shape)
            last = jnp.broadcast_to(z[:, L - 1:, :], z.shape)
            acc = z
            for s in range(1, pad + 1):
                fwd = jnp.where(t_idx >= L - s, last, jnp.roll(z, -s, axis=1))
                bwd = jnp.where(t_idx < s, first, jnp.roll(z, s, axis=1))
                acc = acc + fwd + bwd
            return acc * inv_k

        x2d = x.reshape(Bt * L, Dp)
        cross2d = cross.reshape(Bt * Lc, Dp)

        # ---- self attention (fused QKV) + residual -> decomp1 ----
        qkv = mm(x2d, wqkv1_ref[...]).reshape(Bt, L, 3 * Dp)
        q1 = qkv[..., :Dp]
        k1 = qkv[..., Dp:2 * Dp]
        v1 = qkv[..., 2 * Dp:]
        p1 = softmax(attn_scores(q1, k1) * inv_sqrt_d)
        ctx1 = attn_apply(p1, v1).reshape(Bt * L, Dp)
        x1 = (x2d + mm(ctx1, wo1_ref[...])).reshape(Bt, L, Dp)
        trend1 = moving_avg(x1)
        s1 = x1 - trend1

        # ---- cross attention (fused KV) + residual -> decomp2 ----
        s1_2d = s1.reshape(Bt * L, Dp)
        q2 = mm(s1_2d, wq2_ref[...]).reshape(Bt, L, Dp)
        kv2 = mm(cross2d, wkv2_ref[...]).reshape(Bt, Lc, 2 * Dp)
        k2 = kv2[..., :Dp]
        v2 = kv2[..., Dp:]
        p2 = softmax(attn_scores(q2, k2) * inv_sqrt_d)
        ctx2 = attn_apply(p2, v2).reshape(Bt * L, Dp)
        x2 = (s1_2d + mm(ctx2, wo2_ref[...])).reshape(Bt, L, Dp)
        trend2 = moving_avg(x2)
        s2 = x2 - trend2

        # ---- feed-forward: conv1(1x1) -> relu -> conv2(1x1) -> decomp3 ----
        s2_2d = s2.reshape(Bt * L, Dp)
        h = jnp.maximum(mm(s2_2d, w1_ref[...]), 0.0)
        z = (s2_2d + mm(h, w2_ref[...])).reshape(Bt, L, Dp)
        trend3 = moving_avg(z)
        s3 = z - trend3

        # ---- trend projection: Conv1d(k=3, circular) ----
        # roll commutes with the 1x1 taps: project once against the fused
        # (Dp, 3*Cp) weight, then roll the (smaller) Cp-wide outputs along L.
        rt = trend1 + trend2 + trend3
        y = mm(rt.reshape(Bt * L, Dp), wp_ref[...]).reshape(Bt, L, Cp3)
        y0 = y[..., :Cp]          # tap on rt[t-1]
        y1 = y[..., Cp:2 * Cp]    # tap on rt[t]
        y2 = y[..., 2 * Cp:]      # tap on rt[t+1]
        trend = jnp.roll(y0, 1, axis=1) + y1 + jnp.roll(y2, -1, axis=1)

        xout_ref[...] = s3
        trend_ref[...] = trend

    return kernel


# ------------------------- one-time weight packing -----------------------------
def pack_decoder_params(params, *, mxu_dtype=jnp.bfloat16):
    """Pad weights to lane-dense multiples of 128, fuse QKV / KV and the three
    projection taps, and cast to the MXU input dtype.  Call once and reuse the
    result across layer invocations (avoids per-call pad/concat/convert HBM
    traffic and keeps the bf16 'half the DMA bytes' benefit)."""
    d_model = params["wq1"].shape[0]
    d_ff = params["w1"].shape[1]
    c_out = params["wp1"].shape[1]
    Dp = _round_up(d_model, 128)
    Fp = _round_up(d_ff, 128)
    Cp = _round_up(c_out, 128)

    def pad2(w, r, c):
        return jnp.pad(w, ((0, r - w.shape[0]), (0, c - w.shape[1])))

    wdt = mxu_dtype
    wqkv1 = jnp.concatenate([pad2(params[n], Dp, Dp) for n in ("wq1", "wk1", "wv1")],
                            axis=1).astype(wdt)                      # (Dp, 3Dp)
    wo1 = pad2(params["wo1"], Dp, Dp).astype(wdt)
    wq2 = pad2(params["wq2"], Dp, Dp).astype(wdt)
    wkv2 = jnp.concatenate([pad2(params[n], Dp, Dp) for n in ("wk2", "wv2")],
                           axis=1).astype(wdt)                       # (Dp, 2Dp)
    wo2 = pad2(params["wo2"], Dp, Dp).astype(wdt)
    w1 = pad2(params["w1"], Dp, Fp).astype(wdt)
    w2 = pad2(params["w2"], Fp, Dp).astype(wdt)
    # projection taps fused along N so the circular roll can be applied to the
    # (smaller) Cp-wide outputs instead of a (Bt, L, 3*Dp) rolled input.
    wp = jnp.concatenate([pad2(params[n], Dp, Cp) for n in ("wp0", "wp1", "wp2")],
                         axis=1).astype(wdt)                         # (Dp, 3Cp)

    weights = tuple(jax.block_until_ready(w)
                    for w in (wqkv1, wo1, wq2, wkv2, wo2, w1, w2, wp))
    return dict(weights=weights, d_model=d_model, d_ff=d_ff, c_out=c_out,
                Dp=Dp, Fp=Fp, Cp=Cp, mxu_dtype=mxu_dtype)


# ------------------------------ wrapper ---------------------------------------
def decoder_layer(x, cross, packed, kernel_size, *, batch_tile=None):
    B, L, D = x.shape
    Lc = cross.shape[1]
    assert D == packed["d_model"]
    assert kernel_size % 2 == 1, "Autoformer moving_avg kernel must be odd"
    assert (kernel_size - 1) // 2 < L, "moving_avg half-window must be < seq len"
    # NOTE: L that is not a multiple of 8 still works, but the in-kernel
    # (Bt, L, Dp) <-> (Bt*L, Dp) reshapes will insert relayout copies (perf only).

    Dp, Fp, Cp = packed["Dp"], packed["Fp"], packed["Cp"]
    c_out = packed["c_out"]
    d_ff = packed["d_ff"]
    weights = packed["weights"]
    mxu_dtype = packed["mxu_dtype"]

    # rough live f32 intermediate bytes per batch element (caps the tile size)
    per_elem = 4 * (L * (10 * Dp + Fp + 3 * Cp) + L * L + L * Lc)
    max_bt = max(1, min(8, (8 << 20) // max(per_elem, 1)))
    if batch_tile is None:
        # prefer >= 2 grid steps so both v7x TensorCores get work and grid
        # steps can pipeline; otherwise largest divisor of B that fits.
        cands = [bt for bt in range(min(B, max_bt), 0, -1)
                 if B % bt == 0 and B // bt >= 2]
        if cands:
            batch_tile = cands[0]
        else:
            batch_tile = next(bt for bt in range(min(B, max_bt), 0, -1) if B % bt == 0)
    assert B % batch_tile == 0
    Bt = batch_tile
    grid = (B // Bt,)

    xp = jnp.pad(x, ((0, 0), (0, 0), (0, Dp - D))).astype(jnp.float32)
    crossp = jnp.pad(cross, ((0, 0), (0, 0), (0, Dp - D))).astype(jnp.float32)

    # ---- VMEM budget: actual need, capped per-generation (not a flat 64 MiB) ----
    tile_bytes = 4 * Bt * (L * Dp + Lc * Dp + L * Dp + L * Cp)   # in/out tiles, f32
    weight_bytes = sum(int(w.size) * w.dtype.itemsize for w in weights)
    need = 2 * tile_bytes + weight_bytes + Bt * per_elem + (4 << 20)
    try:
        vmem_cap = int(pltpu.get_tpu_info().vmem_capacity_bytes)
    except Exception:
        vmem_cap = 64 << 20          # conservative: v7x per-core VMEM
    vmem_limit = int(max(min(need, vmem_cap - (16 << 20)), 16 << 20))

    # ---- advisory cost estimate with the padded dims actually run on the MXU ----
    per_b_mm = (L * Dp * 3 * Dp + 2 * L * L * Dp + L * Dp * Dp          # self attn
                + L * Dp * Dp + Lc * Dp * 2 * Dp + 2 * L * Lc * Dp
                + L * Dp * Dp                                           # cross attn
                + L * Dp * Fp + L * Fp * Dp                             # feed-forward
                + L * Dp * 3 * Cp)                                      # projection
    decomp_adds = 3 * L * Dp * (kernel_size + 1)                        # VPU shifted-add
    cost = pl.CostEstimate(
        flops=int(B * (2 * per_b_mm + decomp_adds)),
        transcendentals=int(B * L * (L + Lc)),
        bytes_accessed=int(4 * (xp.size + crossp.size + B * L * (Dp + Cp))
                           + weight_bytes))

    def tile3(tail):
        return pl.BlockSpec((Bt,) + tail, lambda b: (b, 0, 0))

    def build(single_buffer_weights):
        if single_buffer_weights:
            # weights are grid-invariant: a second pipeline buffer is pure VMEM waste
            wspec = lambda w: pl.BlockSpec(w.shape, lambda b: (0, 0),
                                           pipeline_mode=pl.Buffered(1))
        else:
            wspec = lambda w: pl.BlockSpec(w.shape, lambda b: (0, 0))
        in_specs = [tile3((L, Dp)), tile3((Lc, Dp))] + [wspec(w) for w in weights]
        out_specs = (tile3((L, Dp)), tile3((L, Cp)))
        out_shape = (jax.ShapeDtypeStruct((B, L, Dp), jnp.float32),
                     jax.ShapeDtypeStruct((B, L, Cp), jnp.float32))
        return pl.pallas_call(
            _make_decoder_kernel(D, kernel_size, mxu_dtype),
            grid=grid,
            in_specs=in_specs,
            out_specs=out_specs,
            out_shape=out_shape,
            compiler_params=pltpu.CompilerParams(
                dimension_semantics=("parallel",),
                vmem_limit_bytes=vmem_limit),
            cost_estimate=cost,
        )

    try:
        x_out_p, trend_p = build(True)(xp, crossp, *weights)
    except Exception:
        # Installed Pallas build may not accept pl.Buffered(1) on the top-level
        # pipeline; fall back to default double-buffered weights.
        x_out_p, trend_p = build(False)(xp, crossp, *weights)

    return x_out_p[..., :D], trend_p[..., :c_out]


# ---------------------- pure-JAX reference (for checking) ----------------------
# Mirrors the kernel's bf16-at-the-MXU / f32-accumulate precision policy so the
# comparison stays tight; structure matches the PyTorch module exactly.
def _series_decomp_ref(x, kernel_size):
    pad = (kernel_size - 1) // 2
    front = jnp.repeat(x[:, :1, :], pad, axis=1)
    end = jnp.repeat(x[:, -1:, :], pad, axis=1)
    xp = jnp.concatenate([front, x, end], axis=1)
    mean = jnp.stack([xp[:, t:t + kernel_size, :].mean(axis=1)
                      for t in range(x.shape[1])], axis=1)
    return x - mean, mean


def _mm_ref(a, w, dt):
    return jnp.einsum("...d,dn->...n", a.astype(dt), w.astype(dt),
                      preferred_element_type=jnp.float32)


def _attention_ref(q_in, kv_in, wq, wk, wv, wo, dt):
    q = _mm_ref(q_in, wq, dt)
    k = _mm_ref(kv_in, wk, dt)
    v = _mm_ref(kv_in, wv, dt)
    s = jnp.einsum("bld,bmd->blm", q.astype(dt), k.astype(dt),
                   preferred_element_type=jnp.float32) / math.sqrt(q_in.shape[-1])
    p = jax.nn.softmax(s, axis=-1)
    ctx = jnp.einsum("blm,bmd->bld", p.astype(dt), v.astype(dt),
                     preferred_element_type=jnp.float32)
    return _mm_ref(ctx, wo, dt)


def decoder_layer_ref(x, cross, params, kernel_size, dt=jnp.bfloat16):
    x = x + _attention_ref(x, x, params["wq1"], params["wk1"], params["wv1"],
                           params["wo1"], dt)
    x, trend1 = _series_decomp_ref(x, kernel_size)
    x = x + _attention_ref(x, cross, params["wq2"], params["wk2"], params["wv2"],
                           params["wo2"], dt)
    x, trend2 = _series_decomp_ref(x, kernel_size)
    y = _mm_ref(jnp.maximum(_mm_ref(x, params["w1"], dt), 0.0), params["w2"], dt)
    x, trend3 = _series_decomp_ref(x + y, kernel_size)
    rt = trend1 + trend2 + trend3
    trend = (_mm_ref(jnp.roll(rt, 1, axis=1), params["wp0"], dt)
             + _mm_ref(rt, params["wp1"], dt)
             + _mm_ref(jnp.roll(rt, -1, axis=1), params["wp2"], dt))
    return x, trend


if __name__ == "__main__":
    # Small deterministic shapes consistent with the module's forward pass.
    B, L, Lc = 2, 16, 24          # batch, decoder seq len, encoder (cross) seq len
    d_model, d_ff, c_out = 32, 64, 8
    moving_avg = 5                # odd kernel size, as in Autoformer

    key = jax.random.PRNGKey(0)
    keys = jax.random.split(key, 16)
    scale = 0.1

    params = {
        # attention projection weights (single-head full attention, no bias)
        "wq1": scale * jax.random.normal(keys[0], (d_model, d_model), jnp.float32),
        "wk1": scale * jax.random.normal(keys[1], (d_model, d_model), jnp.float32),
        "wv1": scale * jax.random.normal(keys[2], (d_model, d_model), jnp.float32),
        "wo1": scale * jax.random.normal(keys[3], (d_model, d_model), jnp.float32),
        "wq2": scale * jax.random.normal(keys[4], (d_model, d_model), jnp.float32),
        "wk2": scale * jax.random.normal(keys[5], (d_model, d_model), jnp.float32),
        "wv2": scale * jax.random.normal(keys[6], (d_model, d_model), jnp.float32),
        "wo2": scale * jax.random.normal(keys[7], (d_model, d_model), jnp.float32),
        # conv1/conv2 (1x1, no bias): stored pre-transposed, i.e. torch weight[:, :, 0].T
        "w1": scale * jax.random.normal(keys[8], (d_model, d_ff), jnp.float32),
        "w2": scale * jax.random.normal(keys[9], (d_ff, d_model), jnp.float32),
        # projection conv (k=3, circular, no bias): torch weight[:, :, k].T per tap
        "wp0": scale * jax.random.normal(keys[10], (d_model, c_out), jnp.float32),
        "wp1": scale * jax.random.normal(keys[11], (d_model, c_out), jnp.float32),
        "wp2": scale * jax.random.normal(keys[12], (d_model, c_out), jnp.float32),
    }

    x = jax.random.normal(keys[13], (B, L, d_model), jnp.float32)
    cross = jax.random.normal(keys[14], (B, Lc, d_model), jnp.float32)

    # one-time weight packing, reused across all layer invocations
    packed = pack_decoder_params(params)

    x_out, trend_out = decoder_layer(x, cross, packed, moving_avg)
    jax.block_until_ready((x_out, trend_out))

    # correctness check against a pure-JAX reference (same bf16-at-MXU policy)
    x_ref, trend_ref = decoder_layer_ref(x, cross, params, moving_avg)
    np.testing.assert_allclose(np.asarray(x_out), np.asarray(x_ref), rtol=2e-2, atol=2e-2)
    np.testing.assert_allclose(np.asarray(trend_out), np.asarray(trend_ref), rtol=2e-2, atol=2e-2)

    print("KERNEL_OK")
</pallas_src>

<mosaic_0001>
module attributes {stable_mosaic.version = 11 : i64} {
  func.func @kernel(%arg0: i32, %arg1: memref<1x16x128xf32, #tpu.memory_space<vmem>>, %arg2: memref<1x24x128xf32, #tpu.memory_space<vmem>>, %arg3: memref<128x384xbf16, #tpu.memory_space<vmem>>, %arg4: memref<128x128xbf16, #tpu.memory_space<vmem>>, %arg5: memref<128x128xbf16, #tpu.memory_space<vmem>>, %arg6: memref<128x256xbf16, #tpu.memory_space<vmem>>, %arg7: memref<128x128xbf16, #tpu.memory_space<vmem>>, %arg8: memref<128x128xbf16, #tpu.memory_space<vmem>>, %arg9: memref<128x128xbf16, #tpu.memory_space<vmem>>, %arg10: memref<128x384xbf16, #tpu.memory_space<vmem>>, %arg11: memref<1x16x128xf32, #tpu.memory_space<vmem>>, %arg12: memref<1x16x128xf32, #tpu.memory_space<vmem>>) attributes {dimension_semantics = [#tpu.dimension_semantics<parallel>], iteration_bounds = array<i64: 2>, scalar_prefetch = 0 : i64, scratch_operands = 0 : i64, tpu.core_type = #tpu.core_type<tc>, window_params = [{transform_indices = @transform_0, window_bounds = array<i64: 1, 16, 128>}, {transform_indices = @transform_1, window_bounds = array<i64: 1, 24, 128>}, {pipeline_mode = #tpu.pipeline_mode<synchronous>, transform_indices = @transform_2, window_bounds = array<i64: 128, 384>}, {pipeline_mode = #tpu.pipeline_mode<synchronous>, transform_indices = @transform_3, window_bounds = array<i64: 128, 128>}, {pipeline_mode = #tpu.pipeline_mode<synchronous>, transform_indices = @transform_4, window_bounds = array<i64: 128, 128>}, {pipeline_mode = #tpu.pipeline_mode<synchronous>, transform_indices = @transform_5, window_bounds = array<i64: 128, 256>}, {pipeline_mode = #tpu.pipeline_mode<synchronous>, transform_indices = @transform_6, window_bounds = array<i64: 128, 128>}, {pipeline_mode = #tpu.pipeline_mode<synchronous>, transform_indices = @transform_7, window_bounds = array<i64: 128, 128>}, {pipeline_mode = #tpu.pipeline_mode<synchronous>, transform_indices = @transform_8, window_bounds = array<i64: 128, 128>}, {pipeline_mode = #tpu.pipeline_mode<synchronous>, transform_indices = @transform_9, window_bounds = array<i64: 128, 384>}, {transform_indices = @transform_10, window_bounds = array<i64: 1, 16, 128>}, {transform_indices = @transform_11, window_bounds = array<i64: 1, 16, 128>}]} {
    %c0 = arith.constant 0 : index
    %c0_0 = arith.constant 0 : index
    %c0_1 = arith.constant 0 : index
    %0 = vector.load %arg1[%c0, %c0_0, %c0_1] : memref<1x16x128xf32, #tpu.memory_space<vmem>>, vector<1x16x128xf32>
    %c0_2 = arith.constant 0 : index
    %c0_3 = arith.constant 0 : index
    %c0_4 = arith.constant 0 : index
    %1 = vector.load %arg2[%c0_2, %c0_3, %c0_4] : memref<1x24x128xf32, #tpu.memory_space<vmem>>, vector<1x24x128xf32>
    %2 = tpu.iota {dimensions = array<i32: 1>} : vector<1x16x128xi32>
    %3 = vector.shape_cast %0 : vector<1x16x128xf32> to vector<16x128xf32>
    %4 = vector.shape_cast %1 : vector<1x24x128xf32> to vector<24x128xf32>
    %c0_5 = arith.constant 0 : index
    %c0_6 = arith.constant 0 : index
    %5 = vector.load %arg3[%c0_5, %c0_6] : memref<128x384xbf16, #tpu.memory_space<vmem>>, vector<128x384xbf16>
    %6 = arith.truncf %3 : vector<16x128xf32> to vector<16x128xbf16>
    %cst = arith.constant dense<0.000000e+00> : vector<16x384xf32>
    %7 = tpu.matmul %6, %5, %cst {dimension_numbers = #tpu.dot_dimension_numbers<[1], [0], [0], [1], [0, 0, 1, 1], [], []>} : vector<16x128xbf16>, vector<128x384xbf16>, vector<16x384xf32> -> vector<16x384xf32>
    %8 = vector.shape_cast %7 : vector<16x384xf32> to vector<1x16x384xf32>
    %9 = vector.extract_strided_slice %8 {offsets = [0, 0, 0], sizes = [1, 16, 128], strides = [1, 1, 1]} : vector<1x16x384xf32> to vector<1x16x128xf32>
    %10 = vector.extract_strided_slice %8 {offsets = [0, 0, 128], sizes = [1, 16, 128], strides = [1, 1, 1]} : vector<1x16x384xf32> to vector<1x16x128xf32>
    %11 = vector.extract_strided_slice %8 {offsets = [0, 0, 256], sizes = [1, 16, 128], strides = [1, 1, 1]} : vector<1x16x384xf32> to vector<1x16x128xf32>
    %12 = arith.truncf %9 : vector<1x16x128xf32> to vector<1x16x128xbf16>
    %13 = arith.truncf %10 : vector<1x16x128xf32> to vector<1x16x128xbf16>
    %cst_7 = arith.constant dense<0.000000e+00> : vector<1x16x16xf32>
    %14 = tpu.matmul %12, %13, %cst_7 {dimension_numbers = #tpu.dot_dimension_numbers<[2], [2], [1], [1], [0, 0, 0, 1, 1, 1], [0], [0]>} : vector<1x16x128xbf16>, vector<1x16x128xbf16>, vector<1x16x16xf32> -> vector<1x16x16xf32>
    %cst_8 = arith.constant 0.176776692 : f32
    %15 = vector.broadcast %cst_8 : f32 to vector<1x16x16xf32>
    %16 = arith.mulf %14, %15 : vector<1x16x16xf32>
    %cst_9 = arith.constant dense<0xFF800000> : vector<1x16xf32>
    %17 = vector.multi_reduction <maximumf>, %16, %cst_9 [2] : vector<1x16x16xf32> to vector<1x16xf32>
    %18 = vector.shape_cast %17 : vector<1x16xf32> to vector<1x16x1xf32>
    %19 = vector.broadcast %18 : vector<1x16x1xf32> to vector<1x16x16xf32>
    %20 = arith.subf %16, %19 : vector<1x16x16xf32>
    %21 = math.exp %20 : vector<1x16x16xf32>
    %cst_10 = arith.constant dense<0.000000e+00> : vector<1x16xf32>
    %22 = vector.multi_reduction <add>, %21, %cst_10 [2] : vector<1x16x16xf32> to vector<1x16xf32>
    %23 = vector.shape_cast %22 : vector<1x16xf32> to vector<1x16x1xf32>
    %24 = tpu.reciprocal %23 {approx = true} : vector<1x16x1xf32> -> vector<1x16x1xf32>
    %25 = vector.broadcast %24 : vector<1x16x1xf32> to vector<1x16x16xf32>
    %26 = arith.mulf %21, %25 : vector<1x16x16xf32>
    %27 = arith.truncf %26 : vector<1x16x16xf32> to vector<1x16x16xbf16>
    %28 = arith.truncf %11 : vector<1x16x128xf32> to vector<1x16x128xbf16>
    %cst_11 = arith.constant dense<0.000000e+00> : vector<1x16x128xf32>
    %29 = tpu.matmul %27, %28, %cst_11 {dimension_numbers = #tpu.dot_dimension_numbers<[2], [1], [1], [2], [0, 0, 0, 1, 1, 2], [0], [0]>} : vector<1x16x16xbf16>, vector<1x16x128xbf16>, vector<1x16x128xf32> -> vector<1x16x128xf32>
    %30 = vector.shape_cast %29 : vector<1x16x128xf32> to vector<16x128xf32>
    %c0_12 = arith.constant 0 : index
    %c0_13 = arith.constant 0 : index
    %31 = vector.load %arg4[%c0_12, %c0_13] : memref<128x128xbf16, #tpu.memory_space<vmem>>, vector<128x128xbf16>
    %32 = arith.truncf %30 : vector<16x128xf32> to vector<16x128xbf16>
    %cst_14 = arith.constant dense<0.000000e+00> : vector<16x128xf32>
    %33 = tpu.matmul %32, %31, %cst_14 {dimension_numbers = #tpu.dot_dimension_numbers<[1], [0], [0], [1], [0, 0, 1, 1], [], []>} : vector<16x128xbf16>, vector<128x128xbf16>, vector<16x128xf32> -> vector<16x128xf32>
    %34 = arith.addf %3, %33 : vector<16x128xf32>
    %35 = vector.shape_cast %34 : vector<16x128xf32> to vector<1x16x128xf32>
    %36 = vector.extract_strided_slice %35 {offsets = [0, 0, 0], sizes = [1, 1, 128], strides = [1, 1, 1]} : vector<1x16x128xf32> to vector<1x1x128xf32>
    %37 = vector.shape_cast %36 : vector<1x1x128xf32> to vector<1x1x128xf32>
    %38 = vector.broadcast %37 : vector<1x1x128xf32> to vector<1x16x128xf32>
    %39 = vector.extract_strided_slice %35 {offsets = [0, 15, 0], sizes = [1, 1, 128], strides = [1, 1, 1]} : vector<1x16x128xf32> to vector<1x1x128xf32>
    %40 = vector.shape_cast %39 : vector<1x1x128xf32> to vector<1x1x128xf32>
    %41 = vector.broadcast %40 : vector<1x1x128xf32> to vector<1x16x128xf32>
    %c15_i32 = arith.constant 15 : i32
    %42 = vector.broadcast %c15_i32 : i32 to vector<1x16x128xi32>
    %43 = arith.cmpi sge, %2, %42 : vector<1x16x128xi32>
    %44 = vector.extract_strided_slice %35 {offsets = [0, 1, 0], sizes = [1, 15, 128], strides = [1, 1, 1]} : vector<1x16x128xf32> to vector<1x15x128xf32>
    %45 = vector.extract_strided_slice %35 {offsets = [0, 0, 0], sizes = [1, 1, 128], strides = [1, 1, 1]} : vector<1x16x128xf32> to vector<1x1x128xf32>
    %46 = tpu.concatenate %44, %45 in 1 : vector<1x15x128xf32>, vector<1x1x128xf32> -> vector<1x16x128xf32>
    %47 = arith.select %43, %41, %46 : vector<1x16x128xi1>, vector<1x16x128xf32>
    %c1_i32 = arith.constant 1 : i32
    %48 = vector.broadcast %c1_i32 : i32 to vector<1x16x128xi32>
    %49 = arith.cmpi slt, %2, %48 : vector<1x16x128xi32>
    %50 = vector.extract_strided_slice %35 {offsets = [0, 15, 0], sizes = [1, 1, 128], strides = [1, 1, 1]} : vector<1x16x128xf32> to vector<1x1x128xf32>
    %51 = vector.extract_strided_slice %35 {offsets = [0, 0, 0], sizes = [1, 15, 128], strides = [1, 1, 1]} : vector<1x16x128xf32> to vector<1x15x128xf32>
    %52 = tpu.concatenate %50, %51 in 1 : vector<1x1x128xf32>, vector<1x15x128xf32> -> vector<1x16x128xf32>
    %53 = arith.select %49, %38, %52 : vector<1x16x128xi1>, vector<1x16x128xf32>
    %54 = arith.addf %35, %47 : vector<1x16x128xf32>
    %55 = arith.addf %54, %53 : vector<1x16x128xf32>
    %c14_i32 = arith.constant 14 : i32
    %56 = vector.broadcast %c14_i32 : i32 to vector<1x16x128xi32>
    %57 = arith.cmpi sge, %2, %56 : vector<1x16x128xi32>
    %58 = vector.extract_strided_slice %35 {offsets = [0, 2, 0], sizes = [1, 14, 128], strides = [1, 1, 1]} : vector<1x16x128xf32> to vector<1x14x128xf32>
    %59 = vector.extract_strided_slice %35 {offsets = [0, 0, 0], sizes = [1, 2, 128], strides = [1, 1, 1]} : vector<1x16x128xf32> to vector<1x2x128xf32>
    %60 = tpu.concatenate %58, %59 in 1 : vector<1x14x128xf32>, vector<1x2x128xf32> -> vector<1x16x128xf32>
    %61 = arith.select %57, %41, %60 : vector<1x16x128xi1>, vector<1x16x128xf32>
    %c2_i32 = arith.constant 2 : i32
    %62 = vector.broadcast %c2_i32 : i32 to vector<1x16x128xi32>
    %63 = arith.cmpi slt, %2, %62 : vector<1x16x128xi32>
    %64 = vector.extract_strided_slice %35 {offsets = [0, 14, 0], sizes = [1, 2, 128], strides = [1, 1, 1]} : vector<1x16x128xf32> to vector<1x2x128xf32>
    %65 = vector.extract_strided_slice %35 {offsets = [0, 0, 0], sizes = [1, 14, 128], strides = [1, 1, 1]} : vector<1x16x128xf32> to vector<1x14x128xf32>
    %66 = tpu.concatenate %64, %65 in 1 : vector<1x2x128xf32>, vector<1x14x128xf32> -> vector<1x16x128xf32>
    %67 = arith.select %63, %38, %66 : vector<1x16x128xi1>, vector<1x16x128xf32>
    %68 = arith.addf %55, %61 : vector<1x16x128xf32>
    %69 = arith.addf %68, %67 : vector<1x16x128xf32>
    %cst_15 = arith.constant 2.000000e-01 : f32
    %70 = vector.broadcast %cst_15 : f32 to vector<1x16x128xf32>
    %71 = arith.mulf %69, %70 : vector<1x16x128xf32>
    %72 = arith.subf %35, %71 : vector<1x16x128xf32>
    %73 = vector.shape_cast %72 : vector<1x16x128xf32> to vector<16x128xf32>
    %c0_16 = arith.constant 0 : index
    %c0_17 = arith.constant 0 : index
    %74 = vector.load %arg5[%c0_16, %c0_17] : memref<128x128xbf16, #tpu.memory_space<vmem>>, vector<128x128xbf16>
    %75 = arith.truncf %73 : vector<16x128xf32> to vector<16x128xbf16>
    %cst_18 = arith.constant dense<0.000000e+00> : vector<16x128xf32>
    %76 = tpu.matmul %75, %74, %cst_18 {dimension_numbers = #tpu.dot_dimension_numbers<[1], [0], [0], [1], [0, 0, 1, 1], [], []>} : vector<16x128xbf16>, vector<128x128xbf16>, vector<16x128xf32> -> vector<16x128xf32>
    %77 = vector.shape_cast %76 : vector<16x128xf32> to vector<1x16x128xf32>
    %c0_19 = arith.constant 0 : index
    %c0_20 = arith.constant 0 : index
    %78 = vector.load %arg6[%c0_19, %c0_20] : memref<128x256xbf16, #tpu.memory_space<vmem>>, vector<128x256xbf16>
    %79 = arith.truncf %4 : vector<24x128xf32> to vector<24x128xbf16>
    %cst_21 = arith.constant dense<0.000000e+00> : vector<24x256xf32>
    %80 = tpu.matmul %79, %78, %cst_21 {dimension_numbers = #tpu.dot_dimension_numbers<[1], [0], [0], [1], [0, 0, 1, 1], [], []>} : vector<24x128xbf16>, vector<128x256xbf16>, vector<24x256xf32> -> vector<24x256xf32>
    %81 = vector.shape_cast %80 : vector<24x256xf32> to vector<1x24x256xf32>
    %82 = vector.extract_strided_slice %81 {offsets = [0, 0, 0], sizes = [1, 24, 128], strides = [1, 1, 1]} : vector<1x24x256xf32> to vector<1x24x128xf32>
    %83 = vector.extract_strided_slice %81 {offsets = [0, 0, 128], sizes = [1, 24, 128], strides = [1, 1, 1]} : vector<1x24x256xf32> to vector<1x24x128xf32>
    %84 = arith.truncf %77 : vector<1x16x128xf32> to vector<1x16x128xbf16>
    %85 = arith.truncf %82 : vector<1x24x128xf32> to vector<1x24x128xbf16>
    %cst_22 = arith.constant dense<0.000000e+00> : vector<1x16x24xf32>
    %86 = tpu.matmul %84, %85, %cst_22 {dimension_numbers = #tpu.dot_dimension_numbers<[2], [2], [1], [1], [0, 0, 0, 1, 1, 1], [0], [0]>} : vector<1x16x128xbf16>, vector<1x24x128xbf16>, vector<1x16x24xf32> -> vector<1x16x24xf32>
    %cst_23 = arith.constant 0.176776692 : f32
    %87 = vector.broadcast %cst_23 : f32 to vector<1x16x24xf32>
    %88 = arith.mulf %86, %87 : vector<1x16x24xf32>
    %cst_24 = arith.constant dense<0xFF800000> : vector<1x16xf32>
    %89 = vector.multi_reduction <maximumf>, %88, %cst_24 [2] : vector<1x16x24xf32> to vector<1x16xf32>
    %90 = vector.shape_cast %89 : vector<1x16xf32> to vector<1x16x1xf32>
    %91 = vector.broadcast %90 : vector<1x16x1xf32> to vector<1x16x24xf32>
    %92 = arith.subf %88, %91 : vector<1x16x24xf32>
    %93 = math.exp %92 : vector<1x16x24xf32>
    %cst_25 = arith.constant dense<0.000000e+00> : vector<1x16xf32>
    %94 = vector.multi_reduction <add>, %93, %cst_25 [2] : vector<1x16x24xf32> to vector<1x16xf32>
    %95 = vector.shape_cast %94 : vector<1x16xf32> to vector<1x16x1xf32>
    %96 = tpu.reciprocal %95 {approx = true} : vector<1x16x1xf32> -> vector<1x16x1xf32>
    %97 = vector.broadcast %96 : vector<1x16x1xf32> to vector<1x16x24xf32>
    %98 = arith.mulf %93, %97 : vector<1x16x24xf32>
    %99 = arith.truncf %98 : vector<1x16x24xf32> to vector<1x16x24xbf16>
    %100 = arith.truncf %83 : vector<1x24x128xf32> to vector<1x24x128xbf16>
    %cst_26 = arith.constant dense<0.000000e+00> : vector<1x16x128xf32>
    %101 = tpu.matmul %99, %100, %cst_26 {dimension_numbers = #tpu.dot_dimension_numbers<[2], [1], [1], [2], [0, 0, 0, 1, 1, 2], [0], [0]>} : vector<1x16x24xbf16>, vector<1x24x128xbf16>, vector<1x16x128xf32> -> vector<1x16x128xf32>
    %102 = vector.shape_cast %101 : vector<1x16x128xf32> to vector<16x128xf32>
    %c0_27 = arith.constant 0 : index
    %c0_28 = arith.constant 0 : index
    %103 = vector.load %arg7[%c0_27, %c0_28] : memref<128x128xbf16, #tpu.memory_space<vmem>>, vector<128x128xbf16>
    %104 = arith.truncf %102 : vector<16x128xf32> to vector<16x128xbf16>
    %cst_29 = arith.constant dense<0.000000e+00> : vector<16x128xf32>
    %105 = tpu.matmul %104, %103, %cst_29 {dimension_numbers = #tpu.dot_dimension_numbers<[1], [0], [0], [1], [0, 0, 1, 1], [], []>} : vector<16x128xbf16>, vector<128x128xbf16>, vector<16x128xf32> -> vector<16x128xf32>
    %106 = arith.addf %73, %105 : vector<16x128xf32>
    %107 = vector.shape_cast %106 : vector<16x128xf32> to vector<1x16x128xf32>
    %108 = vector.extract_strided_slice %107 {offsets = [0, 0, 0], sizes = [1, 1, 128], strides = [1, 1, 1]} : vector<1x16x128xf32> to vector<1x1x128xf32>
    %109 = vector.shape_cast %108 : vector<1x1x128xf32> to vector<1x1x128xf32>
    %110 = vector.broadcast %109 : vector<1x1x128xf32> to vector<1x16x128xf32>
    %111 = vector.extract_strided_slice %107 {offsets = [0, 15, 0], sizes = [1, 1, 128], strides = [1, 1, 1]} : vector<1x16x128xf32> to vector<1x1x128xf32>
    %112 = vector.shape_cast %111 : vector<1x1x128xf32> to vector<1x1x128xf32>
    %113 = vector.broadcast %112 : vector<1x1x128xf32> to vector<1x16x128xf32>
    %c15_i32_30 = arith.constant 15 : i32
    %114 = vector.broadcast %c15_i32_30 : i32 to vector<1x16x128xi32>
    %115 = arith.cmpi sge, %2, %114 : vector<1x16x128xi32>
    %116 = vector.extract_strided_slice %107 {offsets = [0, 1, 0], sizes = [1, 15, 128], strides = [1, 1, 1]} : vector<1x16x128xf32> to vector<1x15x128xf32>
    %117 = vector.extract_strided_slice %107 {offsets = [0, 0, 0], sizes = [1, 1, 128], strides = [1, 1, 1]} : vector<1x16x128xf32> to vector<1x1x128xf32>
    %118 = tpu.concatenate %116, %117 in 1 : vector<1x15x128xf32>, vector<1x1x128xf32> -> vector<1x16x128xf32>
    %119 = arith.select %115, %113, %118 : vector<1x16x128xi1>, vector<1x16x128xf32>
    %c1_i32_31 = arith.constant 1 : i32
    %120 = vector.broadcast %c1_i32_31 : i32 to vector<1x16x128xi32>
    %121 = arith.cmpi slt, %2, %120 : vector<1x16x128xi32>
    %122 = vector.extract_strided_slice %107 {offsets = [0, 15, 0], sizes = [1, 1, 128], strides = [1, 1, 1]} : vector<1x16x128xf32> to vector<1x1x128xf32>
    %123 = vector.extract_strided_slice %107 {offsets = [0, 0, 0], sizes = [1, 15, 128], strides = [1, 1, 1]} : vector<1x16x128xf32> to vector<1x15x128xf32>
    %124 = tpu.concatenate %122, %123 in 1 : vector<1x1x128xf32>, vector<1x15x128xf32> -> vector<1x16x128xf32>
    %125 = arith.select %121, %110, %124 : vector<1x16x128xi1>, vector<1x16x128xf32>
    %126 = arith.addf %107, %119 : vector<1x16x128xf32>
    %127 = arith.addf %126, %125 : vector<1x16x128xf32>
    %c14_i32_32 = arith.constant 14 : i32
    %128 = vector.broadcast %c14_i32_32 : i32 to vector<1x16x128xi32>
    %129 = arith.cmpi sge, %2, %128 : vector<1x16x128xi32>
    %130 = vector.extract_strided_slice %107 {offsets = [0, 2, 0], sizes = [1, 14, 128], strides = [1, 1, 1]} : vector<1x16x128xf32> to vector<1x14x128xf32>
    %131 = vector.extract_strided_slice %107 {offsets = [0, 0, 0], sizes = [1, 2, 128], strides = [1, 1, 1]} : vector<1x16x128xf32> to vector<1x2x128xf32>
    %132 = tpu.concatenate %130, %131 in 1 : vector<1x14x128xf32>, vector<1x2x128xf32> -> vector<1x16x128xf32>
    %133 = arith.select %129, %113, %132 : vector<1x16x128xi1>, vector<1x16x128xf32>
    %c2_i32_33 = arith.constant 2 : i32
    %134 = vector.broadcast %c2_i32_33 : i32 to vector<1x16x128xi32>
    %135 = arith.cmpi slt, %2, %134 : vector<1x16x128xi32>
    %136 = vector.extract_strided_slice %107 {offsets = [0, 14, 0], sizes = [1, 2, 128], strides = [1, 1, 1]} : vector<1x16x128xf32> to vector<1x2x128xf32>
    %137 = vector.extract_strided_slice %107 {offsets = [0, 0, 0], sizes = [1, 14, 128], strides = [1, 1, 1]} : vector<1x16x128xf32> to vector<1x14x128xf32>
    %138 = tpu.concatenate %136, %137 in 1 : vector<1x2x128xf32>, vector<1x14x128xf32> -> vector<1x16x128xf32>
    %139 = arith.select %135, %110, %138 : vector<1x16x128xi1>, vector<1x16x128xf32>
    %140 = arith.addf %127, %133 : vector<1x16x128xf32>
    %141 = arith.addf %140, %139 : vector<1x16x128xf32>
    %cst_34 = arith.constant 2.000000e-01 : f32
    %142 = vector.broadcast %cst_34 : f32 to vector<1x16x128xf32>
    %143 = arith.mulf %141, %142 : vector<1x16x128xf32>
    %144 = arith.subf %107, %143 : vector<1x16x128xf32>
    %145 = vector.shape_cast %144 : vector<1x16x128xf32> to vector<16x128xf32>
    %c0_35 = arith.constant 0 : index
    %c0_36 = arith.constant 0 : index
    %146 = vector.load %arg8[%c0_35, %c0_36] : memref<128x128xbf16, #tpu.memory_space<vmem>>, vector<128x128xbf16>
    %147 = arith.truncf %145 : vector<16x128xf32> to vector<16x128xbf16>
    %cst_37 = arith.constant dense<0.000000e+00> : vector<16x128xf32>
    %148 = tpu.matmul %147, %146, %cst_37 {dimension_numbers = #tpu.dot_dimension_numbers<[1], [0], [0], [1], [0, 0, 1, 1], [], []>} : vector<16x128xbf16>, vector<128x128xbf16>, vector<16x128xf32> -> vector<16x128xf32>
    %cst_38 = arith.constant 0.000000e+00 : f32
    %149 = vector.broadcast %cst_38 : f32 to vector<16x128xf32>
    %150 = arith.maximumf %148, %149 : vector<16x128xf32>
    %c0_39 = arith.constant 0 : index
    %c0_40 = arith.constant 0 : index
    %151 = vector.load %arg9[%c0_39, %c0_40] : memref<128x128xbf16, #tpu.memory_space<vmem>>, vector<128x128xbf16>
    %152 = arith.truncf %150 : vector<16x128xf32> to vector<16x128xbf16>
    %cst_41 = arith.constant dense<0.000000e+00> : vector<16x128xf32>
    %153 = tpu.matmul %152, %151, %cst_41 {dimension_numbers = #tpu.dot_dimension_numbers<[1], [0], [0], [1], [0, 0, 1, 1], [], []>} : vector<16x128xbf16>, vector<128x128xbf16>, vector<16x128xf32> -> vector<16x128xf32>
    %154 = arith.addf %145, %153 : vector<16x128xf32>
    %155 = vector.shape_cast %154 : vector<16x128xf32> to vector<1x16x128xf32>
    %156 = vector.extract_strided_slice %155 {offsets = [0, 0, 0], sizes = [1, 1, 128], strides = [1, 1, 1]} : vector<1x16x128xf32> to vector<1x1x128xf32>
    %157 = vector.shape_cast %156 : vector<1x1x128xf32> to vector<1x1x128xf32>
    %158 = vector.broadcast %157 : vector<1x1x128xf32> to vector<1x16x128xf32>
    %159 = vector.extract_strided_slice %155 {offsets = [0, 15, 0], sizes = [1, 1, 128], strides = [1, 1, 1]} : vector<1x16x128xf32> to vector<1x1x128xf32>
    %160 = vector.shape_cast %159 : vector<1x1x128xf32> to vector<1x1x128xf32>
    %161 = vector.broadcast %160 : vector<1x1x128xf32> to vector<1x16x128xf32>
    %c15_i32_42 = arith.constant 15 : i32
    %162 = vector.broadcast %c15_i32_42 : i32 to vector<1x16x128xi32>
    %163 = arith.cmpi sge, %2, %162 : vector<1x16x128xi32>
    %164 = vector.extract_strided_slice %155 {offsets = [0, 1, 0], sizes = [1, 15, 128], strides = [1, 1, 1]} : vector<1x16x128xf32> to vector<1x15x128xf32>
    %165 = vector.extract_strided_slice %155 {offsets = [0, 0, 0], sizes = [1, 1, 128], strides = [1, 1, 1]} : vector<1x16x128xf32> to vector<1x1x128xf32>
    %166 = tpu.concatenate %164, %165 in 1 : vector<1x15x128xf32>, vector<1x1x128xf32> -> vector<1x16x128xf32>
    %167 = arith.select %163, %161, %166 : vector<1x16x128xi1>, vector<1x16x128xf32>
    %c1_i32_43 = arith.constant 1 : i32
    %168 = vector.broadcast %c1_i32_43 : i32 to vector<1x16x128xi32>
    %169 = arith.cmpi slt, %2, %168 : vector<1x16x128xi32>
    %170 = vector.extract_strided_slice %155 {offsets = [0, 15, 0], sizes = [1, 1, 128], strides = [1, 1, 1]} : vector<1x16x128xf32> to vector<1x1x128xf32>
    %171 = vector.extract_strided_slice %155 {offsets = [0, 0, 0], sizes = [1, 15, 128], strides = [1, 1, 1]} : vector<1x16x128xf32> to vector<1x15x128xf32>
    %172 = tpu.concatenate %170, %171 in 1 : vector<1x1x128xf32>, vector<1x15x128xf32> -> vector<1x16x128xf32>
    %173 = arith.select %169, %158, %172 : vector<1x16x128xi1>, vector<1x16x128xf32>
    %174 = arith.addf %155, %167 : vector<1x16x128xf32>
    %175 = arith.addf %174, %173 : vector<1x16x128xf32>
    %c14_i32_44 = arith.constant 14 : i32
    %176 = vector.broadcast %c14_i32_44 : i32 to vector<1x16x128xi32>
    %177 = arith.cmpi sge, %2, %176 : vector<1x16x128xi32>
    %178 = vector.extract_strided_slice %155 {offsets = [0, 2, 0], sizes = [1, 14, 128], strides = [1, 1, 1]} : vector<1x16x128xf32> to vector<1x14x128xf32>
    %179 = vector.extract_strided_slice %155 {offsets = [0, 0, 0], sizes = [1, 2, 128], strides = [1, 1, 1]} : vector<1x16x128xf32> to vector<1x2x128xf32>
    %180 = tpu.concatenate %178, %179 in 1 : vector<1x14x128xf32>, vector<1x2x128xf32> -> vector<1x16x128xf32>
    %181 = arith.select %177, %161, %180 : vector<1x16x128xi1>, vector<1x16x128xf32>
    %c2_i32_45 = arith.constant 2 : i32
    %182 = vector.broadcast %c2_i32_45 : i32 to vector<1x16x128xi32>
    %183 = arith.cmpi slt, %2, %182 : vector<1x16x128xi32>
    %184 = vector.extract_strided_slice %155 {offsets = [0, 14, 0], sizes = [1, 2, 128], strides = [1, 1, 1]} : vector<1x16x128xf32> to vector<1x2x128xf32>
    %185 = vector.extract_strided_slice %155 {offsets = [0, 0, 0], sizes = [1, 14, 128], strides = [1, 1, 1]} : vector<1x16x128xf32> to vector<1x14x128xf32>
    %186 = tpu.concatenate %184, %185 in 1 : vector<1x2x128xf32>, vector<1x14x128xf32> -> vector<1x16x128xf32>
    %187 = arith.select %183, %158, %186 : vector<1x16x128xi1>, vector<1x16x128xf32>
    %188 = arith.addf %175, %181 : vector<1x16x128xf32>
    %189 = arith.addf %188, %187 : vector<1x16x128xf32>
    %cst_46 = arith.constant 2.000000e-01 : f32
    %190 = vector.broadcast %cst_46 : f32 to vector<1x16x128xf32>
    %191 = arith.mulf %189, %190 : vector<1x16x128xf32>
    %192 = arith.subf %155, %191 : vector<1x16x128xf32>
    %193 = arith.addf %71, %143 : vector<1x16x128xf32>
    %194 = arith.addf %193, %191 : vector<1x16x128xf32>
    %195 = vector.shape_cast %194 : vector<1x16x128xf32> to vector<16x128xf32>
    %c0_47 = arith.constant 0 : index
    %c0_48 = arith.constant 0 : index
    %196 = vector.load %arg10[%c0_47, %c0_48] : memref<128x384xbf16, #tpu.memory_space<vmem>>, vector<128x384xbf16>
    %197 = arith.truncf %195 : vector<16x128xf32> to vector<16x128xbf16>
    %cst_49 = arith.constant dense<0.000000e+00> : vector<16x384xf32>
    %198 = tpu.matmul %197, %196, %cst_49 {dimension_numbers = #tpu.dot_dimension_numbers<[1], [0], [0], [1], [0, 0, 1, 1], [], []>} : vector<16x128xbf16>, vector<128x384xbf16>, vector<16x384xf32> -> vector<16x384xf32>
    %199 = vector.shape_cast %198 : vector<16x384xf32> to vector<1x16x384xf32>
    %200 = vector.extract_strided_slice %199 {offsets = [0, 0, 0], sizes = [1, 16, 128], strides = [1, 1, 1]} : vector<1x16x384xf32> to vector<1x16x128xf32>
    %201 = vector.extract_strided_slice %199 {offsets = [0, 0, 128], sizes = [1, 16, 128], strides = [1, 1, 1]} : vector<1x16x384xf32> to vector<1x16x128xf32>
    %202 = vector.extract_strided_slice %199 {offsets = [0, 0, 256], sizes = [1, 16, 128], strides = [1, 1, 1]} : vector<1x16x384xf32> to vector<1x16x128xf32>
    %203 = vector.extract_strided_slice %200 {offsets = [0, 15, 0], sizes = [1, 1, 128], strides = [1, 1, 1]} : vector<1x16x128xf32> to vector<1x1x128xf32>
    %204 = vector.extract_strided_slice %200 {offsets = [0, 0, 0], sizes = [1, 15, 128], strides = [1, 1, 1]} : vector<1x16x128xf32> to vector<1x15x128xf32>
    %205 = tpu.concatenate %203, %204 in 1 : vector<1x1x128xf32>, vector<1x15x128xf32> -> vector<1x16x128xf32>
    %206 = arith.addf %205, %201 : vector<1x16x128xf32>
    %207 = vector.extract_strided_slice %202 {offsets = [0, 1, 0], sizes = [1, 15, 128], strides = [1, 1, 1]} : vector<1x16x128xf32> to vector<1x15x128xf32>
    %208 = vector.extract_strided_slice %202 {offsets = [0, 0, 0], sizes = [1, 1, 128], strides = [1, 1, 1]} : vector<1x16x128xf32> to vector<1x1x128xf32>
    %209 = tpu.concatenate %207, %208 in 1 : vector<1x15x128xf32>, vector<1x1x128xf32> -> vector<1x16x128xf32>
    %210 = arith.addf %206, %209 : vector<1x16x128xf32>
    %c0_50 = arith.constant 0 : index
    %c0_51 = arith.constant 0 : index
    %c0_52 = arith.constant 0 : index
    %211 = vector.load %arg11[%c0_50, %c0_51, %c0_52] : memref<1x16x128xf32, #tpu.memory_space<vmem>>, vector<1x16x128xf32>
    tpu.vector_store %arg11[%c0_50, %c0_51, %c0_52], %192 {strides = array<i32>} : memref<1x16x128xf32, #tpu.memory_space<vmem>>, vector<1x16x128xf32>,
    %c0_53 = arith.constant 0 : index
    %c0_54 = arith.constant 0 : index
    %c0_55 = arith.constant 0 : index
    %212 = vector.load %arg12[%c0_53, %c0_54, %c0_55] : memref<1x16x128xf32, #tpu.memory_space<vmem>>, vector<1x16x128xf32>
    tpu.vector_store %arg12[%c0_53, %c0_54, %c0_55], %210 {strides = array<i32>} : memref<1x16x128xf32, #tpu.memory_space<vmem>>, vector<1x16x128xf32>,
    return
  }
  func.func @transform_0(%arg0: i32) -> (i32, i32, i32) {
    %c0_i32 = arith.constant 0 : i32
    %c0_i32_0 = arith.constant 0 : i32
    %c0_i32_1 = arith.constant 0 : i32
    return %arg0, %c0_i32, %c0_i32_0 : i32, i32, i32
  }
  func.func @transform_1(%arg0: i32) -> (i32, i32, i32) {
    %c0_i32 = arith.constant 0 : i32
    %c0_i32_0 = arith.constant 0 : i32
    %c0_i32_1 = arith.constant 0 : i32
    return %arg0, %c0_i32, %c0_i32_0 : i32, i32, i32
  }
  func.func @transform_2(%arg0: i32) -> (i32, i32) {
    %c0_i32 = arith.constant 0 : i32
    %c0_i32_0 = arith.constant 0 : i32
    %c0_i32_1 = arith.constant 0 : i32
    return %c0_i32, %c0_i32_0 : i32, i32
  }
  func.func @transform_3(%arg0: i32) -> (i32, i32) {
    %c0_i32 = arith.constant 0 : i32
    %c0_i32_0 = arith.constant 0 : i32
    %c0_i32_1 = arith.constant 0 : i32
    return %c0_i32, %c0_i32_0 : i32, i32
  }
  func.func @transform_4(%arg0: i32) -> (i32, i32) {
    %c0_i32 = arith.constant 0 : i32
    %c0_i32_0 = arith.constant 0 : i32
    %c0_i32_1 = arith.constant 0 : i32
    return %c0_i32, %c0_i32_0 : i32, i32
  }
  func.func @transform_5(%arg0: i32) -> (i32, i32) {
    %c0_i32 = arith.constant 0 : i32
    %c0_i32_0 = arith.constant 0 : i32
    %c0_i32_1 = arith.constant 0 : i32
    return %c0_i32, %c0_i32_0 : i32, i32
  }
  func.func @transform_6(%arg0: i32) -> (i32, i32) {
    %c0_i32 = arith.constant 0 : i32
    %c0_i32_0 = arith.constant 0 : i32
    %c0_i32_1 = arith.constant 0 : i32
    return %c0_i32, %c0_i32_0 : i32, i32
  }
  func.func @transform_7(%arg0: i32) -> (i32, i32) {
    %c0_i32 = arith.constant 0 : i32
    %c0_i32_0 = arith.constant 0 : i32
    %c0_i32_1 = arith.constant 0 : i32
    return %c0_i32, %c0_i32_0 : i32, i32
  }
  func.func @transform_8(%arg0: i32) -> (i32, i32) {
    %c0_i32 = arith.constant 0 : i32
    %c0_i32_0 = arith.constant 0 : i32
    %c0_i32_1 = arith.constant 0 : i32
    return %c0_i32, %c0_i32_0 : i32, i32
  }
  func.func @transform_9(%arg0: i32) -> (i32, i32) {
    %c0_i32 = arith.constant 0 : i32
    %c0_i32_0 = arith.constant 0 : i32
    %c0_i32_1 = arith.constant 0 : i32
    return %c0_i32, %c0_i32_0 : i32, i32
  }
  func.func @transform_10(%arg0: i32) -> (i32, i32, i32) {
    %c0_i32 = arith.constant 0 : i32
    %c0_i32_0 = arith.constant 0 : i32
    %c0_i32_1 = arith.constant 0 : i32
    return %arg0, %c0_i32, %c0_i32_0 : i32, i32, i32
  }
  func.func @transform_11(%arg0: i32) -> (i32, i32, i32) {
    %c0_i32 = arith.constant 0 : i32
    %c0_i32_0 = arith.constant 0 : i32
    %c0_i32_1 = arith.constant 0 : i32
    return %arg0, %c0_i32, %c0_i32_0 : i32, i32, i32
  }
}

module attributes {stable_mosaic.version = 11 : i64} {
  func.func @kernel(%arg0: i32, %arg1: memref<1x16x128xf32, #tpu.memory_space<vmem>>, %arg2: memref<1x24x128xf32, #tpu.memory_space<vmem>>, %arg3: memref<128x384xbf16, #tpu.memory_space<vmem>>, %arg4: memref<128x128xbf16, #tpu.memory_space<vmem>>, %arg5: memref<128x128xbf16, #tpu.memory_space<vmem>>, %arg6: memref<128x256xbf16, #tpu.memory_space<vmem>>, %arg7: memref<128x128xbf16, #tpu.memory_space<vmem>>, %arg8: memref<128x128xbf16, #tpu.memory_space<vmem>>, %arg9: memref<128x128xbf16, #tpu.memory_space<vmem>>, %arg10: memref<128x384xbf16, #tpu.memory_space<vmem>>, %arg11: memref<1x16x128xf32, #tpu.memory_space<vmem>>, %arg12: memref<1x16x128xf32, #tpu.memory_space<vmem>>) attributes {dimension_semantics = [#tpu.dimension_semantics<parallel>], iteration_bounds = array<i64: 2>, scalar_prefetch = 0 : i64, scratch_operands = 0 : i64, tpu.core_type = #tpu.core_type<tc>, window_params = [{transform_indices = @transform_0, window_bounds = array<i64: 1, 16, 128>}, {transform_indices = @transform_1, window_bounds = array<i64: 1, 24, 128>}, {pipeline_mode = #tpu.pipeline_mode<synchronous>, transform_indices = @transform_2, window_bounds = array<i64: 128, 384>}, {pipeline_mode = #tpu.pipeline_mode<synchronous>, transform_indices = @transform_3, window_bounds = array<i64: 128, 128>}, {pipeline_mode = #tpu.pipeline_mode<synchronous>, transform_indices = @transform_4, window_bounds = array<i64: 128, 128>}, {pipeline_mode = #tpu.pipeline_mode<synchronous>, transform_indices = @transform_5, window_bounds = array<i64: 128, 256>}, {pipeline_mode = #tpu.pipeline_mode<synchronous>, transform_indices = @transform_6, window_bounds = array<i64: 128, 128>}, {pipeline_mode = #tpu.pipeline_mode<synchronous>, transform_indices = @transform_7, window_bounds = array<i64: 128, 128>}, {pipeline_mode = #tpu.pipeline_mode<synchronous>, transform_indices = @transform_8, window_bounds = array<i64: 128, 128>}, {pipeline_mode = #tpu.pipeline_mode<synchronous>, transform_indices = @transform_9, window_bounds = array<i64: 128, 384>}, {transform_indices = @transform_10, window_bounds = array<i64: 1, 16, 128>}, {transform_indices = @transform_11, window_bounds = array<i64: 1, 16, 128>}]} {
    %c0 = arith.constant 0 : index
    %c0_0 = arith.constant 0 : index
    %c0_1 = arith.constant 0 : index
    %0 = vector.load %arg1[%c0, %c0_0, %c0_1] : memref<1x16x128xf32, #tpu.memory_space<vmem>>, vector<1x16x128xf32>
    %c0_2 = arith.constant 0 : index
    %c0_3 = arith.constant 0 : index
    %c0_4 = arith.constant 0 : index
    %1 = vector.load %arg2[%c0_2, %c0_3, %c0_4] : memref<1x24x128xf32, #tpu.memory_space<vmem>>, vector<1x24x128xf32>
    %2 = tpu.iota {dimensions = array<i32: 1>} : vector<1x16x128xi32>
    %3 = vector.shape_cast %0 : vector<1x16x128xf32> to vector<16x128xf32>
    %4 = vector.shape_cast %1 : vector<1x24x128xf32> to vector<24x128xf32>
    %c0_5 = arith.constant 0 : index
    %c0_6 = arith.constant 0 : index
    %5 = vector.load %arg3[%c0_5, %c0_6] : memref<128x384xbf16, #tpu.memory_space<vmem>>, vector<128x384xbf16>
    %6 = arith.truncf %3 : vector<16x128xf32> to vector<16x128xbf16>
    %cst = arith.constant dense<0.000000e+00> : vector<16x384xf32>
    %7 = tpu.matmul %6, %5, %cst {dimension_numbers = #tpu.dot_dimension_numbers<[1], [0], [0], [1], [0, 0, 1, 1], [], []>} : vector<16x128xbf16>, vector<128x384xbf16>, vector<16x384xf32> -> vector<16x384xf32>
    %8 = vector.shape_cast %7 : vector<16x384xf32> to vector<1x16x384xf32>
    %9 = vector.extract_strided_slice %8 {offsets = [0, 0, 0], sizes = [1, 16, 128], strides = [1, 1, 1]} : vector<1x16x384xf32> to vector<1x16x128xf32>
    %10 = vector.extract_strided_slice %8 {offsets = [0, 0, 128], sizes = [1, 16, 128], strides = [1, 1, 1]} : vector<1x16x384xf32> to vector<1x16x128xf32>
    %11 = vector.extract_strided_slice %8 {offsets = [0, 0, 256], sizes = [1, 16, 128], strides = [1, 1, 1]} : vector<1x16x384xf32> to vector<1x16x128xf32>
    %12 = arith.truncf %9 : vector<1x16x128xf32> to vector<1x16x128xbf16>
    %13 = arith.truncf %10 : vector<1x16x128xf32> to vector<1x16x128xbf16>
    %cst_7 = arith.constant dense<0.000000e+00> : vector<1x16x16xf32>
    %14 = tpu.matmul %12, %13, %cst_7 {dimension_numbers = #tpu.dot_dimension_numbers<[2], [2], [1], [1], [0, 0, 0, 1, 1, 1], [0], [0]>} : vector<1x16x128xbf16>, vector<1x16x128xbf16>, vector<1x16x16xf32> -> vector<1x16x16xf32>
    %cst_8 = arith.constant 0.176776692 : f32
    %15 = vector.broadcast %cst_8 : f32 to vector<1x16x16xf32>
    %16 = arith.mulf %14, %15 : vector<1x16x16xf32>
    %cst_9 = arith.constant dense<0xFF800000> : vector<1x16xf32>
    %17 = vector.multi_reduction <maximumf>, %16, %cst_9 [2] : vector<1x16x16xf32> to vector<1x16xf32>
    %18 = vector.shape_cast %17 : vector<1x16xf32> to vector<1x16x1xf32>
    %19 = vector.broadcast %18 : vector<1x16x1xf32> to vector<1x16x16xf32>
    %20 = arith.subf %16, %19 : vector<1x16x16xf32>
    %21 = math.exp %20 : vector<1x16x16xf32>
    %cst_10 = arith.constant dense<0.000000e+00> : vector<1x16xf32>
    %22 = vector.multi_reduction <add>, %21, %cst_10 [2] : vector<1x16x16xf32> to vector<1x16xf32>
    %23 = vector.shape_cast %22 : vector<1x16xf32> to vector<1x16x1xf32>
    %24 = tpu.reciprocal %23 {approx = true} : vector<1x16x1xf32> -> vector<1x16x1xf32>
    %25 = vector.broadcast %24 : vector<1x16x1xf32> to vector<1x16x16xf32>
    %26 = arith.mulf %21, %25 : vector<1x16x16xf32>
    %27 = arith.truncf %26 : vector<1x16x16xf32> to vector<1x16x16xbf16>
    %28 = arith.truncf %11 : vector<1x16x128xf32> to vector<1x16x128xbf16>
    %cst_11 = arith.constant dense<0.000000e+00> : vector<1x16x128xf32>
    %29 = tpu.matmul %27, %28, %cst_11 {dimension_numbers = #tpu.dot_dimension_numbers<[2], [1], [1], [2], [0, 0, 0, 1, 1, 2], [0], [0]>} : vector<1x16x16xbf16>, vector<1x16x128xbf16>, vector<1x16x128xf32> -> vector<1x16x128xf32>
    %30 = vector.shape_cast %29 : vector<1x16x128xf32> to vector<16x128xf32>
    %c0_12 = arith.constant 0 : index
    %c0_13 = arith.constant 0 : index
    %31 = vector.load %arg4[%c0_12, %c0_13] : memref<128x128xbf16, #tpu.memory_space<vmem>>, vector<128x128xbf16>
    %32 = arith.truncf %30 : vector<16x128xf32> to vector<16x128xbf16>
    %cst_14 = arith.constant dense<0.000000e+00> : vector<16x128xf32>
    %33 = tpu.matmul %32, %31, %cst_14 {dimension_numbers = #tpu.dot_dimension_numbers<[1], [0], [0], [1], [0, 0, 1, 1], [], []>} : vector<16x128xbf16>, vector<128x128xbf16>, vector<16x128xf32> -> vector<16x128xf32>
    %34 = arith.addf %3, %33 : vector<16x128xf32>
    %35 = vector.shape_cast %34 : vector<16x128xf32> to vector<1x16x128xf32>
    %36 = vector.extract_strided_slice %35 {offsets = [0, 0, 0], sizes = [1, 1, 128], strides = [1, 1, 1]} : vector<1x16x128xf32> to vector<1x1x128xf32>
    %37 = vector.shape_cast %36 : vector<1x1x128xf32> to vector<1x1x128xf32>
    %38 = vector.broadcast %37 : vector<1x1x128xf32> to vector<1x16x128xf32>
    %39 = vector.extract_strided_slice %35 {offsets = [0, 15, 0], sizes = [1, 1, 128], strides = [1, 1, 1]} : vector<1x16x128xf32> to vector<1x1x128xf32>
    %40 = vector.shape_cast %39 : vector<1x1x128xf32> to vector<1x1x128xf32>
    %41 = vector.broadcast %40 : vector<1x1x128xf32> to vector<1x16x128xf32>
    %c15_i32 = arith.constant 15 : i32
    %42 = vector.broadcast %c15_i32 : i32 to vector<1x16x128xi32>
    %43 = arith.cmpi sge, %2, %42 : vector<1x16x128xi32>
    %44 = vector.extract_strided_slice %35 {offsets = [0, 1, 0], sizes = [1, 15, 128], strides = [1, 1, 1]} : vector<1x16x128xf32> to vector<1x15x128xf32>
    %45 = vector.extract_strided_slice %35 {offsets = [0, 0, 0], sizes = [1, 1, 128], strides = [1, 1, 1]} : vector<1x16x128xf32> to vector<1x1x128xf32>
    %46 = tpu.concatenate %44, %45 in 1 : vector<1x15x128xf32>, vector<1x1x128xf32> -> vector<1x16x128xf32>
    %47 = arith.select %43, %41, %46 : vector<1x16x128xi1>, vector<1x16x128xf32>
    %c1_i32 = arith.constant 1 : i32
    %48 = vector.broadcast %c1_i32 : i32 to vector<1x16x128xi32>
    %49 = arith.cmpi slt, %2, %48 : vector<1x16x128xi32>
    %50 = vector.extract_strided_slice %35 {offsets = [0, 15, 0], sizes = [1, 1, 128], strides = [1, 1, 1]} : vector<1x16x128xf32> to vector<1x1x128xf32>
    %51 = vector.extract_strided_slice %35 {offsets = [0, 0, 0], sizes = [1, 15, 128], strides = [1, 1, 1]} : vector<1x16x128xf32> to vector<1x15x128xf32>
    %52 = tpu.concatenate %50, %51 in 1 : vector<1x1x128xf32>, vector<1x15x128xf32> -> vector<1x16x128xf32>
    %53 = arith.select %49, %38, %52 : vector<1x16x128xi1>, vector<1x16x128xf32>
    %54 = arith.addf %35, %47 : vector<1x16x128xf32>
    %55 = arith.addf %54, %53 : vector<1x16x128xf32>
    %c14_i32 = arith.constant 14 : i32
    %56 = vector.broadcast %c14_i32 : i32 to vector<1x16x128xi32>
    %57 = arith.cmpi sge, %2, %56 : vector<1x16x128xi32>
    %58 = vector.extract_strided_slice %35 {offsets = [0, 2, 0], sizes = [1, 14, 128], strides = [1, 1, 1]} : vector<1x16x128xf32> to vector<1x14x128xf32>
    %59 = vector.extract_strided_slice %35 {offsets = [0, 0, 0], sizes = [1, 2, 128], strides = [1, 1, 1]} : vector<1x16x128xf32> to vector<1x2x128xf32>
    %60 = tpu.concatenate %58, %59 in 1 : vector<1x14x128xf32>, vector<1x2x128xf32> -> vector<1x16x128xf32>
    %61 = arith.select %57, %41, %60 : vector<1x16x128xi1>, vector<1x16x128xf32>
    %c2_i32 = arith.constant 2 : i32
    %62 = vector.broadcast %c2_i32 : i32 to vector<1x16x128xi32>
    %63 = arith.cmpi slt, %2, %62 : vector<1x16x128xi32>
    %64 = vector.extract_strided_slice %35 {offsets = [0, 14, 0], sizes = [1, 2, 128], strides = [1, 1, 1]} : vector<1x16x128xf32> to vector<1x2x128xf32>
    %65 = vector.extract_strided_slice %35 {offsets = [0, 0, 0], sizes = [1, 14, 128], strides = [1, 1, 1]} : vector<1x16x128xf32> to vector<1x14x128xf32>
    %66 = tpu.concatenate %64, %65 in 1 : vector<1x2x128xf32>, vector<1x14x128xf32> -> vector<1x16x128xf32>
    %67 = arith.select %63, %38, %66 : vector<1x16x128xi1>, vector<1x16x128xf32>
    %68 = arith.addf %55, %61 : vector<1x16x128xf32>
    %69 = arith.addf %68, %67 : vector<1x16x128xf32>
    %cst_15 = arith.constant 2.000000e-01 : f32
    %70 = vector.broadcast %cst_15 : f32 to vector<1x16x128xf32>
    %71 = arith.mulf %69, %70 : vector<1x16x128xf32>
    %72 = arith.subf %35, %71 : vector<1x16x128xf32>
    %73 = vector.shape_cast %72 : vector<1x16x128xf32> to vector<16x128xf32>
    %c0_16 = arith.constant 0 : index
    %c0_17 = arith.constant 0 : index
    %74 = vector.load %arg5[%c0_16, %c0_17] : memref<128x128xbf16, #tpu.memory_space<vmem>>, vector<128x128xbf16>
    %75 = arith.truncf %73 : vector<16x128xf32> to vector<16x128xbf16>
    %cst_18 = arith.constant dense<0.000000e+00> : vector<16x128xf32>
    %76 = tpu.matmul %75, %74, %cst_18 {dimension_numbers = #tpu.dot_dimension_numbers<[1], [0], [0], [1], [0, 0, 1, 1], [], []>} : vector<16x128xbf16>, vector<128x128xbf16>, vector<16x128xf32> -> vector<16x128xf32>
    %77 = vector.shape_cast %76 : vector<16x128xf32> to vector<1x16x128xf32>
    %c0_19 = arith.constant 0 : index
    %c0_20 = arith.constant 0 : index
    %78 = vector.load %arg6[%c0_19, %c0_20] : memref<128x256xbf16, #tpu.memory_space<vmem>>, vector<128x256xbf16>
    %79 = arith.truncf %4 : vector<24x128xf32> to vector<24x128xbf16>
    %cst_21 = arith.constant dense<0.000000e+00> : vector<24x256xf32>
    %80 = tpu.matmul %79, %78, %cst_21 {dimension_numbers = #tpu.dot_dimension_numbers<[1], [0], [0], [1], [0, 0, 1, 1], [], []>} : vector<24x128xbf16>, vector<128x256xbf16>, vector<24x256xf32> -> vector<24x256xf32>
    %81 = vector.shape_cast %80 : vector<24x256xf32> to vector<1x24x256xf32>
    %82 = vector.extract_strided_slice %81 {offsets = [0, 0, 0], sizes = [1, 24, 128], strides = [1, 1, 1]} : vector<1x24x256xf32> to vector<1x24x128xf32>
    %83 = vector.extract_strided_slice %81 {offsets = [0, 0, 128], sizes = [1, 24, 128], strides = [1, 1, 1]} : vector<1x24x256xf32> to vector<1x24x128xf32>
    %84 = arith.truncf %77 : vector<1x16x128xf32> to vector<1x16x128xbf16>
    %85 = arith.truncf %82 : vector<1x24x128xf32> to vector<1x24x128xbf16>
    %cst_22 = arith.constant dense<0.000000e+00> : vector<1x16x24xf32>
    %86 = tpu.matmul %84, %85, %cst_22 {dimension_numbers = #tpu.dot_dimension_numbers<[2], [2], [1], [1], [0, 0, 0, 1, 1, 1], [0], [0]>} : vector<1x16x128xbf16>, vector<1x24x128xbf16>, vector<1x16x24xf32> -> vector<1x16x24xf32>
    %cst_23 = arith.constant 0.176776692 : f32
    %87 = vector.broadcast %cst_23 : f32 to vector<1x16x24xf32>
    %88 = arith.mulf %86, %87 : vector<1x16x24xf32>
    %cst_24 = arith.constant dense<0xFF800000> : vector<1x16xf32>
    %89 = vector.multi_reduction <maximumf>, %88, %cst_24 [2] : vector<1x16x24xf32> to vector<1x16xf32>
    %90 = vector.shape_cast %89 : vector<1x16xf32> to vector<1x16x1xf32>
    %91 = vector.broadcast %90 : vector<1x16x1xf32> to vector<1x16x24xf32>
    %92 = arith.subf %88, %91 : vector<1x16x24xf32>
    %93 = math.exp %92 : vector<1x16x24xf32>
    %cst_25 = arith.constant dense<0.000000e+00> : vector<1x16xf32>
    %94 = vector.multi_reduction <add>, %93, %cst_25 [2] : vector<1x16x24xf32> to vector<1x16xf32>
    %95 = vector.shape_cast %94 : vector<1x16xf32> to vector<1x16x1xf32>
    %96 = tpu.reciprocal %95 {approx = true} : vector<1x16x1xf32> -> vector<1x16x1xf32>
    %97 = vector.broadcast %96 : vector<1x16x1xf32> to vector<1x16x24xf32>
    %98 = arith.mulf %93, %97 : vector<1x16x24xf32>
    %99 = arith.truncf %98 : vector<1x16x24xf32> to vector<1x16x24xbf16>
    %100 = arith.truncf %83 : vector<1x24x128xf32> to vector<1x24x128xbf16>
    %cst_26 = arith.constant dense<0.000000e+00> : vector<1x16x128xf32>
    %101 = tpu.matmul %99, %100, %cst_26 {dimension_numbers = #tpu.dot_dimension_numbers<[2], [1], [1], [2], [0, 0, 0, 1, 1, 2], [0], [0]>} : vector<1x16x24xbf16>, vector<1x24x128xbf16>, vector<1x16x128xf32> -> vector<1x16x128xf32>
    %102 = vector.shape_cast %101 : vector<1x16x128xf32> to vector<16x128xf32>
    %c0_27 = arith.constant 0 : index
    %c0_28 = arith.constant 0 : index
    %103 = vector.load %arg7[%c0_27, %c0_28] : memref<128x128xbf16, #tpu.memory_space<vmem>>, vector<128x128xbf16>
    %104 = arith.truncf %102 : vector<16x128xf32> to vector<16x128xbf16>
    %cst_29 = arith.constant dense<0.000000e+00> : vector<16x128xf32>
    %105 = tpu.matmul %104, %103, %cst_29 {dimension_numbers = #tpu.dot_dimension_numbers<[1], [0], [0], [1], [0, 0, 1, 1], [], []>} : vector<16x128xbf16>, vector<128x128xbf16>, vector<16x128xf32> -> vector<16x128xf32>
    %106 = arith.addf %73, %105 : vector<16x128xf32>
    %107 = vector.shape_cast %106 : vector<16x128xf32> to vector<1x16x128xf32>
    %108 = vector.extract_strided_slice %107 {offsets = [0, 0, 0], sizes = [1, 1, 128], strides = [1, 1, 1]} : vector<1x16x128xf32> to vector<1x1x128xf32>
    %109 = vector.shape_cast %108 : vector<1x1x128xf32> to vector<1x1x128xf32>
    %110 = vector.broadcast %109 : vector<1x1x128xf32> to vector<1x16x128xf32>
    %111 = vector.extract_strided_slice %107 {offsets = [0, 15, 0], sizes = [1, 1, 128], strides = [1, 1, 1]} : vector<1x16x128xf32> to vector<1x1x128xf32>
    %112 = vector.shape_cast %111 : vector<1x1x128xf32> to vector<1x1x128xf32>
    %113 = vector.broadcast %112 : vector<1x1x128xf32> to vector<1x16x128xf32>
    %c15_i32_30 = arith.constant 15 : i32
    %114 = vector.broadcast %c15_i32_30 : i32 to vector<1x16x128xi32>
    %115 = arith.cmpi sge, %2, %114 : vector<1x16x128xi32>
    %116 = vector.extract_strided_slice %107 {offsets = [0, 1, 0], sizes = [1, 15, 128], strides = [1, 1, 1]} : vector<1x16x128xf32> to vector<1x15x128xf32>
    %117 = vector.extract_strided_slice %107 {offsets = [0, 0, 0], sizes = [1, 1, 128], strides = [1, 1, 1]} : vector<1x16x128xf32> to vector<1x1x128xf32>
    %118 = tpu.concatenate %116, %117 in 1 : vector<1x15x128xf32>, vector<1x1x128xf32> -> vector<1x16x128xf32>
    %119 = arith.select %115, %113, %118 : vector<1x16x128xi1>, vector<1x16x128xf32>
    %c1_i32_31 = arith.constant 1 : i32
    %120 = vector.broadcast %c1_i32_31 : i32 to vector<1x16x128xi32>
    %121 = arith.cmpi slt, %2, %120 : vector<1x16x128xi32>
    %122 = vector.extract_strided_slice %107 {offsets = [0, 15, 0], sizes = [1, 1, 128], strides = [1, 1, 1]} : vector<1x16x128xf32> to vector<1x1x128xf32>
    %123 = vector.extract_strided_slice %107 {offsets = [0, 0, 0], sizes = [1, 15, 128], strides = [1, 1, 1]} : vector<1x16x128xf32> to vector<1x15x128xf32>
    %124 = tpu.concatenate %122, %123 in 1 : vector<1x1x128xf32>, vector<1x15x128xf32> -> vector<1x16x128xf32>
    %125 = arith.select %121, %110, %124 : vector<1x16x128xi1>, vector<1x16x128xf32>
    %126 = arith.addf %107, %119 : vector<1x16x128xf32>
    %127 = arith.addf %126, %125 : vector<1x16x128xf32>
    %c14_i32_32 = arith.constant 14 : i32
    %128 = vector.broadcast %c14_i32_32 : i32 to vector<1x16x128xi32>
    %129 = arith.cmpi sge, %2, %128 : vector<1x16x128xi32>
    %130 = vector.extract_strided_slice %107 {offsets = [0, 2, 0], sizes = [1, 14, 128], strides = [1, 1, 1]} : vector<1x16x128xf32> to vector<1x14x128xf32>
    %131 = vector.extract_strided_slice %107 {offsets = [0, 0, 0], sizes = [1, 2, 128], strides = [1, 1, 1]} : vector<1x16x128xf32> to vector<1x2x128xf32>
    %132 = tpu.concatenate %130, %131 in 1 : vector<1x14x128xf32>, vector<1x2x128xf32> -> vector<1x16x128xf32>
    %133 = arith.select %129, %113, %132 : vector<1x16x128xi1>, vector<1x16x128xf32>
    %c2_i32_33 = arith.constant 2 : i32
    %134 = vector.broadcast %c2_i32_33 : i32 to vector<1x16x128xi32>
    %135 = arith.cmpi slt, %2, %134 : vector<1x16x128xi32>
    %136 = vector.extract_strided_slice %107 {offsets = [0, 14, 0], sizes = [1, 2, 128], strides = [1, 1, 1]} : vector<1x16x128xf32> to vector<1x2x128xf32>
    %137 = vector.extract_strided_slice %107 {offsets = [0, 0, 0], sizes = [1, 14, 128], strides = [1, 1, 1]} : vector<1x16x128xf32> to vector<1x14x128xf32>
    %138 = tpu.concatenate %136, %137 in 1 : vector<1x2x128xf32>, vector<1x14x128xf32> -> vector<1x16x128xf32>
    %139 = arith.select %135, %110, %138 : vector<1x16x128xi1>, vector<1x16x128xf32>
    %140 = arith.addf %127, %133 : vector<1x16x128xf32>
    %141 = arith.addf %140, %139 : vector<1x16x128xf32>
    %cst_34 = arith.constant 2.000000e-01 : f32
    %142 = vector.broadcast %cst_34 : f32 to vector<1x16x128xf32>
    %143 = arith.mulf %141, %142 : vector<1x16x128xf32>
    %144 = arith.subf %107, %143 : vector<1x16x128xf32>
    %145 = vector.shape_cast %144 : vector<1x16x128xf32> to vector<16x128xf32>
    %c0_35 = arith.constant 0 : index
    %c0_36 = arith.constant 0 : index
    %146 = vector.load %arg8[%c0_35, %c0_36] : memref<128x128xbf16, #tpu.memory_space<vmem>>, vector<128x128xbf16>
    %147 = arith.truncf %145 : vector<16x128xf32> to vector<16x128xbf16>
    %cst_37 = arith.constant dense<0.000000e+00> : vector<16x128xf32>
    %148 = tpu.matmul %147, %146, %cst_37 {dimension_numbers = #tpu.dot_dimension_numbers<[1], [0], [0], [1], [0, 0, 1, 1], [], []>} : vector<16x128xbf16>, vector<128x128xbf16>, vector<16x128xf32> -> vector<16x128xf32>
    %cst_38 = arith.constant 0.000000e+00 : f32
    %149 = vector.broadcast %cst_38 : f32 to vector<16x128xf32>
    %150 = arith.maximumf %148, %149 : vector<16x128xf32>
    %c0_39 = arith.constant 0 : index
    %c0_40 = arith.constant 0 : index
    %151 = vector.load %arg9[%c0_39, %c0_40] : memref<128x128xbf16, #tpu.memory_space<vmem>>, vector<128x128xbf16>
    %152 = arith.truncf %150 : vector<16x128xf32> to vector<16x128xbf16>
    %cst_41 = arith.constant dense<0.000000e+00> : vector<16x128xf32>
    %153 = tpu.matmul %152, %151, %cst_41 {dimension_numbers = #tpu.dot_dimension_numbers<[1], [0], [0], [1], [0, 0, 1, 1], [], []>} : vector<16x128xbf16>, vector<128x128xbf16>, vector<16x128xf32> -> vector<16x128xf32>
    %154 = arith.addf %145, %153 : vector<16x128xf32>
    %155 = vector.shape_cast %154 : vector<16x128xf32> to vector<1x16x128xf32>
    %156 = vector.extract_strided_slice %155 {offsets = [0, 0, 0], sizes = [1, 1, 128], strides = [1, 1, 1]} : vector<1x16x128xf32> to vector<1x1x128xf32>
    %157 = vector.shape_cast %156 : vector<1x1x128xf32> to vector<1x1x128xf32>
    %158 = vector.broadcast %157 : vector<1x1x128xf32> to vector<1x16x128xf32>
    %159 = vector.extract_strided_slice %155 {offsets = [0, 15, 0], sizes = [1, 1, 128], strides = [1, 1, 1]} : vector<1x16x128xf32> to vector<1x1x128xf32>
    %160 = vector.shape_cast %159 : vector<1x1x128xf32> to vector<1x1x128xf32>
    %161 = vector.broadcast %160 : vector<1x1x128xf32> to vector<1x16x128xf32>
    %c15_i32_42 = arith.constant 15 : i32
    %162 = vector.broadcast %c15_i32_42 : i32 to vector<1x16x128xi32>
    %163 = arith.cmpi sge, %2, %162 : vector<1x16x128xi32>
    %164 = vector.extract_strided_slice %155 {offsets = [0, 1, 0], sizes = [1, 15, 128], strides = [1, 1, 1]} : vector<1x16x128xf32> to vector<1x15x128xf32>
    %165 = vector.extract_strided_slice %155 {offsets = [0, 0, 0], sizes = [1, 1, 128], strides = [1, 1, 1]} : vector<1x16x128xf32> to vector<1x1x128xf32>
    %166 = tpu.concatenate %164, %165 in 1 : vector<1x15x128xf32>, vector<1x1x128xf32> -> vector<1x16x128xf32>
    %167 = arith.select %163, %161, %166 : vector<1x16x128xi1>, vector<1x16x128xf32>
    %c1_i32_43 = arith.constant 1 : i32
    %168 = vector.broadcast %c1_i32_43 : i32 to vector<1x16x128xi32>
    %169 = arith.cmpi slt, %2, %168 : vector<1x16x128xi32>
    %170 = vector.extract_strided_slice %155 {offsets = [0, 15, 0], sizes = [1, 1, 128], strides = [1, 1, 1]} : vector<1x16x128xf32> to vector<1x1x128xf32>
    %171 = vector.extract_strided_slice %155 {offsets = [0, 0, 0], sizes = [1, 15, 128], strides = [1, 1, 1]} : vector<1x16x128xf32> to vector<1x15x128xf32>
    %172 = tpu.concatenate %170, %171 in 1 : vector<1x1x128xf32>, vector<1x15x128xf32> -> vector<1x16x128xf32>
    %173 = arith.select %169, %158, %172 : vector<1x16x128xi1>, vector<1x16x128xf32>
    %174 = arith.addf %155, %167 : vector<1x16x128xf32>
    %175 = arith.addf %174, %173 : vector<1x16x128xf32>
    %c14_i32_44 = arith.constant 14 : i32
    %176 = vector.broadcast %c14_i32_44 : i32 to vector<1x16x128xi32>
    %177 = arith.cmpi sge, %2, %176 : vector<1x16x128xi32>
    %178 = vector.extract_strided_slice %155 {offsets = [0, 2, 0], sizes = [1, 14, 128], strides = [1, 1, 1]} : vector<1x16x128xf32> to vector<1x14x128xf32>
    %179 = vector.extract_strided_slice %155 {offsets = [0, 0, 0], sizes = [1, 2, 128], strides = [1, 1, 1]} : vector<1x16x128xf32> to vector<1x2x128xf32>
    %180 = tpu.concatenate %178, %179 in 1 : vector<1x14x128xf32>, vector<1x2x128xf32> -> vector<1x16x128xf32>
    %181 = arith.select %177, %161, %180 : vector<1x16x128xi1>, vector<1x16x128xf32>
    %c2_i32_45 = arith.constant 2 : i32
    %182 = vector.broadcast %c2_i32_45 : i32 to vector<1x16x128xi32>
    %183 = arith.cmpi slt, %2, %182 : vector<1x16x128xi32>
    %184 = vector.extract_strided_slice %155 {offsets = [0, 14, 0], sizes = [1, 2, 128], strides = [1, 1, 1]} : vector<1x16x128xf32> to vector<1x2x128xf32>
    %185 = vector.extract_strided_slice %155 {offsets = [0, 0, 0], sizes = [1, 14, 128], strides = [1, 1, 1]} : vector<1x16x128xf32> to vector<1x14x128xf32>
    %186 = tpu.concatenate %184, %185 in 1 : vector<1x2x128xf32>, vector<1x14x128xf32> -> vector<1x16x128xf32>
    %187 = arith.select %183, %158, %186 : vector<1x16x128xi1>, vector<1x16x128xf32>
    %188 = arith.addf %175, %181 : vector<1x16x128xf32>
    %189 = arith.addf %188, %187 : vector<1x16x128xf32>
    %cst_46 = arith.constant 2.000000e-01 : f32
    %190 = vector.broadcast %cst_46 : f32 to vector<1x16x128xf32>
    %191 = arith.mulf %189, %190 : vector<1x16x128xf32>
    %192 = arith.subf %155, %191 : vector<1x16x128xf32>
    %193 = arith.addf %71, %143 : vector<1x16x128xf32>
    %194 = arith.addf %193, %191 : vector<1x16x128xf32>
    %195 = vector.shape_cast %194 : vector<1x16x128xf32> to vector<16x128xf32>
    %c0_47 = arith.constant 0 : index
    %c0_48 = arith.constant 0 : index
    %196 = vector.load %arg10[%c0_47, %c0_48] : memref<128x384xbf16, #tpu.memory_space<vmem>>, vector<128x384xbf16>
    %197 = arith.truncf %195 : vector<16x128xf32> to vector<16x128xbf16>
    %cst_49 = arith.constant dense<0.000000e+00> : vector<16x384xf32>
    %198 = tpu.matmul %197, %196, %cst_49 {dimension_numbers = #tpu.dot_dimension_numbers<[1], [0], [0], [1], [0, 0, 1, 1], [], []>} : vector<16x128xbf16>, vector<128x384xbf16>, vector<16x384xf32> -> vector<16x384xf32>
    %199 = vector.shape_cast %198 : vector<16x384xf32> to vector<1x16x384xf32>
    %200 = vector.extract_strided_slice %199 {offsets = [0, 0, 0], sizes = [1, 16, 128], strides = [1, 1, 1]} : vector<1x16x384xf32> to vector<1x16x128xf32>
    %201 = vector.extract_strided_slice %199 {offsets = [0, 0, 128], sizes = [1, 16, 128], strides = [1, 1, 1]} : vector<1x16x384xf32> to vector<1x16x128xf32>
    %202 = vector.extract_strided_slice %199 {offsets = [0, 0, 256], sizes = [1, 16, 128], strides = [1, 1, 1]} : vector<1x16x384xf32> to vector<1x16x128xf32>
    %203 = vector.extract_strided_slice %200 {offsets = [0, 15, 0], sizes = [1, 1, 128], strides = [1, 1, 1]} : vector<1x16x128xf32> to vector<1x1x128xf32>
    %204 = vector.extract_strided_slice %200 {offsets = [0, 0, 0], sizes = [1, 15, 128], strides = [1, 1, 1]} : vector<1x16x128xf32> to vector<1x15x128xf32>
    %205 = tpu.concatenate %203, %204 in 1 : vector<1x1x128xf32>, vector<1x15x128xf32> -> vector<1x16x128xf32>
    %206 = arith.addf %205, %201 : vector<1x16x128xf32>
    %207 = vector.extract_strided_slice %202 {offsets = [0, 1, 0], sizes = [1, 15, 128], strides = [1, 1, 1]} : vector<1x16x128xf32> to vector<1x15x128xf32>
    %208 = vector.extract_strided_slice %202 {offsets = [0, 0, 0], sizes = [1, 1, 128], strides = [1, 1, 1]} : vector<1x16x128xf32> to vector<1x1x128xf32>
    %209 = tpu.concatenate %207, %208 in 1 : vector<1x15x128xf32>, vector<1x1x128xf32> -> vector<1x16x128xf32>
    %210 = arith.addf %206, %209 : vector<1x16x128xf32>
    %c0_50 = arith.constant 0 : index
    %c0_51 = arith.constant 0 : index
    %c0_52 = arith.constant 0 : index
    %211 = vector.load %arg11[%c0_50, %c0_51, %c0_52] : memref<1x16x128xf32, #tpu.memory_space<vmem>>, vector<1x16x128xf32>
    tpu.vector_store %arg11[%c0_50, %c0_51, %c0_52], %192 {strides = array<i32>} : memref<1x16x128xf32, #tpu.memory_space<vmem>>, vector<1x16x128xf32>,
    %c0_53 = arith.constant 0 : index
    %c0_54 = arith.constant 0 : index
    %c0_55 = arith.constant 0 : index
    %212 = vector.load %arg12[%c0_53, %c0_54, %c0_55] : memref<1x16x128xf32, #tpu.memory_space<vmem>>, vector<1x16x128xf32>
    tpu.vector_store %arg12[%c0_53, %c0_54, %c0_55], %210 {strides = array<i32>} : memref<1x16x128xf32, #tpu.memory_space<vmem>>, vector<1x16x128xf32>,
    return
  }
  func.func @transform_0(%arg0: i32) -> (i32, i32, i32) {
    %c0_i32 = arith.constant 0 : i32
    %c0_i32_0 = arith.constant 0 : i32
    %c0_i32_1 = arith.constant 0 : i32
    return %arg0, %c0_i32, %c0_i32_0 : i32, i32, i32
  }
  func.func @transform_1(%arg0: i32) -> (i32, i32, i32) {
    %c0_i32 = arith.constant 0 : i32
    %c0_i32_0 = arith.constant 0 : i32
    %c0_i32_1 = arith.constant 0 : i32
    return %arg0, %c0_i32, %c0_i32_0 : i32, i32, i32
  }
  func.func @transform_2(%arg0: i32) -> (i32, i32) {
    %c0_i32 = arith.constant 0 : i32
    %c0_i32_0 = arith.constant 0 : i32
    %c0_i32_1 = arith.constant 0 : i32
    return %c0_i32, %c0_i32_0 : i32, i32
  }
  func.func @transform_3(%arg0: i32) -> (i32, i32) {
    %c0_i32 = arith.constant 0 : i32
    %c0_i32_0 = arith.constant 0 : i32
    %c0_i32_1 = arith.constant 0 : i32
    return %c0_i32, %c0_i32_0 : i32, i32
  }
  func.func @transform_4(%arg0: i32) -> (i32, i32) {
    %c0_i32 = arith.constant 0 : i32
    %c0_i32_0 = arith.constant 0 : i32
    %c0_i32_1 = arith.constant 0 : i32
    return %c0_i32, %c0_i32_0 : i32, i32
  }
  func.func @transform_5(%arg0: i32) -> (i32, i32) {
    %c0_i32 = arith.constant 0 : i32
    %c0_i32_0 = arith.constant 0 : i32
    %c0_i32_1 = arith.constant 0 : i32
    return %c0_i32, %c0_i32_0 : i32, i32
  }
  func.func @transform_6(%arg0: i32) -> (i32, i32) {
    %c0_i32 = arith.constant 0 : i32
    %c0_i32_0 = arith.constant 0 : i32
    %c0_i32_1 = arith.constant 0 : i32
    return %c0_i32, %c0_i32_0 : i32, i32
  }
  func.func @transform_7(%arg0: i32) -> (i32, i32) {
    %c0_i32 = arith.constant 0 : i32
    %c0_i32_0 = arith.constant 0 : i32
    %c0_i32_1 = arith.constant 0 : i32
    return %c0_i32, %c0_i32_0 : i32, i32
  }
  func.func @transform_8(%arg0: i32) -> (i32, i32) {
    %c0_i32 = arith.constant 0 : i32
    %c0_i32_0 = arith.constant 0 : i32
    %c0_i32_1 = arith.constant 0 : i32
    return %c0_i32, %c0_i32_0 : i32, i32
  }
  func.func @transform_9(%arg0: i32) -> (i32, i32) {
    %c0_i32 = arith.constant 0 : i32
    %c0_i32_0 = arith.constant 0 : i32
    %c0_i32_1 = arith.constant 0 : i32
    return %c0_i32, %c0_i32_0 : i32, i32
  }
  func.func @transform_10(%arg0: i32) -> (i32, i32, i32) {
    %c0_i32 = arith.constant 0 : i32
    %c0_i32_0 = arith.constant 0 : i32
    %c0_i32_1 = arith.constant 0 : i32
    return %arg0, %c0_i32, %c0_i32_0 : i32, i32, i32
  }
  func.func @transform_11(%arg0: i32) -> (i32, i32, i32) {
    %c0_i32 = arith.constant 0 : i32
    %c0_i32_0 = arith.constant 0 : i32
    %c0_i32_1 = arith.constant 0 : i32
    return %arg0, %c0_i32, %c0_i32_0 : i32, i32, i32
  }
}

</mosaic_0001>

<bundles_post_ra>
// kernel: tpu_custom_call.1
= control target key start
LH: loop header
LB: loop body
LE: loop exit
PB: predicated region body
PF: predicated region fallthrough
CT: control target
= control target key end

     0   :  { %s3812_s0 = inlined_call_operand.hbm [shape: f32[2,16,128], index: 0, kind: input, shape index: {}]   ;;  %s3813_s1 = inlined_call_operand.hbm [shape: f32[2,24,128], index: 1, kind: input, shape index: {}]   ;;  %s3814_s2 = inlined_call_operand.hbm [shape: bf16[128,384], index: 2, kind: input, shape index: {}]   ;;  %s3815_s3 = inlined_call_operand.hbm [shape: bf16[128,128], index: 3, kind: input, shape index: {}]   ;;  %s3816_s4 = inlined_call_operand.hbm [shape: bf16[128,128], index: 4, kind: input, shape index: {}]   ;;  %s3817_s5 = inlined_call_operand.hbm [shape: bf16[128,256], index: 5, kind: input, shape index: {}]   ;;  %s3818_s6 = inlined_call_operand.hbm [shape: bf16[128,128], index: 6, kind: input, shape index: {}]   ;;  %s3819_s7 = inlined_call_operand.hbm [shape: bf16[128,128], index: 7, kind: input, shape index: {}]   ;;  %s3820_s8 = inlined_call_operand.hbm [shape: bf16[128,128], index: 8, kind: input, shape index: {}]   ;;  %s3821_s9 = inlined_call_operand.hbm [shape: bf16[128,384], index: 9, kind: input, shape index: {}]   ;;  %s3822_s10 = inlined_call_operand.hbm [shape: f32[2,16,128], index: 10, kind: output, shape index: {0}]   ;;  %s3823_s11 = inlined_call_operand.hbm [shape: f32[2,16,128], index: 11, kind: output, shape index: {1}]  }
   0x1   :  { %3831 = sst [smem:[#allocation32_spill]] %s3814_s2 }
   0x2   :  { %3832 = sst [smem:[#allocation33_spill]] %s3815_s3 }
   0x3   :  { %3833 = sst [smem:[#allocation34_spill]] %s3816_s4 }
   0x4   :  { %3834 = sst [smem:[#allocation35_spill]] %s3817_s5 }
   0x5   :  { %3835 = sst [smem:[#allocation36_spill]] %s3818_s6 }
   0x6   :  { %3836 = sst [smem:[#allocation37_spill]] %s3819_s7 }
   0x7   :  { %3837 = sst [smem:[#allocation38_spill]] %s3820_s8 }
   0x8   :  { %3838 = sst [smem:[#allocation39_spill]] %s3821_s9 }
   0x9   :  { %3839 = sst [smem:[#allocation40_spill]] %s3823_s11 }
   0xa   :  { %17 = vsyncpa [#allocation3], 0 }
   0xb   :  { %19 = vsyncpa [#allocation3 + $0x1], 0 }
   0xc   :  { %20 = vsyncpa [#allocation6], 0 }
   0xd   :  { %22 = vsyncpa [#allocation6 + $0x1], 0 }
   0xe   :  { %23 = vsyncpa [#allocation9], 0 }
   0xf   :  { %24 = vsyncpa [#allocation12], 0 }
  0x10   :  { %25 = vsyncpa [#allocation15], 0 }
  0x11   :  { %26 = vsyncpa [#allocation18], 0 }
  0x12   :  { %27 = vsyncpa [#allocation4], 0 }
  0x13   :  { %29 = vsyncpa [#allocation4 + $0x1], 0 }
  0x14   :  { %30 = vsyncpa [#allocation21], 0 }
  0x15   :  { %32 = vsyncpa [#allocation21 + $0x1], 0  ;;  %s3396_s17 = smov 0   ;;  %s3398_s18 = smov 0  }
  0x16   :  { %s3400_s19 = smov 0   ;;  %s3402_s20 = smov 0  }
  0x17 LB: > { %s3840_s2 = sld [smem:[#allocation32_spill]]  ;;  %s3420_s24 = sadd.s32 4294967295, %s3318_s20   ;;  %s3318_s20 = sphi %s3402_s20, %s3866_s20   ;;  %s3314_s19 = sphi %s3400_s19, %s3865_s19   ;;  %s3310_s18 = sphi %s3398_s18, %s3864_s18   ;;  %s3306_s17 = sphi %s3396_s17, %s3863_s17  }
  0x18   : > { %p2173_p0 = scmp.ge.s32.totalorder %s3318_s20, 1  ;;  %p59_p1 = scmp.eq.s32.totalorder %s3420_s24, 0 }
  0x19   : > { %p315_p2 = scmp.lt.s32.totalorder %s3318_s20, 3  ;;  %s3320_s26 = smov [#allocation7]  }
  0x1a   : > { %s328_s27 = sshll.u32 %s3320_s26, 4  ;;  %s3842_s3 = sld [smem:[#allocation33_spill]]  ;;  %s329_s27 = int_to_ptr.vmem [resolvable:$true] %s328_s27 }
  0x1b   : > { %p3425_p3 = pnand %p2173_p0, %p315_p2  ;;  %s3321_s13 = smov [#allocation8]  }
  0x1c   : > { %s342_s14 = sshll.u32 %s3321_s13, 4  ;;  %s3825_s15 = smov 192   ;;  %s343_s14 = int_to_ptr.vmem [resolvable:$true] %s342_s14 }
  0x1d   : > { %s326_s23 = sshll.u32 %s3840_s2, 4  ;;  %p2775_p4 = pneg %p3425_p3  ;;  %s327_s23 = int_to_ptr.hbm [resolvable:$true] %s326_s23 }
  0x1e   : > { %s3826_s16 = smov 12   ;;  %s3324_s21 = smov 64  }
  0x1f   : > { %p3437_p6 = pnand %p2775_p4, %p59_p1  ;;  %s3325_s22 = smov 4  }
  0x20   : > { %s340_s30 = sshll.u32 %s3842_s3, 4  ;;  %s3844_s5 = sld [smem:[#allocation35_spill]]  ;;  %s341_s30 = int_to_ptr.hbm [resolvable:$true] %s340_s30 }
  0x21   : > { %2778 = dma.hbm_to_vmem [thread:$0]  (!%p3437_p6), %s327_s23, 3072, %s329_s27, [#allocation6], %s3825_s15, %s3825_s15, %s3826_s16  }
  0x22   : > { %2781 = dma.hbm_to_vmem [thread:$0]  (!%p3437_p6), %s341_s30, 1024, %s343_s14, [#allocation9], %s3324_s21, %s3324_s21, %s3325_s22  }
  0x23   : > { %s3326_s13 = smov [#allocation11]   ;;  %s3845_s7 = sld [smem:[#allocation37_spill]] }
  0x24   : > { %s370_s2 = sshll.u32 %s3326_s13, 4  ;;  %s3827_s27 = smov 128   ;;  %s371_s2 = int_to_ptr.vmem [resolvable:$true] %s370_s2 }
  0x25   : > { %s3829_s15 = smov 8   ;;  %s3329_s30 = smov [#allocation14]  }
  0x26   : > { %s368_s29 = sshll.u32 %s3844_s5, 4  ;;  %s398_s14 = sshll.u32 %s3329_s30, 4  ;;  %s369_s29 = int_to_ptr.hbm [resolvable:$true] %s368_s29  ;;  %s399_s14 = int_to_ptr.vmem [resolvable:$true] %s398_s14 }
  0x27   : > { %2787 = dma.hbm_to_vmem [thread:$0]  (!%p3437_p6), %s369_s29, 2048, %s371_s2, [#allocation12], %s3827_s27, %s3827_s27, %s3829_s15  }
  0x28   : > { %s3846_s4 = sld [smem:[#allocation34_spill]]  ;;  %s3330_s2 = smov [#allocation10]  }
  0x29   : > { %s396_s23 = sshll.u32 %s3845_s7, 4  ;;  %s3847_s6 = sld [smem:[#allocation36_spill]]  ;;  %s397_s23 = int_to_ptr.hbm [resolvable:$true] %s396_s23 }
  0x2a   : > { %2793 = dma.hbm_to_vmem [thread:$0]  (!%p3437_p6), %s397_s23, 1024, %s399_s14, [#allocation15], %s3324_s21, %s3324_s21, %s3325_s22  }
  0x2b   : > { %s356_s29 = sshll.u32 %s3330_s2, 4  ;;  %s3331_s30 = smov [#allocation13]   ;;  %s357_s29 = int_to_ptr.vmem [resolvable:$true] %s356_s29 }
  0x2c   : > { %s384_s26 = sshll.u32 %s3331_s30, 4  ;;  %s3848_s8 = sld [smem:[#allocation38_spill]]  ;;  %s385_s26 = int_to_ptr.vmem [resolvable:$true] %s384_s26 }
  0x2d   : > { %s3849_s9 = sld [smem:[#allocation39_spill]]  ;;  %s3332_s2 = smov [#allocation16]  }
  0x2e   : > { %s354_s13 = sshll.u32 %s3846_s4, 4  ;;  %s3851_s28 = smov 192   ;;  %s355_s13 = int_to_ptr.hbm [resolvable:$true] %s354_s13 }
  0x2f   : > { %s382_s16 = sshll.u32 %s3847_s6, 4  ;;  %s2172_s23 = sadd.s32 4294967294, %s3318_s20   ;;  %s383_s16 = int_to_ptr.hbm [resolvable:$true] %s382_s16 }
  0x30   : > { %2784 = dma.hbm_to_vmem [thread:$0]  (!%p3437_p6), %s355_s13, 1024, %s357_s29, [#allocation9], %s3324_s21, %s3324_s21, %s3325_s22  }
  0x31   : > { %2790 = dma.hbm_to_vmem [thread:$0]  (!%p3437_p6), %s383_s16, 1024, %s385_s26, [#allocation12], %s3324_s21, %s3324_s21, %s3325_s22  }
  0x32   : > { %s410_s14 = sshll.u32 %s3848_s8, 4  ;;  %s412_s29 = sshll.u32 %s3332_s2, 4  ;;  %s411_s14 = int_to_ptr.hbm [resolvable:$true] %s410_s14  ;;  %s413_s29 = int_to_ptr.vmem [resolvable:$true] %s412_s29 }
  0x33   : > { %s424_s11 = sshll.u32 %s3849_s9, 4  ;;  %s3333_s16 = smov [#allocation17]   ;;  %s425_s11 = int_to_ptr.hbm [resolvable:$true] %s424_s11 }
  0x34   : > { %2796 = dma.hbm_to_vmem [thread:$0]  (!%p3437_p6), %s411_s14, 1024, %s413_s29, [#allocation15], %s3324_s21, %s3324_s21, %s3325_s22  }
  0x35   : > { %s426_s30 = sshll.u32 %s3333_s16, 4  ;;  %s3850_s26 = smov 12   ;;  %s427_s30 = int_to_ptr.vmem [resolvable:$true] %s426_s30 }
  0x36   : > { %2799 = dma.hbm_to_vmem [thread:$0]  (!%p3437_p6), %s425_s11, 3072, %s427_s30, [#allocation18], %s3851_s28, %s3851_s28, %s3850_s26  }
  0x37   : > { %s3501_s3 = sadd.s32 1, %s3318_s20   ;;  %s45_s2 = sadd.s32 1, %s3314_s19 }
  0x38   : > { %s42_s13 = ssub.s32 %s3318_s20, %s3501_s3  ;;  %p52_p8 = scmp.ne.s32.totalorder %s3314_s19, %s3310_s18 }
  0x39   : > { %p43_p7 = scmp.eq.s32.totalorder %s42_s13, 0  ;;  %p53_p9 = scmp.eq.s32.totalorder %s3318_s20, 0 }
  0x3a   : > { %p58_p10 = scmp.ne.s32.totalorder %s3310_s18, %s3306_s17  ;;  %p276_p13 = scmp.eq.s32.totalorder %s3420_s24, 1 }
  0x3b   : > { %s3512_s21 = scalar_select %p43_p7, %s3314_s19, %s45_s2  }
  0x3c   : > { %p3514_p11 = por %p53_p9, %p52_p8  ;;  %p3520_p12 = por %p59_p1, %p58_p10 }
  0x3d   : > { %3852 = sst [smem:[#allocation31_spill]] %s3512_s21  ;;  %p282_p0 = scmp.eq.s32.totalorder %s2172_s23, 1 }
  0x3e   : > { %p2822_p2 = scmp.lt.s32.totalorder %s3318_s20, 2  ;;  %s3527_s14 = sand.u32 1, %s3314_s19  }
  0x3f   : > { %p3529_p4 = por %p276_p13, %p52_p8  ;;  %p3533_p6 = por %p282_p0, %p58_p10 }
  0x40   : > { %s2183_s16 = sshll.u32 %s3527_s14, 4  ;;  %s2625_s30 = sshll.u32 %s3318_s20, 4 }
  0x41   : > { %s449_s23 = scalar_lea.hbm %s3812_s0, %s2625_s30  ;;  %s444_s13 = scalar_lea.vmem [#allocation2], %s2183_s16 }
  0x42   : > { %s452_s2 = sshll.u32 %s444_s13, 4  ;;  %s450_s27 = sshll.u32 %s449_s23, 4  ;;  %s453_s2 = int_to_ptr.vmem [resolvable:$true] %s452_s2  ;;  %s451_s27 = int_to_ptr.hbm [resolvable:$true] %s450_s27 }
  0x43   : > { %p3544_p7 = pnand %p2822_p2, %p3514_p11  ;;  %s2732_s4 = smul.u32 24, %s3527_s14 }
  0x44   : > { %s462_s5 = sand.u32 1, %s3318_s20   ;;  %s441_s6 = scalar_lea.sflag [#allocation3], %s3527_s14 }
  0x45   : > { %s3136_s7 = sshra.s32 %s451_s27, 4  ;;  %p3140_p9 = pneg %p3544_p7  ;;  %s3137_s7 = int_to_ptr.hbm [resolvable:$true] %s3136_s7 }
  0x46   : > { %s3138_s8 = scalar_lea.hbm %s3137_s7, 16  ;;  %s3143_s30 = scalar_lea.hbm %s3812_s0, 32 }
  0x47   : > { %p3139_p8 = scmp.ne.s32.totalorder %s3137_s7, %s3138_s8  ;;  %p3144_p11 = scmp.lt.s32.totalorder %s3137_s7, %s3812_s0 }
  0x48   : > { %p3145_p0 = scmp.lt.s32.totalorder %s3143_s30, %s3138_s8 }
  0x49   : > { %p3141_p10 = pnand %p3140_p9, %p3139_p8 }
  0x4a   : > { %p3146_p2 = por %p3145_p0, %p3144_p11 }
  0x4b   : > { %p3142_p13 = pneg %p3141_p10 }
  0x4d   : > { %p3147_p5 = pnand %p3146_p2, %p3142_p13 }
  0x4f   : > { %3150 = shalt.err (!%p3147_p5)
}
  0x50   : > { %s3858_s14 = smov 8   ;;  %s3859_s23 = smov 128  }
  0x51   : > { %2803 = dma.hbm_to_vmem [thread:$0]  (!%p3544_p7), %s451_s27, 256, %s453_s2, %s441_s6, %s3859_s23, %s3859_s23, %s3858_s14  }
  0x52   : > { %s2733_s13 = smul.u32 24, %s3318_s20  ;;  %s466_s9 = scalar_lea.vmem [#allocation5], %s2732_s4 }
  0x53   : > { %s474_s12 = sshll.u32 %s466_s9, 4  ;;  %s463_s8 = scalar_lea.sflag [#allocation6], %s462_s5  ;;  %s475_s12 = int_to_ptr.vmem [resolvable:$true] %s474_s12 }
  0x54   : > { %s471_s26 = scalar_lea.hbm %s3813_s1, %s2733_s13  ;;  %s3173_s4 = scalar_lea.hbm %s3813_s1, 48 }
  0x55   : > { %s472_s7 = sshll.u32 %s471_s26, 4  ;;  %s473_s7 = int_to_ptr.hbm [resolvable:$true] %s472_s7 }
  0x56   : > { %s3166_s30 = sshra.s32 %s473_s7, 4  ;;  %s3167_s30 = int_to_ptr.hbm [resolvable:$true] %s3166_s30 }
  0x57   : > { %s3168_s28 = scalar_lea.hbm %s3167_s30, 24  ;;  %p3174_p13 = scmp.lt.s32.totalorder %s3167_s30, %s3813_s1 }
  0x58   : > { %p3169_p5 = scmp.ne.s32.totalorder %s3167_s30, %s3168_s28  ;;  %p3175_p11 = scmp.lt.s32.totalorder %s3173_s4, %s3168_s28 }
  0x5a   : > { %p3171_p8 = pnand %p3169_p5, %p3140_p9  ;;  %p3176_p0 = por %p3175_p11, %p3174_p13 }
  0x5c   : > { %p3172_p10 = pneg %p3171_p8 }
  0x5e   : > { %p3177_p2 = pnand %p3176_p0, %p3172_p10 }
  0x60   : > { %3180 = shalt.err (!%p3177_p2)
}
  0x61   : > { %2806 = dma.hbm_to_vmem [thread:$0]  (!%p3544_p7), %s473_s7, 384, %s475_s12, %s463_s8, %s3859_s23, %s3859_s23, %s3858_s14  }
  0x62   : > { %486 = sbr.rel (%p3425_p3) target bundleno = 2290 (0x8f2), region = 60  ;;  %s3588_s5 = sand.u32 (!%p3425_p3), 1, %s3310_s18  }
  0x63   : > { %s3591_s21 = sshll.u32 (!%p3425_p3), %s3588_s5, 4  ;;  %s489_s13 = scalar_lea.sflag (!%p3425_p3), [#allocation3], %s3588_s5 }
  0x64   : > { %s492_s16 = scalar_lea.vmem (!%p3425_p3), [#allocation2], %s3591_s21 }
  0x67   : > { %3269 = dma.done.wait (%p3520_p12), %s489_s13, 256  }
  0x68   : > { %3271 = vsyncadd (%p3520_p12), %s489_s13, 4294967040  ;;  %s498_s25 = sand.u32 1, %s3420_s24   ;;  %s2734_s15 = smul.u32 24, %s3588_s5 }
  0x69   : > { %s499_s14 = scalar_lea.sflag [#allocation6], %s498_s25 }
  0x6a   : > { %s3601_s23 = scalar_lea.vmem [#allocation5], %s2734_s15 }
  0x6b   : > { %3273 = dma.done.wait (%p3520_p12), %s499_s14, 384  }
  0x6c   : > { %3275 = vsyncadd (%p3520_p12), %s499_s14, 4294966912 }
  0x6d   : > { %3277 = dma.done.wait (%p59_p1), [#allocation6], 3072  }
  0x6e   : > { %3279 = vsyncadd (%p59_p1), [#allocation6], 4294964224 }
  0x6f   : > { %3281 = dma.done.wait (%p59_p1), [#allocation9], 2048  }
  0x70   : > { %3283 = vsyncadd (%p59_p1), [#allocation9], 4294965248 }
  0x71   : > { %3285 = dma.done.wait (%p59_p1), [#allocation12], 3072  }
  0x72   : > { %3287 = vsyncadd (%p59_p1), [#allocation12], 4294964224 }
  0x73   : > { %3289 = dma.done.wait (%p59_p1), [#allocation15], 2048  }
  0x74   : > { %3291 = vsyncadd (%p59_p1), [#allocation15], 4294965248 }
  0x75   : > { %3293 = dma.done.wait (%p59_p1), [#allocation18], 3072  }
  0x76   : > { %3295 = vsyncadd (%p59_p1), [#allocation18], 4294964224  ;;  %v2285_v0 = vld [vmem:[#allocation7 + $0xa8] sm:$0xf]  ;;  %v2648_v1 = vld [vmem:[#allocation7 + $0xb0] sm:$0xf0] }
  0x77   : > { %v2647_v2 = vld [vmem:[#allocation7 + $0xac] sm:$0xf]  ;;  %v2286_v3 = vor.u32 %v2648_v1, %v2285_v0  ;;  %v2287_v4 = vld [vmem:[#allocation7 + $0xb4] sm:$0xf0]  ;;  %v2273_v5 = vld [vmem:[#allocation7 + $0x90] sm:$0xf] }
  0x78   : > { %v2645_v6 = vld [vmem:[#allocation7 + $0x98] sm:$0xf0]  ;;  %v2290_v7 = vor.u32 %v2647_v2, %v2287_v4  ;;  %v2644_v8 = vld [vmem:[#allocation7 + $0x94] sm:$0xf]  ;;  %v2275_v9 = vld [vmem:[#allocation7 + $0x9c] sm:$0xf0] }
  0x79   : > { %762 = vmatpush.bf16.msra.mxu0 %v2286_v3  ;;  %v2274_v10 = vor.u32 %v2645_v6, %v2273_v5  ;;  %v2278_v11 = vor.u32 %v2644_v8, %v2275_v9  ;;  %v2261_v12 = vld [vmem:[#allocation7 + $0x78] sm:$0xf]  ;;  %v2642_v13 = vld [vmem:[#allocation7 + $0x80] sm:$0xf0]  ;;  %v2641_v14 = vld [vmem:[#allocation7 + $0x7c] sm:$0xf] }
  0x7a   : > { %776 = vmatpush.bf16.msra.mxu1 %v2290_v7  ;;  %v2263_v15 = vld [vmem:[#allocation7 + $0x84] sm:$0xf0]  ;;  %v2262_v16 = vor.u32 %v2642_v13, %v2261_v12  ;;  %v2249_v18 = vld [vmem:[#allocation7 + $0x60] sm:$0xf]  ;;  %v2639_v19 = vld [vmem:[#allocation7 + $0x68] sm:$0xf0] }
  0x7b   : > { %v2266_v17 = vor.u32 %v2641_v14, %v2263_v15  ;;  %v2638_v20 = vld [vmem:[#allocation7 + $0x64] sm:$0xf]  ;;  %v2251_v21 = vld [vmem:[#allocation7 + $0x6c] sm:$0xf0]  ;;  %v2250_v22 = vor.u32 %v2639_v19, %v2249_v18  ;;  %v2237_v24 = vld [vmem:[#allocation7 + $0x48] sm:$0xf] }
  0x7c   : > { %v2254_v23 = vor.u32 %v2638_v20, %v2251_v21  ;;  %v2636_v25 = vld [vmem:[#allocation7 + $0x50] sm:$0xf0]  ;;  %v2635_v26 = vld [vmem:[#allocation7 + $0x4c] sm:$0xf]  ;;  %v2239_v27 = vld [vmem:[#allocation7 + $0x54] sm:$0xf0] }
  0x7d   : > { %763 = vmatpush.bf16.msra.mxu0 %v2274_v10  ;;  %v2238_v28 = vor.u32 %v2636_v25, %v2237_v24  ;;  %v2242_v29 = vor.u32 %v2635_v26, %v2239_v27  ;;  %v2225_v30 = vld [vmem:[#allocation7 + $0x30] sm:$0xf]  ;;  %v2633_v31 = vld [vmem:[#allocation7 + $0x38] sm:$0xf0]  ;;  %v2632_v32 = vld [vmem:[#allocation7 + $0x34] sm:$0xf] }
  0x7e   : > { %777 = vmatpush.bf16.msra.mxu1 %v2278_v11  ;;  %v2227_v33 = vld [vmem:[#allocation7 + $0x3c] sm:$0xf0]  ;;  %v2226_v34 = vor.u32 %v2633_v31, %v2225_v30  ;;  %v2213_v36 = vld [vmem:[#allocation7 + $0x18] sm:$0xf]  ;;  %v2630_v37 = vld [vmem:[#allocation7 + $0x20] sm:$0xf0] }
  0x7f   : > { %v2230_v35 = vor.u32 %v2632_v32, %v2227_v33  ;;  %v2629_v38 = vld [vmem:[#allocation7 + $0x1c] sm:$0xf]  ;;  %v2215_v39 = vld [vmem:[#allocation7 + $0x24] sm:$0xf0]  ;;  %v2214_v40 = vor.u32 %v2630_v37, %v2213_v36  ;;  %v2201_v42 = vld [vmem:[#allocation7] sm:$0xf] }
  0x80   : > { %v2218_v41 = vor.u32 %v2629_v38, %v2215_v39  ;;  %v2627_v43 = vld [vmem:[#allocation7 + $0x8] sm:$0xf0]  ;;  %v2626_v44 = vld [vmem:[#allocation7 + $0x4] sm:$0xf]  ;;  %v2203_v45 = vld [vmem:[#allocation7 + $0xc] sm:$0xf0] }
  0x81   : > { %764 = vmatpush.bf16.msra.mxu0 %v2262_v16  ;;  %v2202_v46 = vor.u32 %v2627_v43, %v2201_v42  ;;  %v3629_v47 = vld [vmem:[%s492_s16] sm:$0xff]  ;;  %v3633_v48 = vld [vmem:[%s492_s16 + $0x8] sm:$0xff]  ;;  %v2206_v49 = vor.u32 %v2626_v44, %v2203_v45  ;;  %vm836_vm0 = vcmask 130048   ;;  %vm978_vm1 = vcmask 1046528   ;;  %s584_s22 = scalar_lea.vmem [#allocation19], %s3591_s21  ;;  %s2730_s12 = sshll.u32 %s3420_s24, 4 }
  0x82   : > { %778 = vmatpush.bf16.msra.mxu1 %v2266_v17  ;;  %v633_v50 = vpack.c.bf16 %v3633_v48, %v3629_v47  ;;  %v2293_v1 = vld [vmem:[#allocation7 + $0xb0] sm:$0xf]  ;;  %v2649_v2 = vld [vmem:[#allocation7 + $0xb8] sm:$0xf0]  ;;  %v2281_v3 = vld [vmem:[#allocation7 + $0x98] sm:$0xf]  ;;  %s1946_s8 = scalar_lea.hbm %s3822_s10, %s2730_s12 }
  0x83   : > { %v2294_v4 = vor.u32 %v2649_v2, %v2293_v1  ;;  %v2646_v5 = vld [vmem:[#allocation7 + $0xa0] sm:$0xf0]  ;;  %v2269_v7 = vld [vmem:[#allocation7 + $0x80] sm:$0xf]  ;;  %v2643_v8 = vld [vmem:[#allocation7 + $0x88] sm:$0xf0] }
  0x84   : > { %v2282_v6 = vor.u32 %v2646_v5, %v2281_v3  ;;  %v2270_v9 = vor.u32 %v2643_v8, %v2269_v7  ;;  %v2257_v10 = vld [vmem:[#allocation7 + $0x68] sm:$0xf]  ;;  %v2640_v11 = vld [vmem:[#allocation7 + $0x70] sm:$0xf0]  ;;  %v2245_v13 = vld [vmem:[#allocation7 + $0x50] sm:$0xf] }
  0x85   : > { %765 = vmatpush.bf16.msra.mxu0 %v2250_v22  ;;  %790 = vmatpush.bf16.msra.mxu2 %v2294_v4  ;;  %v2258_v12 = vor.u32 %v2640_v11, %v2257_v10  ;;  %v2637_v14 = vld [vmem:[#allocation7 + $0x58] sm:$0xf0]  ;;  %v2233_v16 = vld [vmem:[#allocation7 + $0x38] sm:$0xf]  ;;  %v2634_v17 = vld [vmem:[#allocation7 + $0x40] sm:$0xf0] }
  0x86   : > { %779 = vmatpush.bf16.msra.mxu1 %v2254_v23  ;;  %v2246_v15 = vor.u32 %v2637_v14, %v2245_v13  ;;  %v2234_v18 = vor.u32 %v2634_v17, %v2233_v16  ;;  %v2221_v20 = vld [vmem:[#allocation7 + $0x20] sm:$0xf]  ;;  %v2631_v21 = vld [vmem:[#allocation7 + $0x28] sm:$0xf0]  ;;  %v2209_v25 = vld [vmem:[#allocation7 + $0x8] sm:$0xf] }
  0x87   : > { %v2222_v24 = vor.u32 %v2631_v21, %v2221_v20  ;;  %v2628_v26 = vld [vmem:[#allocation7 + $0x10] sm:$0xf0]  ;;  %v2651_v3 = vld [vmem:[#allocation8 + $0x8] sm:$0xff]  ;;  %v2650_v4 = vld [vmem:[#allocation8] sm:$0xff]  ;;  %vm992_vm2 = vcmask 1040384   ;;  %vm1006_vm5 = vcmask 1045504  }
  0x88   : > { %v2210_v27 = vor.u32 %v2628_v26, %v2209_v25  ;;  %v2652_v2 = vld [vmem:[#allocation8 + $0x10] sm:$0xff]  ;;  %v2410_v7 = vld [vmem:[#allocation11 + $0x60] sm:$0xf]  ;;  %v2671_v21 = vld [vmem:[#allocation11 + $0x24] sm:$0xf0]  ;;  %vm1020_vm6 = vcmask 1041408  }
  0x89   : > { %766 = vmatpush.bf16.msra.mxu0 %v2238_v28  ;;  %791 = vmatpush.bf16.msra.mxu2 %v2282_v6  ;;  %v2418_v5 = vld [vmem:[#allocation11 + $0x70] sm:$0xf]  ;;  %v2681_v6 = vld [vmem:[#allocation11 + $0x74] sm:$0xf0]  ;;  %v2394_v14 = vld [vmem:[#allocation11 + $0x40] sm:$0xf] }
  0x8a   : > { %780 = vmatpush.bf16.msra.mxu1 %v2242_v29  ;;  %v2419_v8 = vor.u32 %v2681_v6, %v2418_v5  ;;  %v2402_v11 = vld [vmem:[#allocation11 + $0x50] sm:$0xf]  ;;  %v2378_v20 = vld [vmem:[#allocation11 + $0x20] sm:$0xf]  ;;  %v2669_v25 = vld [vmem:[#allocation11 + $0x14] sm:$0xf0] }
  0x8b   : > { %v2386_v17 = vld [vmem:[#allocation11 + $0x30] sm:$0xf]  ;;  %vm1286_vm9 = vcmask 195584   ;;  %vm1331_vm10 = vcmask 1043456   ;;  %s1947_s30 = sshll.u32 %s584_s22, 4  ;;  %s1949_s28 = sshll.u32 %s1946_s8, 4  ;;  %s1948_s30 = int_to_ptr.vmem [resolvable:$true] %s1947_s30  ;;  %s1950_s28 = int_to_ptr.hbm [resolvable:$true] %s1949_s28 }
  0x8c   : > { %s1930_s6 = scalar_lea.sflag [#allocation4], %s3588_s5  ;;  %s3210_s27 = sshra.s32 %s1950_s28, 4  ;;  %s3211_s27 = int_to_ptr.hbm [resolvable:$true] %s3210_s27 }
  0x8d   : > { %767 = vmatpush.bf16.msra.mxu0 %v2226_v34  ;;  %792 = vmatpush.bf16.msra.mxu2 %v2270_v9  ;;  %v2679_v9 = vld [vmem:[#allocation11 + $0x64] sm:$0xf0]  ;;  %s3212_s4 = scalar_lea.hbm %s3211_s27, 16  ;;  %s3216_s13 = scalar_lea.hbm %s3822_s10, 32 }
  0x8e   : > { %781 = vmatpush.bf16.msra.mxu1 %v2230_v35  ;;  %v2411_v10 = vor.u32 %v2679_v9, %v2410_v7  ;;  %p3213_p1 = scmp.ne.s32.totalorder %s3211_s27, %s3212_s4  ;;  %p3217_p7 = scmp.lt.s32.totalorder %s3211_s27, %s3822_s10 }
  0x8f   : > { %p3218_p9 = scmp.lt.s32.totalorder %s3216_s13, %s3212_s4 }
  0x90   : > { %p3214_p3 = pnand %p3213_p1, %p3529_p4 }
  0x91   : > { %768 = vmatpush.bf16.msra.mxu0 %v2214_v40  ;;  %793 = vmatpush.bf16.msra.mxu2 %v2258_v12  ;;  %v2677_v12 = vld [vmem:[#allocation11 + $0x54] sm:$0xf0]  ;;  %p3219_p5 = por %p3218_p9, %p3217_p7 }
  0x92   : > { %782 = vmatpush.bf16.msra.mxu1 %v2218_v41  ;;  %v2403_v13 = vor.u32 %v2677_v12, %v2402_v11  ;;  %p3215_p12 = pneg %p3214_p3 }
  0x94   : > { %p3220_p8 = pnand %p3219_p5, %p3215_p12 }
  0x95   : > { %769 = vmatpush.bf16.msra.mxu0 %v2202_v46  ;;  %794 = vmatpush.bf16.msra.mxu2 %v2246_v15  ;;  %v2675_v15 = vld [vmem:[#allocation11 + $0x44] sm:$0xf0] }
  0x96   : > { %783 = vmatpush.bf16.msra.mxu1 %v2206_v49  ;;  %v2395_v16 = vor.u32 %v2675_v15, %v2394_v14 }
  0x98   : > { %770 = vmatmul.bf16.vlgmr.msra.gmra.mxu0 %v633_v50 }
  0x99   : > { %784 = vmatmul.bf16.vlgmr.msra.gmra.mxu1 %v633_v50  ;;  %795 = vmatpush.bf16.msra.mxu2 %v2234_v18  ;;  %v2673_v18 = vld [vmem:[#allocation11 + $0x34] sm:$0xf0] }
  0x9a   : > { %1213 = vmatpush.bf16.msrb.mxu1 %v2419_v8 }
  0x9d   : > { %796 = vmatpush.bf16.msra.mxu2 %v2222_v24  ;;  %v2370_v24 = vld [vmem:[#allocation11 + $0x10] sm:$0xf] }
  0x9e   : > { %1214 = vmatpush.bf16.msrb.mxu1 %v2411_v10 }
  0xa1   : > { %797 = vmatpush.bf16.msra.mxu2 %v2210_v27  ;;  %v2371_v27 = vor.u32 %v2669_v25, %v2370_v24 }
  0xa2   : > { %1215 = vmatpush.bf16.msrb.mxu1 %v2403_v13 }
  0xa4   : > { %798 = vmatmul.bf16.vlgmr.msra.gmra.mxu2 %v633_v50  ;;  %v2657_v50 = vld [vmem:[#allocation8 + $0x38] sm:$0xff] }
  0xa6   : > { %1216 = vmatpush.bf16.msrb.mxu1 %v2395_v16 }
 0x115   : > { %v771_v51 = vpop.f32.mrf.mxu0 }
 0x116   : > { %v785_v52 = vpop.f32.mrf.mxu1  ;;  %v804_v59 = vpack.c.bf16 %v771_v51, %v771_v51  ;;  %v2656_v51 = vld [vmem:[#allocation8 + $0x30] sm:$0xff] }
 0x117   : > { %v806_v53 = vpack.c.bf16 %v785_v52, %v785_v52  ;;  %v2655_v52 = vld [vmem:[#allocation8 + $0x28] sm:$0xff] }
 0x118   : > { %v810_v62 = vunpack.c.l.b16 %v804_v59 }
 0x119   : > { %v816_v57 = vunpack.c.l.b16 %v806_v53 }
 0x11d   : > { %v773_v55 = vpop.f32.mrf.mxu0 }
 0x11e   : > { %v787_v54 = vpop.f32.mrf.mxu1  ;;  %v805_v60 = vpack.c.bf16 %v773_v55, %v773_v55  ;;  %v2653_v55 = vld [vmem:[#allocation8 + $0x18] sm:$0xff] }
 0x11f   : > { %v807_v56 = vpack.c.bf16 %v787_v54, %v787_v54  ;;  %v2654_v54 = vld [vmem:[#allocation8 + $0x20] sm:$0xff] }
 0x120   : > { %v811_v63 = vunpack.c.l.b16 %v805_v60 }
 0x121   : > { %v817_v58 = vunpack.c.l.b16 %v807_v56 }
 0x122   : > { %v812_v0 = vpack.c.b16 %v811_v63, %v810_v62 }
 0x123   : > { %v818_v61 = vpack.c.b16 %v817_v58, %v816_v57 }
 0x125   : > { %827 = vmatpush.bf16.xpose.msra.mxu3 %v818_v61 }
 0x127   : > { %v799_v41 = vpop.f32.mrf.mxu2 }
 0x128   : > { %v861_v42 = vpack.c.bf16 %v799_v41, %v799_v41  ;;  %v2661_v41 = vld [vmem:[#allocation10 + $0x18] sm:$0xff] }
 0x12a   : > { %v870_v44 = vunpack.c.l.b16 %v861_v42  ;;  %v2660_v42 = vld [vmem:[#allocation10 + $0x10] sm:$0xff] }
 0x12c   : > { %828 = vmatmul.bf16.vlgmr.msra.gmra.mxu3 %v812_v0 }
 0x12f   : > { %v801_v43 = vpop.f32.mrf.mxu2 }
 0x130   : > { %v862_v45 = vpack.c.bf16 %v801_v43, %v801_v43  ;;  %v2659_v43 = vld [vmem:[#allocation10 + $0x8] sm:$0xff] }
 0x132   : > { %v871_v46 = vunpack.c.l.b16 %v862_v45 }
 0x134   : > { %v872_v49 = vpack.c.b16 %v871_v46, %v870_v44  ;;  %v2658_v44 = vld [vmem:[#allocation10] sm:$0xff]  ;;  %v598_v46 = vlaneseq }
 0x136   : > { %884 = vmatpush.bf16.msrb.mxu3 %v872_v49 }
 0x13a   : > { %956 = vmatpush.bf16.msra.mxu3 %v2657_v50  ;;  %v3651_v50 = vshrl.u32 %v598_v46, 7  ;;  %v2678_v46 = vld [vmem:[#allocation11 + $0x64] sm:$0xf] }
 0x13c   : > { %vm988_vm4 = vcmp.lt.s32.totalorder %v3651_v50, 1  ;;  %vm1016_vm8 = vcmp.lt.s32.totalorder %v3651_v50, 2 }
 0x13e   : > { %957 = vmatpush.bf16.msra.mxu3 %v2656_v51 }
 0x142   : > { %958 = vmatpush.bf16.msra.mxu3 %v2655_v52 }
 0x146   : > { %959 = vmatpush.bf16.msra.mxu3 %v2654_v54 }
 0x14a   : > { %960 = vmatpush.bf16.msra.mxu3 %v2653_v55 }
 0x14e   : > { %961 = vmatpush.bf16.msra.mxu3 %v2652_v2 }
 0x152   : > { %962 = vmatpush.bf16.msra.mxu3 %v2651_v3 }
 0x156   : > { %963 = vmatpush.bf16.msra.mxu3 %v2650_v4 }
 0x1af   : > { %v829_v19 = vpop.f32.mrf.mxu3 }
 0x1b0   : > { %v834_v22 = vmul.f32 0.17677669, %v829_v19  ;;  %v2387_v19 = vor.u32 %v2673_v18, %v2386_v17 }
 0x1b2   : > { %v837_v23 = vsel %vm836_vm0, %v834_v22, -inf  ;;  %1217 = vmatpush.bf16.msrb.mxu1 %v2387_v19 }
 0x1b3   : > { %838 = vmax.xlane.f32.xlu0 %v837_v23  ;;  %v2379_v23 = vor.u32 %v2671_v21, %v2378_v20 }
 0x1b6   : > { %1218 = vmatpush.bf16.msrb.mxu1 %v2379_v23 }
 0x1b7   : > { %v831_v28 = vpop.f32.mrf.mxu3 }
 0x1b8   : > { %v835_v29 = vmul.f32 0.17677669, %v831_v28  ;;  %v2362_v28 = vld [vmem:[#allocation11] sm:$0xf] }
 0x1ba   : > { %v840_v30 = vsel %vm836_vm0, %v835_v29, -inf  ;;  %1219 = vmatpush.bf16.msrb.mxu1 %v2371_v27 }
 0x1bb   : > { %841 = vmax.xlane.f32.xlu0 %v840_v30 }
 0x226   : > { %v839_v31 = vpop.xlane.xlu0 %838 }
 0x227   : > { %v843_v32 = vsub.f32 %v834_v22, %v839_v31  ;;  %v2665_v22 = vld [vmem:[#allocation10 + $0x38] sm:$0xff]  ;;  %v595_v31 = vld [vmem:[%s3601_s23] sm:$0xff] }
 0x228   : > { %1101 = vmatpush.bf16.msrb.mxu0 %v2665_v22 }
 0x229   : > { %v845_v33 = vmul.f32 1.442695, %v843_v32  ;;  %v596_v32 = vld [vmem:[%s3601_s23 + $0x8] sm:$0xff] }
 0x22b   : > { %2880 = vpow2.f32 %v845_v33 }
 0x22e   : > { %v842_v34 = vpop.xlane.xlu0 %841 }
 0x22f   : > { %v844_v35 = vsub.f32 %v835_v29, %v842_v34  ;;  %v2667_v29 = vld [vmem:[#allocation11 + $0x4] sm:$0xf0] }
 0x230   : > { %v2363_v30 = vor.u32 %v2667_v29, %v2362_v28 }
 0x231   : > { %v2881_v36 = vpop.eup %2880  ;;  %v847_v37 = vmul.f32 1.442695, %v844_v35  ;;  %v3644_v35 = vpack.c.bf16 %v596_v32, %v595_v31 }
 0x232   : > { %v849_v38 = vsel %vm836_vm0, %v2881_v36, 0.0  ;;  %1220 = vmatpush.bf16.msrb.mxu1 %v2363_v30 }
 0x233   : > { %2882 = vpow2.f32 %v847_v37  ;;  %850 = vadd.xlane.f32.xlu1 %v849_v38  ;;  %v2664_v38 = vld [vmem:[#allocation10 + $0x30] sm:$0xff] }
 0x234   : > { %1102 = vmatpush.bf16.msrb.mxu0 %v2664_v38 }
 0x235   : > { %1221 = vmatmul.bf16.vlgmr.msrb.gmra.mxu1 %v3644_v35 }
 0x239   : > { %v2883_v39 = vpop.eup %2882 }
 0x23a   : > { %v852_v40 = vsel %vm836_vm0, %v2883_v39, 0.0 }
 0x23b   : > { %853 = vadd.xlane.f32.xlu1 %v852_v40  ;;  %v2662_v40 = vld [vmem:[#allocation10 + $0x20] sm:$0xff] }
 0x2a6   : > { %v851_v53 = vpop.xlane.xlu1 %850 }
 0x2a7   : > { %2884 = vrcp.f32 %v851_v53  ;;  %v3655_v53 = vadd.s32 8, %v3651_v50 }
 0x2a9   : > { %vm975_vm3 = vcmp.ge.s32.totalorder %v3655_v53, 15  ;;  %vm1005_vm7 = vcmp.ge.s32.totalorder %v3655_v53, 14 }
 0x2ad   : > { %v2885_v57 = vpop.eup %2884 }
 0x2ae   : > { %v854_v56 = vpop.xlane.xlu1 %853  ;;  %v857_v58 = vmul.f32 %v2885_v57, %v2881_v36  ;;  %v597_v36 = vld [vmem:[%s3601_s23 + $0x10] sm:$0xff] }
 0x2af   : > { %2886 = vrcp.f32 %v854_v56  ;;  %v3648_v37 = vpack.c.bf16 %v597_v36, %v597_v36 }
 0x2b0   : > { %v859_v60 = vpack.c.bf16 %v857_v58, %v857_v58 }
 0x2b1   : > { %1226 = vmatmul.bf16.gmra.mxu1 %v3648_v37 }
 0x2b2   : > { %v865_v63 = vunpack.c.l.b16 %v859_v60  ;;  %v1222_v45 = vpop.f32.mrf.mxu1 }
 0x2b3   : > { %v1251_v15 = vpack.c.bf16 %v1222_v45, %v1222_v45  ;;  %v2420_v45 = vld [vmem:[#allocation11 + $0x78] sm:$0xf0] }
 0x2b5   : > { %v2887_v59 = vpop.eup %2886  ;;  %v1263_v28 = vunpack.c.l.b16 %v1251_v15 }
 0x2b6   : > { %v858_v61 = vmul.f32 %v2887_v59, %v2883_v39  ;;  %v2663_v39 = vld [vmem:[#allocation10 + $0x28] sm:$0xff] }
 0x2b7   : > { %1103 = vmatpush.bf16.msrb.mxu0 %v2663_v39 }
 0x2b8   : > { %v860_v62 = vpack.c.bf16 %v858_v61, %v858_v61 }
 0x2ba   : > { %v866_v0 = vunpack.c.l.b16 %v860_v62  ;;  %v1224_v51 = vpop.f32.mrf.mxu1 }
 0x2bb   : > { %1104 = vmatpush.bf16.msrb.mxu0 %v2662_v40  ;;  %v1252_v18 = vpack.c.bf16 %v1224_v51, %v1224_v51  ;;  %v2412_v51 = vld [vmem:[#allocation11 + $0x68] sm:$0xf0] }
 0x2bc   : > { %v867_v1 = vpack.c.b16 %v866_v0, %v865_v63 }
 0x2bd   : > { %v1264_v29 = vunpack.c.l.b16 %v1252_v18 }
 0x2be   : > { %2295 = vmatmul.msk.bf16.vlgmr.msrb.gmra.mxu3 %vm836_vm0, %v867_v1 }
 0x2bf   : > { %1105 = vmatpush.bf16.msrb.mxu0 %v2661_v41 }
 0x2c3   : > { %1106 = vmatpush.bf16.msrb.mxu0 %v2660_v42 }
 0x2c7   : > { %1107 = vmatpush.bf16.msrb.mxu0 %v2659_v43 }
 0x2cb   : > { %1108 = vmatpush.bf16.msrb.mxu0 %v2658_v44  ;;  %v2680_v44 = vld [vmem:[#allocation11 + $0x74] sm:$0xf] }
 0x32e   : > { %v1227_v2 = vpop.f32.mrf.mxu1 }
 0x32f   : > { %v1253_v12 = vpack.c.bf16 %v1227_v2, %v1227_v2  ;;  %v2372_v2 = vld [vmem:[#allocation11 + $0x18] sm:$0xf0] }
 0x331   : > { %v1265_v19 = vunpack.c.l.b16 %v1253_v12 }
 0x333   : > { %v1267_v24 = vpack.c.b16 %v1265_v19, %v1265_v19 }
 0x335   : > { %1276 = vmatpush.bf16.xpose.msrb.mxu3 %v1267_v24 }
 0x341   : > { %v886_v26 = vpop.f32.mrf.mxu3 }
 0x349   : > { %v888_v33 = vpop.f32.mrf.mxu3 }
 0x34a   : > { %v907_v34 = vpack.c.bf16 %v888_v33, %v886_v26  ;;  %v1229_v26 = vpop.f32.mrf.mxu1  ;;  %v1266_v33 = vpack.c.b16 %v1264_v29, %v1263_v28 }
 0x34c   : > { %964 = vmatmul.bf16.vlgmr.msra.gmra.mxu3 %v907_v34 }
 0x34d   : > { %1277 = vmatpush.bf16.xpose.msrb.mxu3 %v1266_v33 }
 0x3cf   : > { %v965_v49 = vpop.f32.mrf.mxu3 }
 0x3d0   : > { %v970_v52 = vadd.f32 %v965_v49, %v3629_v47  ;;  %v2423_v49 = vor.u32 %v2680_v44, %v2420_v45  ;;  %v2685_v44 = vld [vmem:[#allocation13 + $0x18] sm:$0xff] }
 0x3d2   : > { %v979_v56 = vrot.slane %v970_v52, 1  ;;  %v993_v57 = vrot.slane %v970_v52, 7  ;;  %v972_v62 = vperm.slane %v970_v52, 0  ;;  %v1007_v1 = vrot.slane %v970_v52, 2  ;;  %1231 = vmatpush.bf16.msrb.mxu2 %v2423_v49  ;;  %v2684_v49 = vld [vmem:[#allocation13 + $0x10] sm:$0xff] }
 0x3d3   : > { %v1021_v6 = vrot.slane %v970_v52, 6 }
 0x3d7   : > { %v967_v54 = vpop.f32.mrf.mxu3 }
 0x3d8   : > { %v971_v55 = vadd.f32 %v967_v54, %v3633_v48  ;;  %v2676_v54 = vld [vmem:[#allocation11 + $0x54] sm:$0xf] }
 0x3da   : > { %v973_v58 = vperm.slane %v971_v55, 7  ;;  %v980_v59 = vrot.slane %v971_v55, 1  ;;  %v990_v60 = vrot.slane %v971_v55, 7  ;;  %v1008_v61 = vrot.slane %v971_v55, 2 }
 0x3db   : > { %v1018_v47 = vrot.slane %v971_v55, 6 }
 0x3dc   : > { %v981_v63 = vsel %vm978_vm1, %v979_v56, %v980_v59  ;;  %v985_v48 = vsel %vm978_vm1, %v980_v59, %v979_v56  ;;  %v997_v0 = vsel %vm992_vm2, %v990_v60, %v993_v57  ;;  %v1013_v8 = vsel %vm1006_vm5, %v1008_v61, %v1007_v1 }
 0x3dd   : > { %v987_v3 = vsel %vm975_vm3, %v973_v58, %v985_v48  ;;  %v998_v4 = vsel %vm988_vm4, %v972_v62, %v997_v0  ;;  %v1000_v5 = vadd.f32 %v981_v63, %v970_v52  ;;  %v994_v9 = vsel %vm992_vm2, %v993_v57, %v990_v60  ;;  %v2674_v57 = vld [vmem:[#allocation11 + $0x44] sm:$0xf]  ;;  %v2672_v60 = vld [vmem:[#allocation11 + $0x34] sm:$0xf]  ;;  %v2380_v63 = vld [vmem:[#allocation11 + $0x28] sm:$0xf0] }
 0x3de   : > { %v1001_v7 = vadd.f32 %v987_v3, %v971_v55  ;;  %v1025_v11 = vsel %vm1020_vm6, %v1018_v47, %v1021_v6  ;;  %v1009_v14 = vsel %vm1006_vm5, %v1007_v1, %v1008_v61  ;;  %v1015_v16 = vsel %vm1005_vm7, %v973_v58, %v1013_v8  ;;  %v2396_v58 = vld [vmem:[#allocation11 + $0x48] sm:$0xf0]  ;;  %v2388_v61 = vld [vmem:[#allocation11 + $0x38] sm:$0xf0]  ;;  %v2668_v1 = vld [vmem:[#allocation11 + $0x14] sm:$0xf] }
 0x3df   : > { %v1002_v10 = vadd.f32 %v1000_v5, %v998_v4  ;;  %v1026_v20 = vsel %vm1016_vm8, %v972_v62, %v1025_v11  ;;  %v1022_v22 = vsel %vm1020_vm6, %v1021_v6, %v1018_v47  ;;  %v2399_v59 = vor.u32 %v2674_v57, %v2396_v58  ;;  %v2670_v47 = vld [vmem:[#allocation11 + $0x24] sm:$0xf] }
 0x3e0   : > { %v1003_v13 = vadd.f32 %v1001_v7, %v994_v9  ;;  %v2391_v62 = vor.u32 %v2672_v60, %v2388_v61  ;;  %v2383_v48 = vor.u32 %v2670_v47, %v2380_v63  ;;  %v2375_v5 = vor.u32 %v2668_v1, %v2372_v2  ;;  %v2666_v6 = vld [vmem:[#allocation11 + $0x4] sm:$0xf]  ;;  %v2364_v7 = vld [vmem:[#allocation11 + $0x8] sm:$0xf0] }
 0x3e1   : > { %v1028_v17 = vadd.f32 %v1009_v14, %v1002_v10  ;;  %v2367_v8 = vor.u32 %v2666_v6, %v2364_v7  ;;  %v2683_v60 = vld [vmem:[#allocation13 + $0x8] sm:$0xff]  ;;  %v2682_v61 = vld [vmem:[#allocation13] sm:$0xff]  ;;  %v2705_v7 = vld [vmem:[#allocation16 + $0x38] sm:$0xff] }
 0x3e2   : > { %v1029_v21 = vadd.f32 %v1015_v16, %v1003_v13  ;;  %v2695_v1 = vld [vmem:[#allocation14 + $0x28] sm:$0xff]  ;;  %v2694_v2 = vld [vmem:[#allocation14 + $0x20] sm:$0xff]  ;;  %1628 = vmatpush.bf16.msra.mxu3 %v2705_v7 }
 0x3e3   : > { %v1030_v23 = vadd.f32 %v1028_v17, %v1026_v20  ;;  %v2690_v6 = vld [vmem:[#allocation14] sm:$0xff] }
 0x3e4   : > { %v1031_v25 = vadd.f32 %v1029_v21, %v1022_v22 }
 0x3e5   : > { %v3678_v27 = vmul.f32 0.2, %v1030_v23 }
 0x3e6   : > { %v3680_v30 = vmul.f32 0.2, %v1031_v25 }
 0x3e7   : > { %v3683_v31 = vsub.f32 %v970_v52, %v3678_v27  ;;  %v2415_v52 = vor.u32 %v2678_v46, %v2412_v51 }
 0x3e8   : > { %v3686_v32 = vsub.f32 %v971_v55, %v3680_v30  ;;  %v2404_v55 = vld [vmem:[#allocation11 + $0x58] sm:$0xf0] }
 0x3e9   : > { %1232 = vmatpush.bf16.msrb.mxu2 %v2415_v52  ;;  %v2407_v56 = vor.u32 %v2676_v54, %v2404_v55 }
 0x3ea   : > { %v1052_v34 = vpack.c.bf16 %v3686_v32, %v3683_v31 }
 0x3ec   : > { %1109 = vmatmul.bf16.vlgmr.msrb.gmra.mxu0 %v1052_v34 }
 0x3ed   : > { %1233 = vmatpush.bf16.msrb.mxu2 %v2407_v56 }
 0x3f1   : > { %1234 = vmatpush.bf16.msrb.mxu2 %v2399_v59 }
 0x3f5   : > { %1235 = vmatpush.bf16.msrb.mxu2 %v2391_v62  ;;  %v2697_v62 = vld [vmem:[#allocation14 + $0x38] sm:$0xff] }
 0x3f9   : > { %1236 = vmatpush.bf16.msrb.mxu2 %v2383_v48 }
 0x3fd   : > { %1237 = vmatpush.bf16.msrb.mxu2 %v2375_v5  ;;  %v2691_v5 = vld [vmem:[#allocation14 + $0x8] sm:$0xff] }
 0x401   : > { %1238 = vmatpush.bf16.msrb.mxu2 %v2367_v8  ;;  %v2704_v8 = vld [vmem:[#allocation16 + $0x30] sm:$0xff] }
 0x402   : > { %1629 = vmatpush.bf16.msra.mxu3 %v2704_v8  ;;  %v2595_v8 = vld [vmem:[#allocation17 + $0x90] sm:$0xf] }
 0x404   : > { %1239 = vmatmul.bf16.vlgmr.msrb.gmra.mxu2 %v3644_v35 }
 0x405   : > { %1547 = vmatpush.bf16.msra.mxu2 %v2697_v62  ;;  %v2727_v62 = vld [vmem:[#allocation17 + $0xac] sm:$0xf] }
 0x414   : > { %1244 = vmatmul.bf16.gmra.mxu2 %v3648_v37 }
 0x469   : > { %v1110_v36 = vpop.f32.mrf.mxu0 }
 0x46a   : > { %v1249_v38 = vpack.c.bf16 %v1110_v36, %v1110_v36 }
 0x46c   : > { %v1256_v41 = vunpack.c.l.b16 %v1249_v38 }
 0x471   : > { %v1112_v39 = vpop.f32.mrf.mxu0 }
 0x472   : > { %v1250_v40 = vpack.c.bf16 %v1112_v39, %v1112_v39  ;;  %v2689_v39 = vld [vmem:[#allocation13 + $0x38] sm:$0xff] }
 0x473   : > { %1414 = vmatpush.bf16.msra.mxu1 %v2689_v39 }
 0x474   : > { %v1257_v42 = vunpack.c.l.b16 %v1250_v40  ;;  %v2688_v40 = vld [vmem:[#allocation13 + $0x30] sm:$0xff] }
 0x476   : > { %v1258_v43 = vpack.c.b16 %v1257_v42, %v1256_v41  ;;  %v2687_v41 = vld [vmem:[#allocation13 + $0x28] sm:$0xff] }
 0x477   : > { %1415 = vmatpush.bf16.msra.mxu1 %v2688_v40 }
 0x478   : > { %1278 = vmatmul.bf16.vlgmr.msrb.gmra.mxu3 %v1258_v43  ;;  %v2686_v43 = vld [vmem:[#allocation13 + $0x20] sm:$0xff] }
 0x47b   : > { %1416 = vmatpush.bf16.msra.mxu1 %v2687_v41 }
 0x47f   : > { %1417 = vmatpush.bf16.msra.mxu1 %v2686_v43 }
 0x483   : > { %1418 = vmatpush.bf16.msra.mxu1 %v2685_v44 }
 0x487   : > { %v1240_v22 = vpop.f32.mrf.mxu2  ;;  %1419 = vmatpush.bf16.msra.mxu1 %v2684_v49 }
 0x488   : > { %v1311_v23 = vpack.c.bf16 %v1240_v22, %v1240_v22 }
 0x48a   : > { %v1322_v28 = vunpack.c.l.b16 %v1311_v23 }
 0x48b   : > { %1420 = vmatpush.bf16.msra.mxu1 %v2683_v60  ;;  %v2607_v60 = vld [vmem:[#allocation17 + $0xa8] sm:$0xf] }
 0x48f   : > { %v1242_v35 = vpop.f32.mrf.mxu2  ;;  %1421 = vmatpush.bf16.msra.mxu1 %v2682_v61  ;;  %v2728_v61 = vld [vmem:[#allocation17 + $0xb0] sm:$0xf0] }
 0x490   : > { %v1312_v37 = vpack.c.bf16 %v1242_v35, %v1242_v35 }
 0x492   : > { %v1323_v29 = vunpack.c.l.b16 %v1312_v37 }
 0x494   : > { %v1325_v36 = vpack.c.b16 %v1323_v29, %v1322_v28 }
 0x497   : > { %v1245_v24 = vpop.f32.mrf.mxu2 }
 0x498   : > { %v1313_v25 = vpack.c.bf16 %v1245_v24, %v1245_v24 }
 0x49a   : > { %v1324_v26 = vunpack.c.l.b16 %v1313_v25 }
 0x49c   : > { %v1326_v33 = vpack.c.b16 %v1324_v26, %v1324_v26 }
 0x49e   : > { %v1333_v34 = vsel %vm1331_vm10, %v1326_v33, 0 }
 0x49f   : > { %1341 = vmatpush.bf16.msra.mxu0 %v1333_v34  ;;  %v1247_v38 = vpop.f32.mrf.mxu2 }
 0x4a3   : > { %1342 = vmatpush.bf16.msra.mxu0 %v1325_v36 }
 0x4fb   : > { %v1279_v0 = vpop.f32.mrf.mxu3 }
 0x4fc   : > { %v1284_v3 = vmul.f32 0.17677669, %v1279_v0  ;;  %v2696_v0 = vld [vmem:[#allocation14 + $0x30] sm:$0xff] }
 0x4fd   : > { %1548 = vmatpush.bf16.msra.mxu2 %v2696_v0  ;;  %v2729_v0 = vld [vmem:[#allocation17 + $0xb8] sm:$0xf0] }
 0x4fe   : > { %v1287_v4 = vsel %vm1286_vm9, %v1284_v3, -inf }
 0x4ff   : > { %1288 = vmax.xlane.f32.xlu2 %v1287_v4  ;;  %v2692_v4 = vld [vmem:[#allocation14 + $0x10] sm:$0xff] }
 0x501   : > { %1549 = vmatpush.bf16.msra.mxu2 %v2695_v1 }
 0x503   : > { %v1281_v9 = vpop.f32.mrf.mxu3 }
 0x504   : > { %v1285_v10 = vmul.f32 0.17677669, %v1281_v9 }
 0x505   : > { %1550 = vmatpush.bf16.msra.mxu2 %v2694_v2 }
 0x506   : > { %v1290_v11 = vsel %vm1286_vm9, %v1285_v10, -inf }
 0x507   : > { %1291 = vmax.xlane.f32.xlu2 %v1290_v11 }
 0x572   : > { %v1289_v12 = vpop.xlane.xlu2 %1288 }
 0x573   : > { %v1293_v13 = vsub.f32 %v1284_v3, %v1289_v12  ;;  %v2693_v3 = vld [vmem:[#allocation14 + $0x18] sm:$0xff]  ;;  %v2702_v12 = vld [vmem:[#allocation16 + $0x20] sm:$0xff] }
 0x574   : > { %1551 = vmatpush.bf16.msra.mxu2 %v2693_v3 }
 0x575   : > { %v1295_v14 = vmul.f32 1.442695, %v1293_v13 }
 0x577   : > { %2888 = vpow2.f32 %v1295_v14 }
 0x578   : > { %1552 = vmatpush.bf16.msra.mxu2 %v2692_v4 }
 0x57a   : > { %v1292_v15 = vpop.xlane.xlu2 %1291 }
 0x57b   : > { %v1294_v16 = vsub.f32 %v1285_v10, %v1292_v15  ;;  %v2703_v10 = vld [vmem:[#allocation16 + $0x28] sm:$0xff] }
 0x57c   : > { %1553 = vmatpush.bf16.msra.mxu2 %v2691_v5  ;;  %1630 = vmatpush.bf16.msra.mxu3 %v2703_v10  ;;  %v2724_v10 = vld [vmem:[#allocation17 + $0x94] sm:$0xf] }
 0x57d   : > { %v2889_v17 = vpop.eup %2888  ;;  %v1297_v18 = vmul.f32 1.442695, %v1294_v16 }
 0x57e   : > { %v1299_v19 = vsel %vm1286_vm9, %v2889_v17, 0.0 }
 0x57f   : > { %2890 = vpow2.f32 %v1297_v18  ;;  %1300 = vadd.xlane.f32.xlu0 %v1299_v19 }
 0x580   : > { %1554 = vmatpush.bf16.msra.mxu2 %v2690_v6  ;;  %1631 = vmatpush.bf16.msra.mxu3 %v2702_v12  ;;  %v2597_v12 = vld [vmem:[#allocation17 + $0x9c] sm:$0xf0] }
 0x585   : > { %v2891_v20 = vpop.eup %2890 }
 0x586   : > { %v1302_v21 = vsel %vm1286_vm9, %v2891_v20, 0.0 }
 0x587   : > { %1303 = vadd.xlane.f32.xlu1 %v1302_v21  ;;  %v2701_v21 = vld [vmem:[#allocation16 + $0x18] sm:$0xff] }
 0x588   : > { %1632 = vmatpush.bf16.msra.mxu3 %v2701_v21  ;;  %v2585_v21 = vld [vmem:[#allocation17 + $0x84] sm:$0xf0] }
 0x5f2   : > { %v1301_v42 = vpop.xlane.xlu0 %1300 }
 0x5f3   : > { %2892 = vrcp.f32 %v1301_v42 }
 0x5f9   : > { %v2893_v46 = vpop.eup %2892 }
 0x5fa   : > { %v1304_v45 = vpop.xlane.xlu1 %1303  ;;  %v1307_v51 = vmul.f32 %v2893_v46, %v2889_v17 }
 0x5fb   : > { %2894 = vrcp.f32 %v1304_v45 }
 0x5fc   : > { %v1309_v54 = vpack.c.bf16 %v1307_v51, %v1307_v51 }
 0x5fe   : > { %v1316_v57 = vunpack.c.l.b16 %v1309_v54 }
 0x601   : > { %v2895_v52 = vpop.eup %2894 }
 0x602   : > { %v1308_v55 = vmul.f32 %v2895_v52, %v2891_v20 }
 0x604   : > { %v1310_v56 = vpack.c.bf16 %v1308_v55, %v1308_v55 }
 0x606   : > { %v1317_v58 = vunpack.c.l.b16 %v1310_v56 }
 0x608   : > { %v1318_v59 = vpack.c.b16 %v1317_v58, %v1316_v57  ;;  %v2700_v57 = vld [vmem:[#allocation16 + $0x10] sm:$0xff]  ;;  %v2699_v58 = vld [vmem:[#allocation16 + $0x8] sm:$0xff] }
 0x609   : > { %1633 = vmatpush.bf16.msra.mxu3 %v2700_v57  ;;  %v2549_v57 = vld [vmem:[#allocation17 + $0x3c] sm:$0xf0] }
 0x60a   : > { %2424 = vmatmul.msk.bf16.vlgmr.msra.gmra.mxu0 %vm1286_vm9, %v1318_v59  ;;  %v2698_v59 = vld [vmem:[#allocation16] sm:$0xff] }
 0x60d   : > { %1634 = vmatpush.bf16.msra.mxu3 %v2699_v58  ;;  %v2555_v58 = vld [vmem:[#allocation17 + $0x38] sm:$0xf] }
 0x611   : > { %1635 = vmatpush.bf16.msra.mxu3 %v2698_v59  ;;  %v2714_v59 = vld [vmem:[#allocation17 + $0x40] sm:$0xf0] }
 0x687   : > { %v1344_v47 = vpop.f32.mrf.mxu0 }
 0x68f   : > { %v1346_v63 = vpop.f32.mrf.mxu0 }
 0x690   : > { %v1365_v48 = vpack.c.bf16 %v1346_v63, %v1344_v47  ;;  %v2608_v47 = vor.u32 %v2728_v61, %v2607_v60  ;;  %v2609_v63 = vld [vmem:[#allocation17 + $0xb4] sm:$0xf0] }
 0x691   : > { %v2612_v1 = vor.u32 %v2727_v62, %v2609_v63  ;;  %v2556_v62 = vor.u32 %v2714_v59, %v2555_v58  ;;  %v2710_v63 = vld [vmem:[#allocation17 + $0x20] sm:$0xf0] }
 0x692   : > { %1422 = vmatmul.bf16.vlgmr.msra.gmra.mxu1 %v1365_v48  ;;  %v2615_v48 = vld [vmem:[#allocation17 + $0xb0] sm:$0xf]  ;;  %1861 = vmatpush.bf16.msrb.mxu0 %v2608_v47  ;;  %v2535_v47 = vld [vmem:[#allocation17 + $0x18] sm:$0xf] }
 0x693   : > { %v2616_v2 = vor.u32 %v2729_v0, %v2615_v48  ;;  %1875 = vmatpush.bf16.msrb.mxu1 %v2612_v1  ;;  %v2709_v48 = vld [vmem:[#allocation17 + $0x1c] sm:$0xf]  ;;  %v2537_v0 = vld [vmem:[#allocation17 + $0x24] sm:$0xf0]  ;;  %v2543_v1 = vld [vmem:[#allocation17 + $0x20] sm:$0xf] }
 0x695   : > { %1889 = vmatpush.bf16.msrb.mxu2 %v2616_v2  ;;  %v2711_v2 = vld [vmem:[#allocation17 + $0x28] sm:$0xf0] }
 0x70f   : > { %v1423_v9 = vpop.f32.mrf.mxu1 }
 0x710   : > { %v1428_v11 = vadd.f32 %v1423_v9, %v3683_v31  ;;  %v2725_v9 = vld [vmem:[#allocation17 + $0x98] sm:$0xf0] }
 0x712   : > { %v1434_v15 = vrot.slane %v1428_v11, 1  ;;  %v1445_v16 = vrot.slane %v1428_v11, 7  ;;  %v1430_v22 = vperm.slane %v1428_v11, 0  ;;  %v1456_v24 = vrot.slane %v1428_v11, 2 }
 0x713   : > { %v1467_v28 = vrot.slane %v1428_v11, 6 }
 0x717   : > { %v1425_v13 = vpop.f32.mrf.mxu1 }
 0x718   : > { %v1429_v14 = vadd.f32 %v1425_v13, %v3686_v32  ;;  %v2603_v13 = vld [vmem:[#allocation17 + $0x98] sm:$0xf] }
 0x71a   : > { %v1431_v17 = vperm.slane %v1429_v14, 7  ;;  %v1435_v18 = vrot.slane %v1429_v14, 1  ;;  %v1443_v19 = vrot.slane %v1429_v14, 7  ;;  %v1457_v20 = vrot.slane %v1429_v14, 2 }
 0x71b   : > { %v1465_v35 = vrot.slane %v1429_v14, 6 }
 0x71c   : > { %v1436_v23 = vsel %vm978_vm1, %v1434_v15, %v1435_v18  ;;  %v1440_v37 = vsel %vm978_vm1, %v1435_v18, %v1434_v15  ;;  %v1449_v31 = vsel %vm992_vm2, %v1443_v19, %v1445_v16  ;;  %v1462_v33 = vsel %vm1006_vm5, %v1457_v20, %v1456_v24  ;;  %v2722_v18 = vld [vmem:[#allocation17 + $0x80] sm:$0xf0] }
 0x71d   : > { %v1442_v32 = vsel %vm975_vm3, %v1431_v17, %v1440_v37  ;;  %v1450_v25 = vsel %vm988_vm4, %v1430_v22, %v1449_v31  ;;  %v1452_v26 = vadd.f32 %v1436_v23, %v1428_v11  ;;  %v1446_v34 = vsel %vm992_vm2, %v1445_v16, %v1443_v19  ;;  %v2721_v19 = vld [vmem:[#allocation17 + $0x7c] sm:$0xf]  ;;  %v2571_v31 = vld [vmem:[#allocation17 + $0x60] sm:$0xf] }
 0x71e   : > { %v1453_v29 = vadd.f32 %v1442_v32, %v1429_v14  ;;  %v1471_v38 = vsel %vm1020_vm6, %v1465_v35, %v1467_v28  ;;  %v1458_v40 = vsel %vm1006_vm5, %v1456_v24, %v1457_v20  ;;  %v1464_v41 = vsel %vm1005_vm7, %v1431_v17, %v1462_v33  ;;  %v2583_v17 = vld [vmem:[#allocation17 + $0x78] sm:$0xf]  ;;  %v2719_v24 = vld [vmem:[#allocation17 + $0x68] sm:$0xf0]  ;;  %v2718_v32 = vld [vmem:[#allocation17 + $0x64] sm:$0xf] }
 0x71f   : > { %v1454_v36 = vadd.f32 %v1452_v26, %v1450_v25  ;;  %v1472_v43 = vsel %vm1016_vm8, %v1430_v22, %v1471_v38  ;;  %v1468_v45 = vsel %vm1020_vm6, %v1467_v28, %v1465_v35  ;;  %v2600_v15 = vor.u32 %v2724_v10, %v2597_v12  ;;  %v2591_v22 = vld [vmem:[#allocation17 + $0x80] sm:$0xf]  ;;  %v2723_v35 = vld [vmem:[#allocation17 + $0x88] sm:$0xf0]  ;;  %v2573_v26 = vld [vmem:[#allocation17 + $0x6c] sm:$0xf0] }
 0x720   : > { %v1455_v39 = vadd.f32 %v1453_v29, %v1446_v34  ;;  %v2584_v20 = vor.u32 %v2722_v18, %v2583_v17  ;;  %v2588_v23 = vor.u32 %v2721_v19, %v2585_v21  ;;  %v2592_v37 = vor.u32 %v2723_v35, %v2591_v22  ;;  %v2579_v28 = vld [vmem:[#allocation17 + $0x68] sm:$0xf]  ;;  %v2720_v29 = vld [vmem:[#allocation17 + $0x70] sm:$0xf0] }
 0x721   : > { %v1474_v42 = vadd.f32 %v1458_v40, %v1454_v36  ;;  %1876 = vmatpush.bf16.msrb.mxu1 %v2600_v15  ;;  %v2572_v25 = vor.u32 %v2719_v24, %v2571_v31  ;;  %v2576_v33 = vor.u32 %v2718_v32, %v2573_v26  ;;  %v2580_v34 = vor.u32 %v2720_v29, %v2579_v28  ;;  %v2559_v36 = vld [vmem:[#allocation17 + $0x48] sm:$0xf]  ;;  %v2716_v38 = vld [vmem:[#allocation17 + $0x50] sm:$0xf0] }
 0x722   : > { %v1475_v44 = vadd.f32 %v1464_v41, %v1455_v39  ;;  %v2715_v39 = vld [vmem:[#allocation17 + $0x4c] sm:$0xf]  ;;  %v2560_v40 = vor.u32 %v2716_v38, %v2559_v36  ;;  %v2561_v41 = vld [vmem:[#allocation17 + $0x54] sm:$0xf0]  ;;  %v2531_v10 = vld [vmem:[#allocation17 + $0x8] sm:$0xf] }
 0x723   : > { %v1476_v46 = vadd.f32 %v1474_v42, %v1472_v43  ;;  %v2567_v42 = vld [vmem:[#allocation17 + $0x50] sm:$0xf]  ;;  %v2717_v43 = vld [vmem:[#allocation17 + $0x58] sm:$0xf0] }
 0x724   : > { %v1477_v49 = vadd.f32 %v1475_v44, %v1468_v45  ;;  %v2564_v44 = vor.u32 %v2715_v39, %v2561_v41  ;;  %v2568_v45 = vor.u32 %v2717_v43, %v2567_v42 }
 0x725   : > { %v3715_v51 = vmul.f32 0.2, %v1476_v46  ;;  %1877 = vmatpush.bf16.msrb.mxu1 %v2588_v23  ;;  %v2547_v46 = vld [vmem:[#allocation17 + $0x30] sm:$0xf] }
 0x726   : > { %v3717_v52 = vmul.f32 0.2, %v1477_v49  ;;  %v2713_v49 = vld [vmem:[#allocation17 + $0x38] sm:$0xf0] }
 0x727   : > { %v3720_v54 = vsub.f32 %v1428_v11, %v3715_v51  ;;  %v2596_v11 = vor.u32 %v2725_v9, %v2595_v8  ;;  %v2548_v60 = vor.u32 %v2713_v49, %v2547_v46  ;;  %v2706_v8 = vld [vmem:[#allocation17 + $0x4] sm:$0xf]  ;;  %v2525_v9 = vld [vmem:[#allocation17 + $0xc] sm:$0xf0]  ;;  %v1696_v58 = vadd.f32 %v3715_v51, %v3678_v27 }
 0x728   : > { %v3723_v55 = vsub.f32 %v1429_v14, %v3717_v52  ;;  %v2726_v14 = vld [vmem:[#allocation17 + $0xa0] sm:$0xf0]  ;;  %v1697_v53 = vadd.f32 %v3717_v52, %v3680_v30 }
 0x729   : > { %v2604_v16 = vor.u32 %v2726_v14, %v2603_v13  ;;  %1862 = vmatpush.bf16.msrb.mxu0 %v2596_v11  ;;  %1878 = vmatpush.bf16.msrb.mxu1 %v2576_v33  ;;  %v2708_v11 = vld [vmem:[#allocation17 + $0x10] sm:$0xf0]  ;;  %v2528_v13 = vor.u32 %v2706_v8, %v2525_v9 }
 0x72a   : > { %v1498_v56 = vpack.c.bf16 %v3723_v55, %v3720_v54  ;;  %v2532_v14 = vor.u32 %v2708_v11, %v2531_v10 }
 0x72b   : > { %1890 = vmatpush.bf16.msrb.mxu2 %v2604_v16 }
 0x72c   : > { %1555 = vmatmul.bf16.vlgmr.msra.gmra.mxu2 %v1498_v56  ;;  %v2712_v56 = vld [vmem:[#allocation17 + $0x34] sm:$0xf] }
 0x72d   : > { %1863 = vmatpush.bf16.msrb.mxu0 %v2584_v20  ;;  %1879 = vmatpush.bf16.msrb.mxu1 %v2564_v44  ;;  %v2552_v61 = vor.u32 %v2712_v56, %v2549_v57 }
 0x72f   : > { %1891 = vmatpush.bf16.msrb.mxu2 %v2592_v37 }
 0x731   : > { %1864 = vmatpush.bf16.msrb.mxu0 %v2572_v25  ;;  %1880 = vmatpush.bf16.msrb.mxu1 %v2552_v61 }
 0x733   : > { %1892 = vmatpush.bf16.msrb.mxu2 %v2580_v34 }
 0x735   : > { %1865 = vmatpush.bf16.msrb.mxu0 %v2560_v40 }
 0x737   : > { %1893 = vmatpush.bf16.msrb.mxu2 %v2568_v45 }
 0x739   : > { %1866 = vmatpush.bf16.msrb.mxu0 %v2548_v60 }
 0x73b   : > { %1894 = vmatpush.bf16.msrb.mxu2 %v2556_v62 }
 0x7af   : > { %v1556_v3 = vpop.f32.mrf.mxu2 }
 0x7b0   : > { %v1561_v5 = vmax.f32 %v1556_v3, 0.0  ;;  %v2536_v3 = vor.u32 %v2710_v63, %v2535_v47 }
 0x7b2   : > { %1867 = vmatpush.bf16.msrb.mxu0 %v2536_v3 }
 0x7b7   : > { %v1558_v4 = vpop.f32.mrf.mxu2 }
 0x7b8   : > { %v1562_v6 = vmax.f32 %v1558_v4, 0.0  ;;  %v2540_v4 = vor.u32 %v2709_v48, %v2537_v0 }
 0x7ba   : > { %v1579_v7 = vpack.c.bf16 %v1562_v6, %v1561_v5  ;;  %v2544_v5 = vor.u32 %v2711_v2, %v2543_v1  ;;  %v2523_v6 = vld [vmem:[#allocation17] sm:$0xf]  ;;  %1881 = vmatpush.bf16.msrb.mxu1 %v2540_v4 }
 0x7bc   : > { %1636 = vmatmul.bf16.vlgmr.msra.gmra.mxu3 %v1579_v7  ;;  %v2707_v7 = vld [vmem:[#allocation17 + $0x8] sm:$0xf0]  ;;  %1895 = vmatpush.bf16.msrb.mxu2 %v2544_v5 }
 0x7bd   : > { %v2524_v12 = vor.u32 %v2707_v7, %v2523_v6 }
 0x7be   : > { %1882 = vmatpush.bf16.msrb.mxu1 %v2528_v13 }
 0x7bf   : > { %1868 = vmatpush.bf16.msrb.mxu0 %v2524_v12 }
 0x7c0   : > { %1896 = vmatpush.bf16.msrb.mxu2 %v2532_v14 }
 0x83f   : > { %v1637_v15 = vpop.f32.mrf.mxu3 }
 0x840   : > { %v1642_v16 = vadd.f32 %v1637_v15, %v3720_v54 }
 0x842   : > { %v1648_v19 = vrot.slane %v1642_v16, 1  ;;  %v1659_v20 = vrot.slane %v1642_v16, 7  ;;  %v1644_v37 = vperm.slane %v1642_v16, 0  ;;  %v1670_v26 = vrot.slane %v1642_v16, 2 }
 0x843   : > { %v1681_v29 = vrot.slane %v1642_v16, 6 }
 0x847   : > { %v1639_v17 = vpop.f32.mrf.mxu3 }
 0x848   : > { %v1643_v18 = vadd.f32 %v1639_v17, %v3723_v55 }
 0x84a   : > { %v1645_v21 = vperm.slane %v1643_v18, 7  ;;  %v1649_v22 = vrot.slane %v1643_v18, 1  ;;  %v1657_v35 = vrot.slane %v1643_v18, 7  ;;  %v1671_v23 = vrot.slane %v1643_v18, 2 }
 0x84b   : > { %v1679_v31 = vrot.slane %v1643_v18, 6 }
 0x84c   : > { %v1650_v24 = vsel %vm978_vm1, %v1648_v19, %v1649_v22  ;;  %v1654_v32 = vsel %vm978_vm1, %v1649_v22, %v1648_v19  ;;  %v1663_v25 = vsel %vm992_vm2, %v1657_v35, %v1659_v20  ;;  %v1676_v34 = vsel %vm1006_vm5, %v1671_v23, %v1670_v26 }
 0x84d   : > { %v1656_v54 = vsel %vm975_vm3, %v1645_v21, %v1654_v32  ;;  %v1664_v55 = vsel %vm988_vm4, %v1644_v37, %v1663_v25  ;;  %v1666_v28 = vadd.f32 %v1650_v24, %v1642_v16  ;;  %v1660_v36 = vsel %vm992_vm2, %v1659_v20, %v1657_v35 }
 0x84e   : > { %v1667_v33 = vadd.f32 %v1656_v54, %v1643_v18  ;;  %v1685_v39 = vsel %vm1020_vm6, %v1679_v31, %v1681_v29  ;;  %v1672_v41 = vsel %vm1006_vm5, %v1670_v26, %v1671_v23  ;;  %v1678_v42 = vsel %vm1005_vm7, %v1645_v21, %v1676_v34 }
 0x84f   : > { %v1668_v38 = vadd.f32 %v1666_v28, %v1664_v55  ;;  %v1686_v44 = vsel %vm1016_vm8, %v1644_v37, %v1685_v39  ;;  %v1682_v46 = vsel %vm1020_vm6, %v1681_v29, %v1679_v31 }
 0x850   : > { %v1669_v40 = vadd.f32 %v1667_v33, %v1660_v36 }
 0x851   : > { %v1688_v43 = vadd.f32 %v1672_v41, %v1668_v38 }
 0x852   : > { %v1689_v45 = vadd.f32 %v1678_v42, %v1669_v40 }
 0x853   : > { %v1690_v49 = vadd.f32 %v1688_v43, %v1686_v44 }
 0x854   : > { %v1691_v56 = vadd.f32 %v1689_v45, %v1682_v46 }
 0x855   : > { %v1692_v57 = vmul.f32 0.2, %v1690_v49 }
 0x856   : > { %v1693_v59 = vmul.f32 0.2, %v1691_v56 }
 0x857   : > { %v1694_v60 = vsub.f32 %v1642_v16, %v1692_v57  ;;  %v1698_v61 = vadd.f32 %v1696_v58, %v1692_v57 }
 0x858   : > { %v1695_v50 = vsub.f32 %v1643_v18, %v1693_v59  ;;  %v1699_v62 = vadd.f32 %v1697_v53, %v1693_v59 }
 0x859   : > { %1925 = vst [vmem:[%s584_s22] sm:$0xff] %v1694_v60 }
 0x85a   : > { %v1732_v47 = vpack.c.bf16 %v1699_v62, %v1698_v61  ;;  %1926 = vst [vmem:[%s584_s22 + $0x8] sm:$0xff] %v1695_v50 }
 0x85c   : > { %1869 = vmatmul.bf16.vlgmr.msrb.gmra.mxu0 %v1732_v47  ;;  %1883 = vmatmul.bf16.vlgmr.msrb.gmra.mxu1 %v1732_v47 }
 0x85d   : > { %1897 = vmatmul.bf16.vlgmr.msrb.gmra.mxu2 %v1732_v47 }
 0x85e   : > { %3223 = shalt.err (!%p3220_p8)
}
 0x85f   : > { %s3334_s15 = smov 128   ;;  %s3335_s14 = smov 8  }
 0x860   : > { %2771 = dma.vmem_to_hbm [thread:$0]  (%p3529_p4), %s1948_s30, 256, %s1950_s28, %s1930_s6, %s3334_s15, %s3334_s15, %s3335_s14  }
 0x861   : > { %s3860_s26 = sld [smem:[#allocation40_spill]]  ;;  %s591_s8 = scalar_lea.vmem [#allocation20], %s3591_s21 }
 0x862   : > { %s1964_s30 = sshll.u32 %s591_s8, 4  ;;  %s1935_s24 = scalar_lea.sflag [#allocation21], %s3588_s5  ;;  %s1965_s30 = int_to_ptr.vmem [resolvable:$true] %s1964_s30 }
 0x867   : > { %s1963_s7 = scalar_lea.hbm %s3860_s26, %s2730_s12  ;;  %s3244_s4 = scalar_lea.hbm %s3860_s26, 32 }
 0x868   : > { %s1966_s28 = sshll.u32 %s1963_s7, 4  ;;  %s1967_s28 = int_to_ptr.hbm [resolvable:$true] %s1966_s28 }
 0x869   : > { %s3238_s12 = sshra.s32 %s1967_s28, 4  ;;  %s3239_s12 = int_to_ptr.hbm [resolvable:$true] %s3238_s12 }
 0x86a   : > { %s3240_s6 = scalar_lea.hbm %s3239_s12, 16  ;;  %p3245_p0 = scmp.lt.s32.totalorder %s3239_s12, %s3860_s26 }
 0x86b   : > { %p3241_p10 = scmp.ne.s32.totalorder %s3239_s12, %s3240_s6  ;;  %p3246_p2 = scmp.lt.s32.totalorder %s3244_s4, %s3240_s6 }
 0x86d   : > { %p3242_p13 = pnand %p3241_p10, %p3529_p4  ;;  %p3247_p1 = por %p3246_p2, %p3245_p0 }
 0x86f   : > { %p3243_p11 = pneg %p3242_p13 }
 0x871   : > { %p3248_p3 = pnand %p3247_p1, %p3243_p11 }
 0x8d9   : > { %v1870_v27 = vpop.f32.mrf.mxu0  ;;  %v1884_v30 = vpop.f32.mrf.mxu1 }
 0x8da   : > { %v1907_v48 = vrot.slane %v1870_v27, 7 }
 0x8e0   : > { %v1898_v51 = vpop.f32.mrf.mxu2 }
 0x8e1   : > { %v1872_v52 = vpop.f32.mrf.mxu0  ;;  %v1916_v3 = vrot.slane %v1898_v51, 1  ;;  %v1886_v4 = vpop.f32.mrf.mxu1 }
 0x8e2   : > { %v1904_v63 = vrot.slane %v1872_v52, 7 }
 0x8e4   : > { %v1911_v0 = vsel %vm992_vm2, %v1904_v63, %v1907_v48  ;;  %v1908_v1 = vsel %vm992_vm2, %v1907_v48, %v1904_v63 }
 0x8e5   : > { %v1912_v6 = vadd.f32 %v1911_v0, %v1884_v30  ;;  %v1913_v7 = vadd.f32 %v1908_v1, %v1886_v4 }
 0x8e8   : > { %v1900_v2 = vpop.f32.mrf.mxu2 }
 0x8e9   : > { %v1917_v5 = vrot.slane %v1900_v2, 1 }
 0x8eb   : > { %v1918_v8 = vsel %vm978_vm1, %v1916_v3, %v1917_v5  ;;  %v1922_v9 = vsel %vm978_vm1, %v1917_v5, %v1916_v3 }
 0x8ec   : > { %v1923_v10 = vadd.f32 %v1918_v8, %v1912_v6  ;;  %v1924_v11 = vadd.f32 %v1922_v9, %v1913_v7 }
 0x8ee   : > { %1927 = vst [vmem:[%s591_s8] sm:$0xff] %v1923_v10 }
 0x8ef   : > { %1928 = vst [vmem:[%s591_s8 + $0x8] sm:$0xff] %v1924_v11 }
 0x8f0   : > { %3251 = shalt.err (!%p3248_p3)
}
 0x8f1   : > { %2772 = dma.vmem_to_hbm [thread:$0]  (%p3529_p4), %s1965_s30, 256, %s1967_s28, %s1935_s24, %s3334_s15, %s3334_s15, %s3335_s14  }
 0x8f2 PF: > { %s1981_s5 = sand.u32 1, %s3306_s17   ;;  %p3861_p12 = scmp.ge.s32.totalorder %s3318_s20, 2 }
 0x8f3   : > { %s1982_s13 = scalar_lea.sflag [#allocation4], %s1981_s5 }
 0x8f4   : > { %p2808_p7 = pnand %p3861_p12, %p3533_p6 }
 0x8f6   : > { %p2809_p9 = pneg %p2808_p7 }
 0x8f8   : > { %3297 = dma.done.wait (%p2809_p9), %s1982_s13, 256  }
 0x8f9   : > { %3299 = vsyncadd (%p2809_p9), %s1982_s13, 4294967040  ;;  %s1992_s16 = scalar_lea.sflag [#allocation21], %s1981_s5 }
 0x8fa   : > { %3301 = dma.done.wait (%p2809_p9), %s1992_s16, 256  }
 0x8fb   : > { %3303 = vsyncadd (%p2809_p9), %s1992_s16, 4294967040  ;;  %s3862_s11 = sld [smem:[#allocation31_spill]]  ;;  %p35_p4 = scmp.ge.s32.totalorder %s3501_s3, 4  }
 0x8fc   : > { %s3863_s17 = smov %s3310_s18  ;;  %s3864_s18 = smov %s3314_s19 }
 0x8fd   : > { %s3866_s20 = smov %s3501_s3  ;;  %37 = sbr.rel (!%p35_p4) target bundleno = 23 (0x17), region = 167 }
 0x901   : > { %s3865_s19 = smov %s3862_s11 }
 0x902   :  { %1998 = vsyncpa [#allocation3], 1 }
 0x903   :  { %2000 = vsyncpa [#allocation3 + $0x1], 1 }
 0x904   :  { %2001 = vsyncpa [#allocation6], 1 }
 0x905   :  { %2003 = vsyncpa [#allocation6 + $0x1], 1 }
 0x906   :  { %2004 = vsyncpa [#allocation9], 1 }
 0x907   :  { %2005 = vsyncpa [#allocation12], 1 }
 0x908   :  { %2006 = vsyncpa [#allocation15], 1 }
 0x909   :  { %2007 = vsyncpa [#allocation18], 1 }
 0x90a   :  { %2008 = vsyncpa [#allocation4], 1 }
 0x90b   :  { %2010 = vsyncpa [#allocation4 + $0x1], 1 }
 0x90c   :  { %2011 = vsyncpa [#allocation21], 1 }
 0x90d   :  { %2013 = vsyncpa [#allocation21 + $0x1], 1 }

// kernel: tpu_custom_call.1
= control target key start
LH: loop header
LB: loop body
LE: loop exit
PB: predicated region body
PF: predicated region fallthrough
CT: control target
= control target key end

     0   :  { %s3812_s0 = inlined_call_operand.hbm [shape: f32[2,16,128], index: 0, kind: input, shape index: {}]   ;;  %s3813_s1 = inlined_call_operand.hbm [shape: f32[2,24,128], index: 1, kind: input, shape index: {}]   ;;  %s3814_s2 = inlined_call_operand.hbm [shape: bf16[128,384], index: 2, kind: input, shape index: {}]   ;;  %s3815_s3 = inlined_call_operand.hbm [shape: bf16[128,128], index: 3, kind: input, shape index: {}]   ;;  %s3816_s4 = inlined_call_operand.hbm [shape: bf16[128,128], index: 4, kind: input, shape index: {}]   ;;  %s3817_s5 = inlined_call_operand.hbm [shape: bf16[128,256], index: 5, kind: input, shape index: {}]   ;;  %s3818_s6 = inlined_call_operand.hbm [shape: bf16[128,128], index: 6, kind: input, shape index: {}]   ;;  %s3819_s7 = inlined_call_operand.hbm [shape: bf16[128,128], index: 7, kind: input, shape index: {}]   ;;  %s3820_s8 = inlined_call_operand.hbm [shape: bf16[128,128], index: 8, kind: input, shape index: {}]   ;;  %s3821_s9 = inlined_call_operand.hbm [shape: bf16[128,384], index: 9, kind: input, shape index: {}]   ;;  %s3822_s10 = inlined_call_operand.hbm [shape: f32[2,16,128], index: 10, kind: output, shape index: {0}]   ;;  %s3823_s11 = inlined_call_operand.hbm [shape: f32[2,16,128], index: 11, kind: output, shape index: {1}]  }
   0x1   :  { %3831 = sst [smem:[#allocation32_spill]] %s3814_s2 }
   0x2   :  { %3832 = sst [smem:[#allocation33_spill]] %s3815_s3 }
   0x3   :  { %3833 = sst [smem:[#allocation34_spill]] %s3816_s4 }
   0x4   :  { %3834 = sst [smem:[#allocation35_spill]] %s3817_s5 }
   0x5   :  { %3835 = sst [smem:[#allocation36_spill]] %s3818_s6 }
   0x6   :  { %3836 = sst [smem:[#allocation37_spill]] %s3819_s7 }
   0x7   :  { %3837 = sst [smem:[#allocation38_spill]] %s3820_s8 }
   0x8   :  { %3838 = sst [smem:[#allocation39_spill]] %s3821_s9 }
   0x9   :  { %3839 = sst [smem:[#allocation40_spill]] %s3823_s11 }
   0xa   :  { %17 = vsyncpa [#allocation3], 0 }
   0xb   :  { %19 = vsyncpa [#allocation3 + $0x1], 0 }
   0xc   :  { %20 = vsyncpa [#allocation6], 0 }
   0xd   :  { %22 = vsyncpa [#allocation6 + $0x1], 0 }
   0xe   :  { %23 = vsyncpa [#allocation9], 0 }
   0xf   :  { %24 = vsyncpa [#allocation12], 0 }
  0x10   :  { %25 = vsyncpa [#allocation15], 0 }
  0x11   :  { %26 = vsyncpa [#allocation18], 0 }
  0x12   :  { %27 = vsyncpa [#allocation4], 0 }
  0x13   :  { %29 = vsyncpa [#allocation4 + $0x1], 0 }
  0x14   :  { %30 = vsyncpa [#allocation21], 0 }
  0x15   :  { %32 = vsyncpa [#allocation21 + $0x1], 0  ;;  %s3396_s17 = smov 0   ;;  %s3398_s18 = smov 0  }
  0x16   :  { %s3400_s19 = smov 0   ;;  %s3402_s20 = smov 0  }
  0x17 LB: > { %s3840_s2 = sld [smem:[#allocation32_spill]]  ;;  %s3420_s24 = sadd.s32 4294967295, %s3318_s20   ;;  %s3318_s20 = sphi %s3402_s20, %s3866_s20   ;;  %s3314_s19 = sphi %s3400_s19, %s3865_s19   ;;  %s3310_s18 = sphi %s3398_s18, %s3864_s18   ;;  %s3306_s17 = sphi %s3396_s17, %s3863_s17  }
  0x18   : > { %p2173_p0 = scmp.ge.s32.totalorder %s3318_s20, 1  ;;  %p59_p1 = scmp.eq.s32.totalorder %s3420_s24, 0 }
  0x19   : > { %p315_p2 = scmp.lt.s32.totalorder %s3318_s20, 3  ;;  %s3320_s26 = smov [#allocation7]  }
  0x1a   : > { %s328_s27 = sshll.u32 %s3320_s26, 4  ;;  %s3842_s3 = sld [smem:[#allocation33_spill]]  ;;  %s329_s27 = int_to_ptr.vmem [resolvable:$true] %s328_s27 }
  0x1b   : > { %p3425_p3 = pnand %p2173_p0, %p315_p2  ;;  %s3321_s13 = smov [#allocation8]  }
  0x1c   : > { %s342_s14 = sshll.u32 %s3321_s13, 4  ;;  %s3825_s15 = smov 192   ;;  %s343_s14 = int_to_ptr.vmem [resolvable:$true] %s342_s14 }
  0x1d   : > { %s326_s23 = sshll.u32 %s3840_s2, 4  ;;  %p2775_p4 = pneg %p3425_p3  ;;  %s327_s23 = int_to_ptr.hbm [resolvable:$true] %s326_s23 }
  0x1e   : > { %s3826_s16 = smov 12   ;;  %s3324_s21 = smov 64  }
  0x1f   : > { %p3437_p6 = pnand %p2775_p4, %p59_p1  ;;  %s3325_s22 = smov 4  }
  0x20   : > { %s340_s30 = sshll.u32 %s3842_s3, 4  ;;  %s3844_s5 = sld [smem:[#allocation35_spill]]  ;;  %s341_s30 = int_to_ptr.hbm [resolvable:$true] %s340_s30 }
  0x21   : > { %2778 = dma.hbm_to_vmem [thread:$0]  (!%p3437_p6), %s327_s23, 3072, %s329_s27, [#allocation6], %s3825_s15, %s3825_s15, %s3826_s16  }
  0x22   : > { %2781 = dma.hbm_to_vmem [thread:$0]  (!%p3437_p6), %s341_s30, 1024, %s343_s14, [#allocation9], %s3324_s21, %s3324_s21, %s3325_s22  }
  0x23   : > { %s3326_s13 = smov [#allocation11]   ;;  %s3845_s7 = sld [smem:[#allocation37_spill]] }
  0x24   : > { %s370_s2 = sshll.u32 %s3326_s13, 4  ;;  %s3827_s27 = smov 128   ;;  %s371_s2 = int_to_ptr.vmem [resolvable:$true] %s370_s2 }
  0x25   : > { %s3829_s15 = smov 8   ;;  %s3329_s30 = smov [#allocation14]  }
  0x26   : > { %s368_s29 = sshll.u32 %s3844_s5, 4  ;;  %s398_s14 = sshll.u32 %s3329_s30, 4  ;;  %s369_s29 = int_to_ptr.hbm [resolvable:$true] %s368_s29  ;;  %s399_s14 = int_to_ptr.vmem [resolvable:$true] %s398_s14 }
  0x27   : > { %2787 = dma.hbm_to_vmem [thread:$0]  (!%p3437_p6), %s369_s29, 2048, %s371_s2, [#allocation12], %s3827_s27, %s3827_s27, %s3829_s15  }
  0x28   : > { %s3846_s4 = sld [smem:[#allocation34_spill]]  ;;  %s3330_s2 = smov [#allocation10]  }
  0x29   : > { %s396_s23 = sshll.u32 %s3845_s7, 4  ;;  %s3847_s6 = sld [smem:[#allocation36_spill]]  ;;  %s397_s23 = int_to_ptr.hbm [resolvable:$true] %s396_s23 }
  0x2a   : > { %2793 = dma.hbm_to_vmem [thread:$0]  (!%p3437_p6), %s397_s23, 1024, %s399_s14, [#allocation15], %s3324_s21, %s3324_s21, %s3325_s22  }
  0x2b   : > { %s356_s29 = sshll.u32 %s3330_s2, 4  ;;  %s3331_s30 = smov [#allocation13]   ;;  %s357_s29 = int_to_ptr.vmem [resolvable:$true] %s356_s29 }
  0x2c   : > { %s384_s26 = sshll.u32 %s3331_s30, 4  ;;  %s3848_s8 = sld [smem:[#allocation38_spill]]  ;;  %s385_s26 = int_to_ptr.vmem [resolvable:$true] %s384_s26 }
  0x2d   : > { %s3849_s9 = sld [smem:[#allocation39_spill]]  ;;  %s3332_s2 = smov [#allocation16]  }
  0x2e   : > { %s354_s13 = sshll.u32 %s3846_s4, 4  ;;  %s3851_s28 = smov 192   ;;  %s355_s13 = int_to_ptr.hbm [resolvable:$true] %s354_s13 }
  0x2f   : > { %s382_s16 = sshll.u32 %s3847_s6, 4  ;;  %s2172_s23 = sadd.s32 4294967294, %s3318_s20   ;;  %s383_s16 = int_to_ptr.hbm [resolvable:$true] %s382_s16 }
  0x30   : > { %2784 = dma.hbm_to_vmem [thread:$0]  (!%p3437_p6), %s355_s13, 1024, %s357_s29, [#allocation9], %s3324_s21, %s3324_s21, %s3325_s22  }
  0x31   : > { %2790 = dma.hbm_to_vmem [thread:$0]  (!%p3437_p6), %s383_s16, 1024, %s385_s26, [#allocation12], %s3324_s21, %s3324_s21, %s3325_s22  }
  0x32   : > { %s410_s14 = sshll.u32 %s3848_s8, 4  ;;  %s412_s29 = sshll.u32 %s3332_s2, 4  ;;  %s411_s14 = int_to_ptr.hbm [resolvable:$true] %s410_s14  ;;  %s413_s29 = int_to_ptr.vmem [resolvable:$true] %s412_s29 }
  0x33   : > { %s424_s11 = sshll.u32 %s3849_s9, 4  ;;  %s3333_s16 = smov [#allocation17]   ;;  %s425_s11 = int_to_ptr.hbm [resolvable:$true] %s424_s11 }
  0x34   : > { %2796 = dma.hbm_to_vmem [thread:$0]  (!%p3437_p6), %s411_s14, 1024, %s413_s29, [#allocation15], %s3324_s21, %s3324_s21, %s3325_s22  }
  0x35   : > { %s426_s30 = sshll.u32 %s3333_s16, 4  ;;  %s3850_s26 = smov 12   ;;  %s427_s30 = int_to_ptr.vmem [resolvable:$true] %s426_s30 }
  0x36   : > { %2799 = dma.hbm_to_vmem [thread:$0]  (!%p3437_p6), %s425_s11, 3072, %s427_s30, [#allocation18], %s3851_s28, %s3851_s28, %s3850_s26  }
  0x37   : > { %s3501_s3 = sadd.s32 1, %s3318_s20   ;;  %s45_s2 = sadd.s32 1, %s3314_s19 }
  0x38   : > { %s42_s13 = ssub.s32 %s3318_s20, %s3501_s3  ;;  %p52_p8 = scmp.ne.s32.totalorder %s3314_s19, %s3310_s18 }
  0x39   : > { %p43_p7 = scmp.eq.s32.totalorder %s42_s13, 0  ;;  %p53_p9 = scmp.eq.s32.totalorder %s3318_s20, 0 }
  0x3a   : > { %p58_p10 = scmp.ne.s32.totalorder %s3310_s18, %s3306_s17  ;;  %p276_p13 = scmp.eq.s32.totalorder %s3420_s24, 1 }
  0x3b   : > { %s3512_s21 = scalar_select %p43_p7, %s3314_s19, %s45_s2  }
  0x3c   : > { %p3514_p11 = por %p53_p9, %p52_p8  ;;  %p3520_p12 = por %p59_p1, %p58_p10 }
  0x3d   : > { %3852 = sst [smem:[#allocation31_spill]] %s3512_s21  ;;  %p282_p0 = scmp.eq.s32.totalorder %s2172_s23, 1 }
  0x3e   : > { %p2822_p2 = scmp.lt.s32.totalorder %s3318_s20, 2  ;;  %s3527_s14 = sand.u32 1, %s3314_s19  }
  0x3f   : > { %p3529_p4 = por %p276_p13, %p52_p8  ;;  %p3533_p6 = por %p282_p0, %p58_p10 }
  0x40   : > { %s2183_s16 = sshll.u32 %s3527_s14, 4  ;;  %s2625_s30 = sshll.u32 %s3318_s20, 4 }
  0x41   : > { %s449_s23 = scalar_lea.hbm %s3812_s0, %s2625_s30  ;;  %s444_s13 = scalar_lea.vmem [#allocation2], %s2183_s16 }
  0x42   : > { %s452_s2 = sshll.u32 %s444_s13, 4  ;;  %s450_s27 = sshll.u32 %s449_s23, 4  ;;  %s453_s2 = int_to_ptr.vmem [resolvable:$true] %s452_s2  ;;  %s451_s27 = int_to_ptr.hbm [resolvable:$true] %s450_s27 }
  0x43   : > { %p3544_p7 = pnand %p2822_p2, %p3514_p11  ;;  %s2732_s4 = smul.u32 24, %s3527_s14 }
  0x44   : > { %s462_s5 = sand.u32 1, %s3318_s20   ;;  %s441_s6 = scalar_lea.sflag [#allocation3], %s3527_s14 }
  0x45   : > { %s3136_s7 = sshra.s32 %s451_s27, 4  ;;  %p3140_p9 = pneg %p3544_p7  ;;  %s3137_s7 = int_to_ptr.hbm [resolvable:$true] %s3136_s7 }
  0x46   : > { %s3138_s8 = scalar_lea.hbm %s3137_s7, 16  ;;  %s3143_s30 = scalar_lea.hbm %s3812_s0, 32 }
  0x47   : > { %p3139_p8 = scmp.ne.s32.totalorder %s3137_s7, %s3138_s8  ;;  %p3144_p11 = scmp.lt.s32.totalorder %s3137_s7, %s3812_s0 }
  0x48   : > { %p3145_p0 = scmp.lt.s32.totalorder %s3143_s30, %s3138_s8 }
  0x49   : > { %p3141_p10 = pnand %p3140_p9, %p3139_p8 }
  0x4a   : > { %p3146_p2 = por %p3145_p0, %p3144_p11 }
  0x4b   : > { %p3142_p13 = pneg %p3141_p10 }
  0x4d   : > { %p3147_p5 = pnand %p3146_p2, %p3142_p13 }
  0x4f   : > { %3150 = shalt.err (!%p3147_p5)
}
  0x50   : > { %s3858_s14 = smov 8   ;;  %s3859_s23 = smov 128  }
  0x51   : > { %2803 = dma.hbm_to_vmem [thread:$0]  (!%p3544_p7), %s451_s27, 256, %s453_s2, %s441_s6, %s3859_s23, %s3859_s23, %s3858_s14  }
  0x52   : > { %s2733_s13 = smul.u32 24, %s3318_s20  ;;  %s466_s9 = scalar_lea.vmem [#allocation5], %s2732_s4 }
  0x53   : > { %s474_s12 = sshll.u32 %s466_s9, 4  ;;  %s463_s8 = scalar_lea.sflag [#allocation6], %s462_s5  ;;  %s475_s12 = int_to_ptr.vmem [resolvable:$true] %s474_s12 }
  0x54   : > { %s471_s26 = scalar_lea.hbm %s3813_s1, %s2733_s13  ;;  %s3173_s4 = scalar_lea.hbm %s3813_s1, 48 }
  0x55   : > { %s472_s7 = sshll.u32 %s471_s26, 4  ;;  %s473_s7 = int_to_ptr.hbm [resolvable:$true] %s472_s7 }
  0x56   : > { %s3166_s30 = sshra.s32 %s473_s7, 4  ;;  %s3167_s30 = int_to_ptr.hbm [resolvable:$true] %s3166_s30 }
  0x57   : > { %s3168_s28 = scalar_lea.hbm %s3167_s30, 24  ;;  %p3174_p13 = scmp.lt.s32.totalorder %s3167_s30, %s3813_s1 }
  0x58   : > { %p3169_p5 = scmp.ne.s32.totalorder %s3167_s30, %s3168_s28  ;;  %p3175_p11 = scmp.lt.s32.totalorder %s3173_s4, %s3168_s28 }
  0x5a   : > { %p3171_p8 = pnand %p3169_p5, %p3140_p9  ;;  %p3176_p0 = por %p3175_p11, %p3174_p13 }
  0x5c   : > { %p3172_p10 = pneg %p3171_p8 }
  0x5e   : > { %p3177_p2 = pnand %p3176_p0, %p3172_p10 }
  0x60   : > { %3180 = shalt.err (!%p3177_p2)
}
  0x61   : > { %2806 = dma.hbm_to_vmem [thread:$0]  (!%p3544_p7), %s473_s7, 384, %s475_s12, %s463_s8, %s3859_s23, %s3859_s23, %s3858_s14  }
  0x62   : > { %486 = sbr.rel (%p3425_p3) target bundleno = 2290 (0x8f2), region = 60  ;;  %s3588_s5 = sand.u32 (!%p3425_p3), 1, %s3310_s18  }
  0x63   : > { %s3591_s21 = sshll.u32 (!%p3425_p3), %s3588_s5, 4  ;;  %s489_s13 = scalar_lea.sflag (!%p3425_p3), [#allocation3], %s3588_s5 }
  0x64   : > { %s492_s16 = scalar_lea.vmem (!%p3425_p3), [#allocation2], %s3591_s21 }
  0x67   : > { %3269 = dma.done.wait (%p3520_p12), %s489_s13, 256  }
  0x68   : > { %3271 = vsyncadd (%p3520_p12), %s489_s13, 4294967040  ;;  %s498_s25 = sand.u32 1, %s3420_s24   ;;  %s2734_s15 = smul.u32 24, %s3588_s5 }
  0x69   : > { %s499_s14 = scalar_lea.sflag [#allocation6], %s498_s25 }
  0x6a   : > { %s3601_s23 = scalar_lea.vmem [#allocation5], %s2734_s15 }
  0x6b   : > { %3273 = dma.done.wait (%p3520_p12), %s499_s14, 384  }
  0x6c   : > { %3275 = vsyncadd (%p3520_p12), %s499_s14, 4294966912 }
  0x6d   : > { %3277 = dma.done.wait (%p59_p1), [#allocation6], 3072  }
  0x6e   : > { %3279 = vsyncadd (%p59_p1), [#allocation6], 4294964224 }
  0x6f   : > { %3281 = dma.done.wait (%p59_p1), [#allocation9], 2048  }
  0x70   : > { %3283 = vsyncadd (%p59_p1), [#allocation9], 4294965248 }
  0x71   : > { %3285 = dma.done.wait (%p59_p1), [#allocation12], 3072  }
  0x72   : > { %3287 = vsyncadd (%p59_p1), [#allocation12], 4294964224 }
  0x73   : > { %3289 = dma.done.wait (%p59_p1), [#allocation15], 2048  }
  0x74   : > { %3291 = vsyncadd (%p59_p1), [#allocation15], 4294965248 }
  0x75   : > { %3293 = dma.done.wait (%p59_p1), [#allocation18], 3072  }
  0x76   : > { %3295 = vsyncadd (%p59_p1), [#allocation18], 4294964224  ;;  %v2285_v0 = vld [vmem:[#allocation7 + $0xa8] sm:$0xf]  ;;  %v2648_v1 = vld [vmem:[#allocation7 + $0xb0] sm:$0xf0] }
  0x77   : > { %v2647_v2 = vld [vmem:[#allocation7 + $0xac] sm:$0xf]  ;;  %v2286_v3 = vor.u32 %v2648_v1, %v2285_v0  ;;  %v2287_v4 = vld [vmem:[#allocation7 + $0xb4] sm:$0xf0]  ;;  %v2273_v5 = vld [vmem:[#allocation7 + $0x90] sm:$0xf] }
  0x78   : > { %v2645_v6 = vld [vmem:[#allocation7 + $0x98] sm:$0xf0]  ;;  %v2290_v7 = vor.u32 %v2647_v2, %v2287_v4  ;;  %v2644_v8 = vld [vmem:[#allocation7 + $0x94] sm:$0xf]  ;;  %v2275_v9 = vld [vmem:[#allocation7 + $0x9c] sm:$0xf0] }
  0x79   : > { %762 = vmatpush.bf16.msra.mxu0 %v2286_v3  ;;  %v2274_v10 = vor.u32 %v2645_v6, %v2273_v5  ;;  %v2278_v11 = vor.u32 %v2644_v8, %v2275_v9  ;;  %v2261_v12 = vld [vmem:[#allocation7 + $0x78] sm:$0xf]  ;;  %v2642_v13 = vld [vmem:[#allocation7 + $0x80] sm:$0xf0]  ;;  %v2641_v14 = vld [vmem:[#allocation7 + $0x7c] sm:$0xf] }
  0x7a   : > { %776 = vmatpush.bf16.msra.mxu1 %v2290_v7  ;;  %v2263_v15 = vld [vmem:[#allocation7 + $0x84] sm:$0xf0]  ;;  %v2262_v16 = vor.u32 %v2642_v13, %v2261_v12  ;;  %v2249_v18 = vld [vmem:[#allocation7 + $0x60] sm:$0xf]  ;;  %v2639_v19 = vld [vmem:[#allocation7 + $0x68] sm:$0xf0] }
  0x7b   : > { %v2266_v17 = vor.u32 %v2641_v14, %v2263_v15  ;;  %v2638_v20 = vld [vmem:[#allocation7 + $0x64] sm:$0xf]  ;;  %v2251_v21 = vld [vmem:[#allocation7 + $0x6c] sm:$0xf0]  ;;  %v2250_v22 = vor.u32 %v2639_v19, %v2249_v18  ;;  %v2237_v24 = vld [vmem:[#allocation7 + $0x48] sm:$0xf] }
  0x7c   : > { %v2254_v23 = vor.u32 %v2638_v20, %v2251_v21  ;;  %v2636_v25 = vld [vmem:[#allocation7 + $0x50] sm:$0xf0]  ;;  %v2635_v26 = vld [vmem:[#allocation7 + $0x4c] sm:$0xf]  ;;  %v2239_v27 = vld [vmem:[#allocation7 + $0x54] sm:$0xf0] }
  0x7d   : > { %763 = vmatpush.bf16.msra.mxu0 %v2274_v10  ;;  %v2238_v28 = vor.u32 %v2636_v25, %v2237_v24  ;;  %v2242_v29 = vor.u32 %v2635_v26, %v2239_v27  ;;  %v2225_v30 = vld [vmem:[#allocation7 + $0x30] sm:$0xf]  ;;  %v2633_v31 = vld [vmem:[#allocation7 + $0x38] sm:$0xf0]  ;;  %v2632_v32 = vld [vmem:[#allocation7 + $0x34] sm:$0xf] }
  0x7e   : > { %777 = vmatpush.bf16.msra.mxu1 %v2278_v11  ;;  %v2227_v33 = vld [vmem:[#allocation7 + $0x3c] sm:$0xf0]  ;;  %v2226_v34 = vor.u32 %v2633_v31, %v2225_v30  ;;  %v2213_v36 = vld [vmem:[#allocation7 + $0x18] sm:$0xf]  ;;  %v2630_v37 = vld [vmem:[#allocation7 + $0x20] sm:$0xf0] }
  0x7f   : > { %v2230_v35 = vor.u32 %v2632_v32, %v2227_v33  ;;  %v2629_v38 = vld [vmem:[#allocation7 + $0x1c] sm:$0xf]  ;;  %v2215_v39 = vld [vmem:[#allocation7 + $0x24] sm:$0xf0]  ;;  %v2214_v40 = vor.u32 %v2630_v37, %v2213_v36  ;;  %v2201_v42 = vld [vmem:[#allocation7] sm:$0xf] }
  0x80   : > { %v2218_v41 = vor.u32 %v2629_v38, %v2215_v39  ;;  %v2627_v43 = vld [vmem:[#allocation7 + $0x8] sm:$0xf0]  ;;  %v2626_v44 = vld [vmem:[#allocation7 + $0x4] sm:$0xf]  ;;  %v2203_v45 = vld [vmem:[#allocation7 + $0xc] sm:$0xf0] }
  0x81   : > { %764 = vmatpush.bf16.msra.mxu0 %v2262_v16  ;;  %v2202_v46 = vor.u32 %v2627_v43, %v2201_v42  ;;  %v3629_v47 = vld [vmem:[%s492_s16] sm:$0xff]  ;;  %v3633_v48 = vld [vmem:[%s492_s16 + $0x8] sm:$0xff]  ;;  %v2206_v49 = vor.u32 %v2626_v44, %v2203_v45  ;;  %vm836_vm0 = vcmask 130048   ;;  %vm978_vm1 = vcmask 1046528   ;;  %s584_s22 = scalar_lea.vmem [#allocation19], %s3591_s21  ;;  %s2730_s12 = sshll.u32 %s3420_s24, 4 }
  0x82   : > { %778 = vmatpush.bf16.msra.mxu1 %v2266_v17  ;;  %v633_v50 = vpack.c.bf16 %v3633_v48, %v3629_v47  ;;  %v2293_v1 = vld [vmem:[#allocation7 + $0xb0] sm:$0xf]  ;;  %v2649_v2 = vld [vmem:[#allocation7 + $0xb8] sm:$0xf0]  ;;  %v2281_v3 = vld [vmem:[#allocation7 + $0x98] sm:$0xf]  ;;  %s1946_s8 = scalar_lea.hbm %s3822_s10, %s2730_s12 }
  0x83   : > { %v2294_v4 = vor.u32 %v2649_v2, %v2293_v1  ;;  %v2646_v5 = vld [vmem:[#allocation7 + $0xa0] sm:$0xf0]  ;;  %v2269_v7 = vld [vmem:[#allocation7 + $0x80] sm:$0xf]  ;;  %v2643_v8 = vld [vmem:[#allocation7 + $0x88] sm:$0xf0] }
  0x84   : > { %v2282_v6 = vor.u32 %v2646_v5, %v2281_v3  ;;  %v2270_v9 = vor.u32 %v2643_v8, %v2269_v7  ;;  %v2257_v10 = vld [vmem:[#allocation7 + $0x68] sm:$0xf]  ;;  %v2640_v11 = vld [vmem:[#allocation7 + $0x70] sm:$0xf0]  ;;  %v2245_v13 = vld [vmem:[#allocation7 + $0x50] sm:$0xf] }
  0x85   : > { %765 = vmatpush.bf16.msra.mxu0 %v2250_v22  ;;  %790 = vmatpush.bf16.msra.mxu2 %v2294_v4  ;;  %v2258_v12 = vor.u32 %v2640_v11, %v2257_v10  ;;  %v2637_v14 = vld [vmem:[#allocation7 + $0x58] sm:$0xf0]  ;;  %v2233_v16 = vld [vmem:[#allocation7 + $0x38] sm:$0xf]  ;;  %v2634_v17 = vld [vmem:[#allocation7 + $0x40] sm:$0xf0] }
  0x86   : > { %779 = vmatpush.bf16.msra.mxu1 %v2254_v23  ;;  %v2246_v15 = vor.u32 %v2637_v14, %v2245_v13  ;;  %v2234_v18 = vor.u32 %v2634_v17, %v2233_v16  ;;  %v2221_v20 = vld [vmem:[#allocation7 + $0x20] sm:$0xf]  ;;  %v2631_v21 = vld [vmem:[#allocation7 + $0x28] sm:$0xf0]  ;;  %v2209_v25 = vld [vmem:[#allocation7 + $0x8] sm:$0xf] }
  0x87   : > { %v2222_v24 = vor.u32 %v2631_v21, %v2221_v20  ;;  %v2628_v26 = vld [vmem:[#allocation7 + $0x10] sm:$0xf0]  ;;  %v2651_v3 = vld [vmem:[#allocation8 + $0x8] sm:$0xff]  ;;  %v2650_v4 = vld [vmem:[#allocation8] sm:$0xff]  ;;  %vm992_vm2 = vcmask 1040384   ;;  %vm1006_vm5 = vcmask 1045504  }
  0x88   : > { %v2210_v27 = vor.u32 %v2628_v26, %v2209_v25  ;;  %v2652_v2 = vld [vmem:[#allocation8 + $0x10] sm:$0xff]  ;;  %v2410_v7 = vld [vmem:[#allocation11 + $0x60] sm:$0xf]  ;;  %v2671_v21 = vld [vmem:[#allocation11 + $0x24] sm:$0xf0]  ;;  %vm1020_vm6 = vcmask 1041408  }
  0x89   : > { %766 = vmatpush.bf16.msra.mxu0 %v2238_v28  ;;  %791 = vmatpush.bf16.msra.mxu2 %v2282_v6  ;;  %v2418_v5 = vld [vmem:[#allocation11 + $0x70] sm:$0xf]  ;;  %v2681_v6 = vld [vmem:[#allocation11 + $0x74] sm:$0xf0]  ;;  %v2394_v14 = vld [vmem:[#allocation11 + $0x40] sm:$0xf] }
  0x8a   : > { %780 = vmatpush.bf16.msra.mxu1 %v2242_v29  ;;  %v2419_v8 = vor.u32 %v2681_v6, %v2418_v5  ;;  %v2402_v11 = vld [vmem:[#allocation11 + $0x50] sm:$0xf]  ;;  %v2378_v20 = vld [vmem:[#allocation11 + $0x20] sm:$0xf]  ;;  %v2669_v25 = vld [vmem:[#allocation11 + $0x14] sm:$0xf0] }
  0x8b   : > { %v2386_v17 = vld [vmem:[#allocation11 + $0x30] sm:$0xf]  ;;  %vm1286_vm9 = vcmask 195584   ;;  %vm1331_vm10 = vcmask 1043456   ;;  %s1947_s30 = sshll.u32 %s584_s22, 4  ;;  %s1949_s28 = sshll.u32 %s1946_s8, 4  ;;  %s1948_s30 = int_to_ptr.vmem [resolvable:$true] %s1947_s30  ;;  %s1950_s28 = int_to_ptr.hbm [resolvable:$true] %s1949_s28 }
  0x8c   : > { %s1930_s6 = scalar_lea.sflag [#allocation4], %s3588_s5  ;;  %s3210_s27 = sshra.s32 %s1950_s28, 4  ;;  %s3211_s27 = int_to_ptr.hbm [resolvable:$true] %s3210_s27 }
  0x8d   : > { %767 = vmatpush.bf16.msra.mxu0 %v2226_v34  ;;  %792 = vmatpush.bf16.msra.mxu2 %v2270_v9  ;;  %v2679_v9 = vld [vmem:[#allocation11 + $0x64] sm:$0xf0]  ;;  %s3212_s4 = scalar_lea.hbm %s3211_s27, 16  ;;  %s3216_s13 = scalar_lea.hbm %s3822_s10, 32 }
  0x8e   : > { %781 = vmatpush.bf16.msra.mxu1 %v2230_v35  ;;  %v2411_v10 = vor.u32 %v2679_v9, %v2410_v7  ;;  %p3213_p1 = scmp.ne.s32.totalorder %s3211_s27, %s3212_s4  ;;  %p3217_p7 = scmp.lt.s32.totalorder %s3211_s27, %s3822_s10 }
  0x8f   : > { %p3218_p9 = scmp.lt.s32.totalorder %s3216_s13, %s3212_s4 }
  0x90   : > { %p3214_p3 = pnand %p3213_p1, %p3529_p4 }
  0x91   : > { %768 = vmatpush.bf16.msra.mxu0 %v2214_v40  ;;  %793 = vmatpush.bf16.msra.mxu2 %v2258_v12  ;;  %v2677_v12 = vld [vmem:[#allocation11 + $0x54] sm:$0xf0]  ;;  %p3219_p5 = por %p3218_p9, %p3217_p7 }
  0x92   : > { %782 = vmatpush.bf16.msra.mxu1 %v2218_v41  ;;  %v2403_v13 = vor.u32 %v2677_v12, %v2402_v11  ;;  %p3215_p12 = pneg %p3214_p3 }
  0x94   : > { %p3220_p8 = pnand %p3219_p5, %p3215_p12 }
  0x95   : > { %769 = vmatpush.bf16.msra.mxu0 %v2202_v46  ;;  %794 = vmatpush.bf16.msra.mxu2 %v2246_v15  ;;  %v2675_v15 = vld [vmem:[#allocation11 + $0x44] sm:$0xf0] }
  0x96   : > { %783 = vmatpush.bf16.msra.mxu1 %v2206_v49  ;;  %v2395_v16 = vor.u32 %v2675_v15, %v2394_v14 }
  0x98   : > { %770 = vmatmul.bf16.vlgmr.msra.gmra.mxu0 %v633_v50 }
  0x99   : > { %784 = vmatmul.bf16.vlgmr.msra.gmra.mxu1 %v633_v50  ;;  %795 = vmatpush.bf16.msra.mxu2 %v2234_v18  ;;  %v2673_v18 = vld [vmem:[#allocation11 + $0x34] sm:$0xf0] }
  0x9a   : > { %1213 = vmatpush.bf16.msrb.mxu1 %v2419_v8 }
  0x9d   : > { %796 = vmatpush.bf16.msra.mxu2 %v2222_v24  ;;  %v2370_v24 = vld [vmem:[#allocation11 + $0x10] sm:$0xf] }
  0x9e   : > { %1214 = vmatpush.bf16.msrb.mxu1 %v2411_v10 }
  0xa1   : > { %797 = vmatpush.bf16.msra.mxu2 %v2210_v27  ;;  %v2371_v27 = vor.u32 %v2669_v25, %v2370_v24 }
  0xa2   : > { %1215 = vmatpush.bf16.msrb.mxu1 %v2403_v13 }
  0xa4   : > { %798 = vmatmul.bf16.vlgmr.msra.gmra.mxu2 %v633_v50  ;;  %v2657_v50 = vld [vmem:[#allocation8 + $0x38] sm:$0xff] }
  0xa6   : > { %1216 = vmatpush.bf16.msrb.mxu1 %v2395_v16 }
 0x115   : > { %v771_v51 = vpop.f32.mrf.mxu0 }
 0x116   : > { %v785_v52 = vpop.f32.mrf.mxu1  ;;  %v804_v59 = vpack.c.bf16 %v771_v51, %v771_v51  ;;  %v2656_v51 = vld [vmem:[#allocation8 + $0x30] sm:$0xff] }
 0x117   : > { %v806_v53 = vpack.c.bf16 %v785_v52, %v785_v52  ;;  %v2655_v52 = vld [vmem:[#allocation8 + $0x28] sm:$0xff] }
 0x118   : > { %v810_v62 = vunpack.c.l.b16 %v804_v59 }
 0x119   : > { %v816_v57 = vunpack.c.l.b16 %v806_v53 }
 0x11d   : > { %v773_v55 = vpop.f32.mrf.mxu0 }
 0x11e   : > { %v787_v54 = vpop.f32.mrf.mxu1  ;;  %v805_v60 = vpack.c.bf16 %v773_v55, %v773_v55  ;;  %v2653_v55 = vld [vmem:[#allocation8 + $0x18] sm:$0xff] }
 0x11f   : > { %v807_v56 = vpack.c.bf16 %v787_v54, %v787_v54  ;;  %v2654_v54 = vld [vmem:[#allocation8 + $0x20] sm:$0xff] }
 0x120   : > { %v811_v63 = vunpack.c.l.b16 %v805_v60 }
 0x121   : > { %v817_v58 = vunpack.c.l.b16 %v807_v56 }
 0x122   : > { %v812_v0 = vpack.c.b16 %v811_v63, %v810_v62 }
 0x123   : > { %v818_v61 = vpack.c.b16 %v817_v58, %v816_v57 }
 0x125   : > { %827 = vmatpush.bf16.xpose.msra.mxu3 %v818_v61 }
 0x127   : > { %v799_v41 = vpop.f32.mrf.mxu2 }
 0x128   : > { %v861_v42 = vpack.c.bf16 %v799_v41, %v799_v41  ;;  %v2661_v41 = vld [vmem:[#allocation10 + $0x18] sm:$0xff] }
 0x12a   : > { %v870_v44 = vunpack.c.l.b16 %v861_v42  ;;  %v2660_v42 = vld [vmem:[#allocation10 + $0x10] sm:$0xff] }
 0x12c   : > { %828 = vmatmul.bf16.vlgmr.msra.gmra.mxu3 %v812_v0 }
 0x12f   : > { %v801_v43 = vpop.f32.mrf.mxu2 }
 0x130   : > { %v862_v45 = vpack.c.bf16 %v801_v43, %v801_v43  ;;  %v2659_v43 = vld [vmem:[#allocation10 + $0x8] sm:$0xff] }
 0x132   : > { %v871_v46 = vunpack.c.l.b16 %v862_v45 }
 0x134   : > { %v872_v49 = vpack.c.b16 %v871_v46, %v870_v44  ;;  %v2658_v44 = vld [vmem:[#allocation10] sm:$0xff]  ;;  %v598_v46 = vlaneseq }
 0x136   : > { %884 = vmatpush.bf16.msrb.mxu3 %v872_v49 }
 0x13a   : > { %956 = vmatpush.bf16.msra.mxu3 %v2657_v50  ;;  %v3651_v50 = vshrl.u32 %v598_v46, 7  ;;  %v2678_v46 = vld [vmem:[#allocation11 + $0x64] sm:$0xf] }
 0x13c   : > { %vm988_vm4 = vcmp.lt.s32.totalorder %v3651_v50, 1  ;;  %vm1016_vm8 = vcmp.lt.s32.totalorder %v3651_v50, 2 }
 0x13e   : > { %957 = vmatpush.bf16.msra.mxu3 %v2656_v51 }
 0x142   : > { %958 = vmatpush.bf16.msra.mxu3 %v2655_v52 }
 0x146   : > { %959 = vmatpush.bf16.msra.mxu3 %v2654_v54 }
 0x14a   : > { %960 = vmatpush.bf16.msra.mxu3 %v2653_v55 }
 0x14e   : > { %961 = vmatpush.bf16.msra.mxu3 %v2652_v2 }
 0x152   : > { %962 = vmatpush.bf16.msra.mxu3 %v2651_v3 }
 0x156   : > { %963 = vmatpush.bf16.msra.mxu3 %v2650_v4 }
 0x1af   : > { %v829_v19 = vpop.f32.mrf.mxu3 }
 0x1b0   : > { %v834_v22 = vmul.f32 0.17677669, %v829_v19  ;;  %v2387_v19 = vor.u32 %v2673_v18, %v2386_v17 }
 0x1b2   : > { %v837_v23 = vsel %vm836_vm0, %v834_v22, -inf  ;;  %1217 = vmatpush.bf16.msrb.mxu1 %v2387_v19 }
 0x1b3   : > { %838 = vmax.xlane.f32.xlu0 %v837_v23  ;;  %v2379_v23 = vor.u32 %v2671_v21, %v2378_v20 }
 0x1b6   : > { %1218 = vmatpush.bf16.msrb.mxu1 %v2379_v23 }
 0x1b7   : > { %v831_v28 = vpop.f32.mrf.mxu3 }
 0x1b8   : > { %v835_v29 = vmul.f32 0.17677669, %v831_v28  ;;  %v2362_v28 = vld [vmem:[#allocation11] sm:$0xf] }
 0x1ba   : > { %v840_v30 = vsel %vm836_vm0, %v835_v29, -inf  ;;  %1219 = vmatpush.bf16.msrb.mxu1 %v2371_v27 }
 0x1bb   : > { %841 = vmax.xlane.f32.xlu0 %v840_v30 }
 0x226   : > { %v839_v31 = vpop.xlane.xlu0 %838 }
 0x227   : > { %v843_v32 = vsub.f32 %v834_v22, %v839_v31  ;;  %v2665_v22 = vld [vmem:[#allocation10 + $0x38] sm:$0xff]  ;;  %v595_v31 = vld [vmem:[%s3601_s23] sm:$0xff] }
 0x228   : > { %1101 = vmatpush.bf16.msrb.mxu0 %v2665_v22 }
 0x229   : > { %v845_v33 = vmul.f32 1.442695, %v843_v32  ;;  %v596_v32 = vld [vmem:[%s3601_s23 + $0x8] sm:$0xff] }
 0x22b   : > { %2880 = vpow2.f32 %v845_v33 }
 0x22e   : > { %v842_v34 = vpop.xlane.xlu0 %841 }
 0x22f   : > { %v844_v35 = vsub.f32 %v835_v29, %v842_v34  ;;  %v2667_v29 = vld [vmem:[#allocation11 + $0x4] sm:$0xf0] }
 0x230   : > { %v2363_v30 = vor.u32 %v2667_v29, %v2362_v28 }
 0x231   : > { %v2881_v36 = vpop.eup %2880  ;;  %v847_v37 = vmul.f32 1.442695, %v844_v35  ;;  %v3644_v35 = vpack.c.bf16 %v596_v32, %v595_v31 }
 0x232   : > { %v849_v38 = vsel %vm836_vm0, %v2881_v36, 0.0  ;;  %1220 = vmatpush.bf16.msrb.mxu1 %v2363_v30 }
 0x233   : > { %2882 = vpow2.f32 %v847_v37  ;;  %850 = vadd.xlane.f32.xlu1 %v849_v38  ;;  %v2664_v38 = vld [vmem:[#allocation10 + $0x30] sm:$0xff] }
 0x234   : > { %1102 = vmatpush.bf16.msrb.mxu0 %v2664_v38 }
 0x235   : > { %1221 = vmatmul.bf16.vlgmr.msrb.gmra.mxu1 %v3644_v35 }
 0x239   : > { %v2883_v39 = vpop.eup %2882 }
 0x23a   : > { %v852_v40 = vsel %vm836_vm0, %v2883_v39, 0.0 }
 0x23b   : > { %853 = vadd.xlane.f32.xlu1 %v852_v40  ;;  %v2662_v40 = vld [vmem:[#allocation10 + $0x20] sm:$0xff] }
 0x2a6   : > { %v851_v53 = vpop.xlane.xlu1 %850 }
 0x2a7   : > { %2884 = vrcp.f32 %v851_v53  ;;  %v3655_v53 = vadd.s32 8, %v3651_v50 }
 0x2a9   : > { %vm975_vm3 = vcmp.ge.s32.totalorder %v3655_v53, 15  ;;  %vm1005_vm7 = vcmp.ge.s32.totalorder %v3655_v53, 14 }
 0x2ad   : > { %v2885_v57 = vpop.eup %2884 }
 0x2ae   : > { %v854_v56 = vpop.xlane.xlu1 %853  ;;  %v857_v58 = vmul.f32 %v2885_v57, %v2881_v36  ;;  %v597_v36 = vld [vmem:[%s3601_s23 + $0x10] sm:$0xff] }
 0x2af   : > { %2886 = vrcp.f32 %v854_v56  ;;  %v3648_v37 = vpack.c.bf16 %v597_v36, %v597_v36 }
 0x2b0   : > { %v859_v60 = vpack.c.bf16 %v857_v58, %v857_v58 }
 0x2b1   : > { %1226 = vmatmul.bf16.gmra.mxu1 %v3648_v37 }
 0x2b2   : > { %v865_v63 = vunpack.c.l.b16 %v859_v60  ;;  %v1222_v45 = vpop.f32.mrf.mxu1 }
 0x2b3   : > { %v1251_v15 = vpack.c.bf16 %v1222_v45, %v1222_v45  ;;  %v2420_v45 = vld [vmem:[#allocation11 + $0x78] sm:$0xf0] }
 0x2b5   : > { %v2887_v59 = vpop.eup %2886  ;;  %v1263_v28 = vunpack.c.l.b16 %v1251_v15 }
 0x2b6   : > { %v858_v61 = vmul.f32 %v2887_v59, %v2883_v39  ;;  %v2663_v39 = vld [vmem:[#allocation10 + $0x28] sm:$0xff] }
 0x2b7   : > { %1103 = vmatpush.bf16.msrb.mxu0 %v2663_v39 }
 0x2b8   : > { %v860_v62 = vpack.c.bf16 %v858_v61, %v858_v61 }
 0x2ba   : > { %v866_v0 = vunpack.c.l.b16 %v860_v62  ;;  %v1224_v51 = vpop.f32.mrf.mxu1 }
 0x2bb   : > { %1104 = vmatpush.bf16.msrb.mxu0 %v2662_v40  ;;  %v1252_v18 = vpack.c.bf16 %v1224_v51, %v1224_v51  ;;  %v2412_v51 = vld [vmem:[#allocation11 + $0x68] sm:$0xf0] }
 0x2bc   : > { %v867_v1 = vpack.c.b16 %v866_v0, %v865_v63 }
 0x2bd   : > { %v1264_v29 = vunpack.c.l.b16 %v1252_v18 }
 0x2be   : > { %2295 = vmatmul.msk.bf16.vlgmr.msrb.gmra.mxu3 %vm836_vm0, %v867_v1 }
 0x2bf   : > { %1105 = vmatpush.bf16.msrb.mxu0 %v2661_v41 }
 0x2c3   : > { %1106 = vmatpush.bf16.msrb.mxu0 %v2660_v42 }
 0x2c7   : > { %1107 = vmatpush.bf16.msrb.mxu0 %v2659_v43 }
 0x2cb   : > { %1108 = vmatpush.bf16.msrb.mxu0 %v2658_v44  ;;  %v2680_v44 = vld [vmem:[#allocation11 + $0x74] sm:$0xf] }
 0x32e   : > { %v1227_v2 = vpop.f32.mrf.mxu1 }
 0x32f   : > { %v1253_v12 = vpack.c.bf16 %v1227_v2, %v1227_v2  ;;  %v2372_v2 = vld [vmem:[#allocation11 + $0x18] sm:$0xf0] }
 0x331   : > { %v1265_v19 = vunpack.c.l.b16 %v1253_v12 }
 0x333   : > { %v1267_v24 = vpack.c.b16 %v1265_v19, %v1265_v19 }
 0x335   : > { %1276 = vmatpush.bf16.xpose.msrb.mxu3 %v1267_v24 }
 0x341   : > { %v886_v26 = vpop.f32.mrf.mxu3 }
 0x349   : > { %v888_v33 = vpop.f32.mrf.mxu3 }
 0x34a   : > { %v907_v34 = vpack.c.bf16 %v888_v33, %v886_v26  ;;  %v1229_v26 = vpop.f32.mrf.mxu1  ;;  %v1266_v33 = vpack.c.b16 %v1264_v29, %v1263_v28 }
 0x34c   : > { %964 = vmatmul.bf16.vlgmr.msra.gmra.mxu3 %v907_v34 }
 0x34d   : > { %1277 = vmatpush.bf16.xpose.msrb.mxu3 %v1266_v33 }
 0x3cf   : > { %v965_v49 = vpop.f32.mrf.mxu3 }
 0x3d0   : > { %v970_v52 = vadd.f32 %v965_v49, %v3629_v47  ;;  %v2423_v49 = vor.u32 %v2680_v44, %v2420_v45  ;;  %v2685_v44 = vld [vmem:[#allocation13 + $0x18] sm:$0xff] }
 0x3d2   : > { %v979_v56 = vrot.slane %v970_v52, 1  ;;  %v993_v57 = vrot.slane %v970_v52, 7  ;;  %v972_v62 = vperm.slane %v970_v52, 0  ;;  %v1007_v1 = vrot.slane %v970_v52, 2  ;;  %1231 = vmatpush.bf16.msrb.mxu2 %v2423_v49  ;;  %v2684_v49 = vld [vmem:[#allocation13 + $0x10] sm:$0xff] }
 0x3d3   : > { %v1021_v6 = vrot.slane %v970_v52, 6 }
 0x3d7   : > { %v967_v54 = vpop.f32.mrf.mxu3 }
 0x3d8   : > { %v971_v55 = vadd.f32 %v967_v54, %v3633_v48  ;;  %v2676_v54 = vld [vmem:[#allocation11 + $0x54] sm:$0xf] }
 0x3da   : > { %v973_v58 = vperm.slane %v971_v55, 7  ;;  %v980_v59 = vrot.slane %v971_v55, 1  ;;  %v990_v60 = vrot.slane %v971_v55, 7  ;;  %v1008_v61 = vrot.slane %v971_v55, 2 }
 0x3db   : > { %v1018_v47 = vrot.slane %v971_v55, 6 }
 0x3dc   : > { %v981_v63 = vsel %vm978_vm1, %v979_v56, %v980_v59  ;;  %v985_v48 = vsel %vm978_vm1, %v980_v59, %v979_v56  ;;  %v997_v0 = vsel %vm992_vm2, %v990_v60, %v993_v57  ;;  %v1013_v8 = vsel %vm1006_vm5, %v1008_v61, %v1007_v1 }
 0x3dd   : > { %v987_v3 = vsel %vm975_vm3, %v973_v58, %v985_v48  ;;  %v998_v4 = vsel %vm988_vm4, %v972_v62, %v997_v0  ;;  %v1000_v5 = vadd.f32 %v981_v63, %v970_v52  ;;  %v994_v9 = vsel %vm992_vm2, %v993_v57, %v990_v60  ;;  %v2674_v57 = vld [vmem:[#allocation11 + $0x44] sm:$0xf]  ;;  %v2672_v60 = vld [vmem:[#allocation11 + $0x34] sm:$0xf]  ;;  %v2380_v63 = vld [vmem:[#allocation11 + $0x28] sm:$0xf0] }
 0x3de   : > { %v1001_v7 = vadd.f32 %v987_v3, %v971_v55  ;;  %v1025_v11 = vsel %vm1020_vm6, %v1018_v47, %v1021_v6  ;;  %v1009_v14 = vsel %vm1006_vm5, %v1007_v1, %v1008_v61  ;;  %v1015_v16 = vsel %vm1005_vm7, %v973_v58, %v1013_v8  ;;  %v2396_v58 = vld [vmem:[#allocation11 + $0x48] sm:$0xf0]  ;;  %v2388_v61 = vld [vmem:[#allocation11 + $0x38] sm:$0xf0]  ;;  %v2668_v1 = vld [vmem:[#allocation11 + $0x14] sm:$0xf] }
 0x3df   : > { %v1002_v10 = vadd.f32 %v1000_v5, %v998_v4  ;;  %v1026_v20 = vsel %vm1016_vm8, %v972_v62, %v1025_v11  ;;  %v1022_v22 = vsel %vm1020_vm6, %v1021_v6, %v1018_v47  ;;  %v2399_v59 = vor.u32 %v2674_v57, %v2396_v58  ;;  %v2670_v47 = vld [vmem:[#allocation11 + $0x24] sm:$0xf] }
 0x3e0   : > { %v1003_v13 = vadd.f32 %v1001_v7, %v994_v9  ;;  %v2391_v62 = vor.u32 %v2672_v60, %v2388_v61  ;;  %v2383_v48 = vor.u32 %v2670_v47, %v2380_v63  ;;  %v2375_v5 = vor.u32 %v2668_v1, %v2372_v2  ;;  %v2666_v6 = vld [vmem:[#allocation11 + $0x4] sm:$0xf]  ;;  %v2364_v7 = vld [vmem:[#allocation11 + $0x8] sm:$0xf0] }
 0x3e1   : > { %v1028_v17 = vadd.f32 %v1009_v14, %v1002_v10  ;;  %v2367_v8 = vor.u32 %v2666_v6, %v2364_v7  ;;  %v2683_v60 = vld [vmem:[#allocation13 + $0x8] sm:$0xff]  ;;  %v2682_v61 = vld [vmem:[#allocation13] sm:$0xff]  ;;  %v2705_v7 = vld [vmem:[#allocation16 + $0x38] sm:$0xff] }
 0x3e2   : > { %v1029_v21 = vadd.f32 %v1015_v16, %v1003_v13  ;;  %v2695_v1 = vld [vmem:[#allocation14 + $0x28] sm:$0xff]  ;;  %v2694_v2 = vld [vmem:[#allocation14 + $0x20] sm:$0xff]  ;;  %1628 = vmatpush.bf16.msra.mxu3 %v2705_v7 }
 0x3e3   : > { %v1030_v23 = vadd.f32 %v1028_v17, %v1026_v20  ;;  %v2690_v6 = vld [vmem:[#allocation14] sm:$0xff] }
 0x3e4   : > { %v1031_v25 = vadd.f32 %v1029_v21, %v1022_v22 }
 0x3e5   : > { %v3678_v27 = vmul.f32 0.2, %v1030_v23 }
 0x3e6   : > { %v3680_v30 = vmul.f32 0.2, %v1031_v25 }
 0x3e7   : > { %v3683_v31 = vsub.f32 %v970_v52, %v3678_v27  ;;  %v2415_v52 = vor.u32 %v2678_v46, %v2412_v51 }
 0x3e8   : > { %v3686_v32 = vsub.f32 %v971_v55, %v3680_v30  ;;  %v2404_v55 = vld [vmem:[#allocation11 + $0x58] sm:$0xf0] }
 0x3e9   : > { %1232 = vmatpush.bf16.msrb.mxu2 %v2415_v52  ;;  %v2407_v56 = vor.u32 %v2676_v54, %v2404_v55 }
 0x3ea   : > { %v1052_v34 = vpack.c.bf16 %v3686_v32, %v3683_v31 }
 0x3ec   : > { %1109 = vmatmul.bf16.vlgmr.msrb.gmra.mxu0 %v1052_v34 }
 0x3ed   : > { %1233 = vmatpush.bf16.msrb.mxu2 %v2407_v56 }
 0x3f1   : > { %1234 = vmatpush.bf16.msrb.mxu2 %v2399_v59 }
 0x3f5   : > { %1235 = vmatpush.bf16.msrb.mxu2 %v2391_v62  ;;  %v2697_v62 = vld [vmem:[#allocation14 + $0x38] sm:$0xff] }
 0x3f9   : > { %1236 = vmatpush.bf16.msrb.mxu2 %v2383_v48 }
 0x3fd   : > { %1237 = vmatpush.bf16.msrb.mxu2 %v2375_v5  ;;  %v2691_v5 = vld [vmem:[#allocation14 + $0x8] sm:$0xff] }
 0x401   : > { %1238 = vmatpush.bf16.msrb.mxu2 %v2367_v8  ;;  %v2704_v8 = vld [vmem:[#allocation16 + $0x30] sm:$0xff] }
 0x402   : > { %1629 = vmatpush.bf16.msra.mxu3 %v2704_v8  ;;  %v2595_v8 = vld [vmem:[#allocation17 + $0x90] sm:$0xf] }
 0x404   : > { %1239 = vmatmul.bf16.vlgmr.msrb.gmra.mxu2 %v3644_v35 }
 0x405   : > { %1547 = vmatpush.bf16.msra.mxu2 %v2697_v62  ;;  %v2727_v62 = vld [vmem:[#allocation17 + $0xac] sm:$0xf] }
 0x414   : > { %1244 = vmatmul.bf16.gmra.mxu2 %v3648_v37 }
 0x469   : > { %v1110_v36 = vpop.f32.mrf.mxu0 }
 0x46a   : > { %v1249_v38 = vpack.c.bf16 %v1110_v36, %v1110_v36 }
 0x46c   : > { %v1256_v41 = vunpack.c.l.b16 %v1249_v38 }
 0x471   : > { %v1112_v39 = vpop.f32.mrf.mxu0 }
 0x472   : > { %v1250_v40 = vpack.c.bf16 %v1112_v39, %v1112_v39  ;;  %v2689_v39 = vld [vmem:[#allocation13 + $0x38] sm:$0xff] }
 0x473   : > { %1414 = vmatpush.bf16.msra.mxu1 %v2689_v39 }
 0x474   : > { %v1257_v42 = vunpack.c.l.b16 %v1250_v40  ;;  %v2688_v40 = vld [vmem:[#allocation13 + $0x30] sm:$0xff] }
 0x476   : > { %v1258_v43 = vpack.c.b16 %v1257_v42, %v1256_v41  ;;  %v2687_v41 = vld [vmem:[#allocation13 + $0x28] sm:$0xff] }
 0x477   : > { %1415 = vmatpush.bf16.msra.mxu1 %v2688_v40 }
 0x478   : > { %1278 = vmatmul.bf16.vlgmr.msrb.gmra.mxu3 %v1258_v43  ;;  %v2686_v43 = vld [vmem:[#allocation13 + $0x20] sm:$0xff] }
 0x47b   : > { %1416 = vmatpush.bf16.msra.mxu1 %v2687_v41 }
 0x47f   : > { %1417 = vmatpush.bf16.msra.mxu1 %v2686_v43 }
 0x483   : > { %1418 = vmatpush.bf16.msra.mxu1 %v2685_v44 }
 0x487   : > { %v1240_v22 = vpop.f32.mrf.mxu2  ;;  %1419 = vmatpush.bf16.msra.mxu1 %v2684_v49 }
 0x488   : > { %v1311_v23 = vpack.c.bf16 %v1240_v22, %v1240_v22 }
 0x48a   : > { %v1322_v28 = vunpack.c.l.b16 %v1311_v23 }
 0x48b   : > { %1420 = vmatpush.bf16.msra.mxu1 %v2683_v60  ;;  %v2607_v60 = vld [vmem:[#allocation17 + $0xa8] sm:$0xf] }
 0x48f   : > { %v1242_v35 = vpop.f32.mrf.mxu2  ;;  %1421 = vmatpush.bf16.msra.mxu1 %v2682_v61  ;;  %v2728_v61 = vld [vmem:[#allocation17 + $0xb0] sm:$0xf0] }
 0x490   : > { %v1312_v37 = vpack.c.bf16 %v1242_v35, %v1242_v35 }
 0x492   : > { %v1323_v29 = vunpack.c.l.b16 %v1312_v37 }
 0x494   : > { %v1325_v36 = vpack.c.b16 %v1323_v29, %v1322_v28 }
 0x497   : > { %v1245_v24 = vpop.f32.mrf.mxu2 }
 0x498   : > { %v1313_v25 = vpack.c.bf16 %v1245_v24, %v1245_v24 }
 0x49a   : > { %v1324_v26 = vunpack.c.l.b16 %v1313_v25 }
 0x49c   : > { %v1326_v33 = vpack.c.b16 %v1324_v26, %v1324_v26 }
 0x49e   : > { %v1333_v34 = vsel %vm1331_vm10, %v1326_v33, 0 }
 0x49f   : > { %1341 = vmatpush.bf16.msra.mxu0 %v1333_v34  ;;  %v1247_v38 = vpop.f32.mrf.mxu2 }
 0x4a3   : > { %1342 = vmatpush.bf16.msra.mxu0 %v1325_v36 }
 0x4fb   : > { %v1279_v0 = vpop.f32.mrf.mxu3 }
 0x4fc   : > { %v1284_v3 = vmul.f32 0.17677669, %v1279_v0  ;;  %v2696_v0 = vld [vmem:[#allocation14 + $0x30] sm:$0xff] }
 0x4fd   : > { %1548 = vmatpush.bf16.msra.mxu2 %v2696_v0  ;;  %v2729_v0 = vld [vmem:[#allocation17 + $0xb8] sm:$0xf0] }
 0x4fe   : > { %v1287_v4 = vsel %vm1286_vm9, %v1284_v3, -inf }
 0x4ff   : > { %1288 = vmax.xlane.f32.xlu2 %v1287_v4  ;;  %v2692_v4 = vld [vmem:[#allocation14 + $0x10] sm:$0xff] }
 0x501   : > { %1549 = vmatpush.bf16.msra.mxu2 %v2695_v1 }
 0x503   : > { %v1281_v9 = vpop.f32.mrf.mxu3 }
 0x504   : > { %v1285_v10 = vmul.f32 0.17677669, %v1281_v9 }
 0x505   : > { %1550 = vmatpush.bf16.msra.mxu2 %v2694_v2 }
 0x506   : > { %v1290_v11 = vsel %vm1286_vm9, %v1285_v10, -inf }
 0x507   : > { %1291 = vmax.xlane.f32.xlu2 %v1290_v11 }
 0x572   : > { %v1289_v12 = vpop.xlane.xlu2 %1288 }
 0x573   : > { %v1293_v13 = vsub.f32 %v1284_v3, %v1289_v12  ;;  %v2693_v3 = vld [vmem:[#allocation14 + $0x18] sm:$0xff]  ;;  %v2702_v12 = vld [vmem:[#allocation16 + $0x20] sm:$0xff] }
 0x574   : > { %1551 = vmatpush.bf16.msra.mxu2 %v2693_v3 }
 0x575   : > { %v1295_v14 = vmul.f32 1.442695, %v1293_v13 }
 0x577   : > { %2888 = vpow2.f32 %v1295_v14 }
 0x578   : > { %1552 = vmatpush.bf16.msra.mxu2 %v2692_v4 }
 0x57a   : > { %v1292_v15 = vpop.xlane.xlu2 %1291 }
 0x57b   : > { %v1294_v16 = vsub.f32 %v1285_v10, %v1292_v15  ;;  %v2703_v10 = vld [vmem:[#allocation16 + $0x28] sm:$0xff] }
 0x57c   : > { %1553 = vmatpush.bf16.msra.mxu2 %v2691_v5  ;;  %1630 = vmatpush.bf16.msra.mxu3 %v2703_v10  ;;  %v2724_v10 = vld [vmem:[#allocation17 + $0x94] sm:$0xf] }
 0x57d   : > { %v2889_v17 = vpop.eup %2888  ;;  %v1297_v18 = vmul.f32 1.442695, %v1294_v16 }
 0x57e   : > { %v1299_v19 = vsel %vm1286_vm9, %v2889_v17, 0.0 }
 0x57f   : > { %2890 = vpow2.f32 %v1297_v18  ;;  %1300 = vadd.xlane.f32.xlu0 %v1299_v19 }
 0x580   : > { %1554 = vmatpush.bf16.msra.mxu2 %v2690_v6  ;;  %1631 = vmatpush.bf16.msra.mxu3 %v2702_v12  ;;  %v2597_v12 = vld [vmem:[#allocation17 + $0x9c] sm:$0xf0] }
 0x585   : > { %v2891_v20 = vpop.eup %2890 }
 0x586   : > { %v1302_v21 = vsel %vm1286_vm9, %v2891_v20, 0.0 }
 0x587   : > { %1303 = vadd.xlane.f32.xlu1 %v1302_v21  ;;  %v2701_v21 = vld [vmem:[#allocation16 + $0x18] sm:$0xff] }
 0x588   : > { %1632 = vmatpush.bf16.msra.mxu3 %v2701_v21  ;;  %v2585_v21 = vld [vmem:[#allocation17 + $0x84] sm:$0xf0] }
 0x5f2   : > { %v1301_v42 = vpop.xlane.xlu0 %1300 }
 0x5f3   : > { %2892 = vrcp.f32 %v1301_v42 }
 0x5f9   : > { %v2893_v46 = vpop.eup %2892 }
 0x5fa   : > { %v1304_v45 = vpop.xlane.xlu1 %1303  ;;  %v1307_v51 = vmul.f32 %v2893_v46, %v2889_v17 }
 0x5fb   : > { %2894 = vrcp.f32 %v1304_v45 }
 0x5fc   : > { %v1309_v54 = vpack.c.bf16 %v1307_v51, %v1307_v51 }
 0x5fe   : > { %v1316_v57 = vunpack.c.l.b16 %v1309_v54 }
 0x601   : > { %v2895_v52 = vpop.eup %2894 }
 0x602   : > { %v1308_v55 = vmul.f32 %v2895_v52, %v2891_v20 }
 0x604   : > { %v1310_v56 = vpack.c.bf16 %v1308_v55, %v1308_v55 }
 0x606   : > { %v1317_v58 = vunpack.c.l.b16 %v1310_v56 }
 0x608   : > { %v1318_v59 = vpack.c.b16 %v1317_v58, %v1316_v57  ;;  %v2700_v57 = vld [vmem:[#allocation16 + $0x10] sm:$0xff]  ;;  %v2699_v58 = vld [vmem:[#allocation16 + $0x8] sm:$0xff] }
 0x609   : > { %1633 = vmatpush.bf16.msra.mxu3 %v2700_v57  ;;  %v2549_v57 = vld [vmem:[#allocation17 + $0x3c] sm:$0xf0] }
 0x60a   : > { %2424 = vmatmul.msk.bf16.vlgmr.msra.gmra.mxu0 %vm1286_vm9, %v1318_v59  ;;  %v2698_v59 = vld [vmem:[#allocation16] sm:$0xff] }
 0x60d   : > { %1634 = vmatpush.bf16.msra.mxu3 %v2699_v58  ;;  %v2555_v58 = vld [vmem:[#allocation17 + $0x38] sm:$0xf] }
 0x611   : > { %1635 = vmatpush.bf16.msra.mxu3 %v2698_v59  ;;  %v2714_v59 = vld [vmem:[#allocation17 + $0x40] sm:$0xf0] }
 0x687   : > { %v1344_v47 = vpop.f32.mrf.mxu0 }
 0x68f   : > { %v1346_v63 = vpop.f32.mrf.mxu0 }
 0x690   : > { %v1365_v48 = vpack.c.bf16 %v1346_v63, %v1344_v47  ;;  %v2608_v47 = vor.u32 %v2728_v61, %v2607_v60  ;;  %v2609_v63 = vld [vmem:[#allocation17 + $0xb4] sm:$0xf0] }
 0x691   : > { %v2612_v1 = vor.u32 %v2727_v62, %v2609_v63  ;;  %v2556_v62 = vor.u32 %v2714_v59, %v2555_v58  ;;  %v2710_v63 = vld [vmem:[#allocation17 + $0x20] sm:$0xf0] }
 0x692   : > { %1422 = vmatmul.bf16.vlgmr.msra.gmra.mxu1 %v1365_v48  ;;  %v2615_v48 = vld [vmem:[#allocation17 + $0xb0] sm:$0xf]  ;;  %1861 = vmatpush.bf16.msrb.mxu0 %v2608_v47  ;;  %v2535_v47 = vld [vmem:[#allocation17 + $0x18] sm:$0xf] }
 0x693   : > { %v2616_v2 = vor.u32 %v2729_v0, %v2615_v48  ;;  %1875 = vmatpush.bf16.msrb.mxu1 %v2612_v1  ;;  %v2709_v48 = vld [vmem:[#allocation17 + $0x1c] sm:$0xf]  ;;  %v2537_v0 = vld [vmem:[#allocation17 + $0x24] sm:$0xf0]  ;;  %v2543_v1 = vld [vmem:[#allocation17 + $0x20] sm:$0xf] }
 0x695   : > { %1889 = vmatpush.bf16.msrb.mxu2 %v2616_v2  ;;  %v2711_v2 = vld [vmem:[#allocation17 + $0x28] sm:$0xf0] }
 0x70f   : > { %v1423_v9 = vpop.f32.mrf.mxu1 }
 0x710   : > { %v1428_v11 = vadd.f32 %v1423_v9, %v3683_v31  ;;  %v2725_v9 = vld [vmem:[#allocation17 + $0x98] sm:$0xf0] }
 0x712   : > { %v1434_v15 = vrot.slane %v1428_v11, 1  ;;  %v1445_v16 = vrot.slane %v1428_v11, 7  ;;  %v1430_v22 = vperm.slane %v1428_v11, 0  ;;  %v1456_v24 = vrot.slane %v1428_v11, 2 }
 0x713   : > { %v1467_v28 = vrot.slane %v1428_v11, 6 }
 0x717   : > { %v1425_v13 = vpop.f32.mrf.mxu1 }
 0x718   : > { %v1429_v14 = vadd.f32 %v1425_v13, %v3686_v32  ;;  %v2603_v13 = vld [vmem:[#allocation17 + $0x98] sm:$0xf] }
 0x71a   : > { %v1431_v17 = vperm.slane %v1429_v14, 7  ;;  %v1435_v18 = vrot.slane %v1429_v14, 1  ;;  %v1443_v19 = vrot.slane %v1429_v14, 7  ;;  %v1457_v20 = vrot.slane %v1429_v14, 2 }
 0x71b   : > { %v1465_v35 = vrot.slane %v1429_v14, 6 }
 0x71c   : > { %v1436_v23 = vsel %vm978_vm1, %v1434_v15, %v1435_v18  ;;  %v1440_v37 = vsel %vm978_vm1, %v1435_v18, %v1434_v15  ;;  %v1449_v31 = vsel %vm992_vm2, %v1443_v19, %v1445_v16  ;;  %v1462_v33 = vsel %vm1006_vm5, %v1457_v20, %v1456_v24  ;;  %v2722_v18 = vld [vmem:[#allocation17 + $0x80] sm:$0xf0] }
 0x71d   : > { %v1442_v32 = vsel %vm975_vm3, %v1431_v17, %v1440_v37  ;;  %v1450_v25 = vsel %vm988_vm4, %v1430_v22, %v1449_v31  ;;  %v1452_v26 = vadd.f32 %v1436_v23, %v1428_v11  ;;  %v1446_v34 = vsel %vm992_vm2, %v1445_v16, %v1443_v19  ;;  %v2721_v19 = vld [vmem:[#allocation17 + $0x7c] sm:$0xf]  ;;  %v2571_v31 = vld [vmem:[#allocation17 + $0x60] sm:$0xf] }
 0x71e   : > { %v1453_v29 = vadd.f32 %v1442_v32, %v1429_v14  ;;  %v1471_v38 = vsel %vm1020_vm6, %v1465_v35, %v1467_v28  ;;  %v1458_v40 = vsel %vm1006_vm5, %v1456_v24, %v1457_v20  ;;  %v1464_v41 = vsel %vm1005_vm7, %v1431_v17, %v1462_v33  ;;  %v2583_v17 = vld [vmem:[#allocation17 + $0x78] sm:$0xf]  ;;  %v2719_v24 = vld [vmem:[#allocation17 + $0x68] sm:$0xf0]  ;;  %v2718_v32 = vld [vmem:[#allocation17 + $0x64] sm:$0xf] }
 0x71f   : > { %v1454_v36 = vadd.f32 %v1452_v26, %v1450_v25  ;;  %v1472_v43 = vsel %vm1016_vm8, %v1430_v22, %v1471_v38  ;;  %v1468_v45 = vsel %vm1020_vm6, %v1467_v28, %v1465_v35  ;;  %v2600_v15 = vor.u32 %v2724_v10, %v2597_v12  ;;  %v2591_v22 = vld [vmem:[#allocation17 + $0x80] sm:$0xf]  ;;  %v2723_v35 = vld [vmem:[#allocation17 + $0x88] sm:$0xf0]  ;;  %v2573_v26 = vld [vmem:[#allocation17 + $0x6c] sm:$0xf0] }
 0x720   : > { %v1455_v39 = vadd.f32 %v1453_v29, %v1446_v34  ;;  %v2584_v20 = vor.u32 %v2722_v18, %v2583_v17  ;;  %v2588_v23 = vor.u32 %v2721_v19, %v2585_v21  ;;  %v2592_v37 = vor.u32 %v2723_v35, %v2591_v22  ;;  %v2579_v28 = vld [vmem:[#allocation17 + $0x68] sm:$0xf]  ;;  %v2720_v29 = vld [vmem:[#allocation17 + $0x70] sm:$0xf0] }
 0x721   : > { %v1474_v42 = vadd.f32 %v1458_v40, %v1454_v36  ;;  %1876 = vmatpush.bf16.msrb.mxu1 %v2600_v15  ;;  %v2572_v25 = vor.u32 %v2719_v24, %v2571_v31  ;;  %v2576_v33 = vor.u32 %v2718_v32, %v2573_v26  ;;  %v2580_v34 = vor.u32 %v2720_v29, %v2579_v28  ;;  %v2559_v36 = vld [vmem:[#allocation17 + $0x48] sm:$0xf]  ;;  %v2716_v38 = vld [vmem:[#allocation17 + $0x50] sm:$0xf0] }
 0x722   : > { %v1475_v44 = vadd.f32 %v1464_v41, %v1455_v39  ;;  %v2715_v39 = vld [vmem:[#allocation17 + $0x4c] sm:$0xf]  ;;  %v2560_v40 = vor.u32 %v2716_v38, %v2559_v36  ;;  %v2561_v41 = vld [vmem:[#allocation17 + $0x54] sm:$0xf0]  ;;  %v2531_v10 = vld [vmem:[#allocation17 + $0x8] sm:$0xf] }
 0x723   : > { %v1476_v46 = vadd.f32 %v1474_v42, %v1472_v43  ;;  %v2567_v42 = vld [vmem:[#allocation17 + $0x50] sm:$0xf]  ;;  %v2717_v43 = vld [vmem:[#allocation17 + $0x58] sm:$0xf0] }
 0x724   : > { %v1477_v49 = vadd.f32 %v1475_v44, %v1468_v45  ;;  %v2564_v44 = vor.u32 %v2715_v39, %v2561_v41  ;;  %v2568_v45 = vor.u32 %v2717_v43, %v2567_v42 }
 0x725   : > { %v3715_v51 = vmul.f32 0.2, %v1476_v46  ;;  %1877 = vmatpush.bf16.msrb.mxu1 %v2588_v23  ;;  %v2547_v46 = vld [vmem:[#allocation17 + $0x30] sm:$0xf] }
 0x726   : > { %v3717_v52 = vmul.f32 0.2, %v1477_v49  ;;  %v2713_v49 = vld [vmem:[#allocation17 + $0x38] sm:$0xf0] }
 0x727   : > { %v3720_v54 = vsub.f32 %v1428_v11, %v3715_v51  ;;  %v2596_v11 = vor.u32 %v2725_v9, %v2595_v8  ;;  %v2548_v60 = vor.u32 %v2713_v49, %v2547_v46  ;;  %v2706_v8 = vld [vmem:[#allocation17 + $0x4] sm:$0xf]  ;;  %v2525_v9 = vld [vmem:[#allocation17 + $0xc] sm:$0xf0]  ;;  %v1696_v58 = vadd.f32 %v3715_v51, %v3678_v27 }
 0x728   : > { %v3723_v55 = vsub.f32 %v1429_v14, %v3717_v52  ;;  %v2726_v14 = vld [vmem:[#allocation17 + $0xa0] sm:$0xf0]  ;;  %v1697_v53 = vadd.f32 %v3717_v52, %v3680_v30 }
 0x729   : > { %v2604_v16 = vor.u32 %v2726_v14, %v2603_v13  ;;  %1862 = vmatpush.bf16.msrb.mxu0 %v2596_v11  ;;  %1878 = vmatpush.bf16.msrb.mxu1 %v2576_v33  ;;  %v2708_v11 = vld [vmem:[#allocation17 + $0x10] sm:$0xf0]  ;;  %v2528_v13 = vor.u32 %v2706_v8, %v2525_v9 }
 0x72a   : > { %v1498_v56 = vpack.c.bf16 %v3723_v55, %v3720_v54  ;;  %v2532_v14 = vor.u32 %v2708_v11, %v2531_v10 }
 0x72b   : > { %1890 = vmatpush.bf16.msrb.mxu2 %v2604_v16 }
 0x72c   : > { %1555 = vmatmul.bf16.vlgmr.msra.gmra.mxu2 %v1498_v56  ;;  %v2712_v56 = vld [vmem:[#allocation17 + $0x34] sm:$0xf] }
 0x72d   : > { %1863 = vmatpush.bf16.msrb.mxu0 %v2584_v20  ;;  %1879 = vmatpush.bf16.msrb.mxu1 %v2564_v44  ;;  %v2552_v61 = vor.u32 %v2712_v56, %v2549_v57 }
 0x72f   : > { %1891 = vmatpush.bf16.msrb.mxu2 %v2592_v37 }
 0x731   : > { %1864 = vmatpush.bf16.msrb.mxu0 %v2572_v25  ;;  %1880 = vmatpush.bf16.msrb.mxu1 %v2552_v61 }
 0x733   : > { %1892 = vmatpush.bf16.msrb.mxu2 %v2580_v34 }
 0x735   : > { %1865 = vmatpush.bf16.msrb.mxu0 %v2560_v40 }
 0x737   : > { %1893 = vmatpush.bf16.msrb.mxu2 %v2568_v45 }
 0x739   : > { %1866 = vmatpush.bf16.msrb.mxu0 %v2548_v60 }
 0x73b   : > { %1894 = vmatpush.bf16.msrb.mxu2 %v2556_v62 }
 0x7af   : > { %v1556_v3 = vpop.f32.mrf.mxu2 }
 0x7b0   : > { %v1561_v5 = vmax.f32 %v1556_v3, 0.0  ;;  %v2536_v3 = vor.u32 %v2710_v63, %v2535_v47 }
 0x7b2   : > { %1867 = vmatpush.bf16.msrb.mxu0 %v2536_v3 }
 0x7b7   : > { %v1558_v4 = vpop.f32.mrf.mxu2 }
 0x7b8   : > { %v1562_v6 = vmax.f32 %v1558_v4, 0.0  ;;  %v2540_v4 = vor.u32 %v2709_v48, %v2537_v0 }
 0x7ba   : > { %v1579_v7 = vpack.c.bf16 %v1562_v6, %v1561_v5  ;;  %v2544_v5 = vor.u32 %v2711_v2, %v2543_v1  ;;  %v2523_v6 = vld [vmem:[#allocation17] sm:$0xf]  ;;  %1881 = vmatpush.bf16.msrb.mxu1 %v2540_v4 }
 0x7bc   : > { %1636 = vmatmul.bf16.vlgmr.msra.gmra.mxu3 %v1579_v7  ;;  %v2707_v7 = vld [vmem:[#allocation17 + $0x8] sm:$0xf0]  ;;  %1895 = vmatpush.bf16.msrb.mxu2 %v2544_v5 }
 0x7bd   : > { %v2524_v12 = vor.u32 %v2707_v7, %v2523_v6 }
 0x7be   : > { %1882 = vmatpush.bf16.msrb.mxu1 %v2528_v13 }
 0x7bf   : > { %1868 = vmatpush.bf16.msrb.mxu0 %v2524_v12 }
 0x7c0   : > { %1896 = vmatpush.bf16.msrb.mxu2 %v2532_v14 }
 0x83f   : > { %v1637_v15 = vpop.f32.mrf.mxu3 }
 0x840   : > { %v1642_v16 = vadd.f32 %v1637_v15, %v3720_v54 }
 0x842   : > { %v1648_v19 = vrot.slane %v1642_v16, 1  ;;  %v1659_v20 = vrot.slane %v1642_v16, 7  ;;  %v1644_v37 = vperm.slane %v1642_v16, 0  ;;  %v1670_v26 = vrot.slane %v1642_v16, 2 }
 0x843   : > { %v1681_v29 = vrot.slane %v1642_v16, 6 }
 0x847   : > { %v1639_v17 = vpop.f32.mrf.mxu3 }
 0x848   : > { %v1643_v18 = vadd.f32 %v1639_v17, %v3723_v55 }
 0x84a   : > { %v1645_v21 = vperm.slane %v1643_v18, 7  ;;  %v1649_v22 = vrot.slane %v1643_v18, 1  ;;  %v1657_v35 = vrot.slane %v1643_v18, 7  ;;  %v1671_v23 = vrot.slane %v1643_v18, 2 }
 0x84b   : > { %v1679_v31 = vrot.slane %v1643_v18, 6 }
 0x84c   : > { %v1650_v24 = vsel %vm978_vm1, %v1648_v19, %v1649_v22  ;;  %v1654_v32 = vsel %vm978_vm1, %v1649_v22, %v1648_v19  ;;  %v1663_v25 = vsel %vm992_vm2, %v1657_v35, %v1659_v20  ;;  %v1676_v34 = vsel %vm1006_vm5, %v1671_v23, %v1670_v26 }
 0x84d   : > { %v1656_v54 = vsel %vm975_vm3, %v1645_v21, %v1654_v32  ;;  %v1664_v55 = vsel %vm988_vm4, %v1644_v37, %v1663_v25  ;;  %v1666_v28 = vadd.f32 %v1650_v24, %v1642_v16  ;;  %v1660_v36 = vsel %vm992_vm2, %v1659_v20, %v1657_v35 }
 0x84e   : > { %v1667_v33 = vadd.f32 %v1656_v54, %v1643_v18  ;;  %v1685_v39 = vsel %vm1020_vm6, %v1679_v31, %v1681_v29  ;;  %v1672_v41 = vsel %vm1006_vm5, %v1670_v26, %v1671_v23  ;;  %v1678_v42 = vsel %vm1005_vm7, %v1645_v21, %v1676_v34 }
 0x84f   : > { %v1668_v38 = vadd.f32 %v1666_v28, %v1664_v55  ;;  %v1686_v44 = vsel %vm1016_vm8, %v1644_v37, %v1685_v39  ;;  %v1682_v46 = vsel %vm1020_vm6, %v1681_v29, %v1679_v31 }
 0x850   : > { %v1669_v40 = vadd.f32 %v1667_v33, %v1660_v36 }
 0x851   : > { %v1688_v43 = vadd.f32 %v1672_v41, %v1668_v38 }
 0x852   : > { %v1689_v45 = vadd.f32 %v1678_v42, %v1669_v40 }
 0x853   : > { %v1690_v49 = vadd.f32 %v1688_v43, %v1686_v44 }
 0x854   : > { %v1691_v56 = vadd.f32 %v1689_v45, %v1682_v46 }
 0x855   : > { %v1692_v57 = vmul.f32 0.2, %v1690_v49 }
 0x856   : > { %v1693_v59 = vmul.f32 0.2, %v1691_v56 }
 0x857   : > { %v1694_v60 = vsub.f32 %v1642_v16, %v1692_v57  ;;  %v1698_v61 = vadd.f32 %v1696_v58, %v1692_v57 }
 0x858   : > { %v1695_v50 = vsub.f32 %v1643_v18, %v1693_v59  ;;  %v1699_v62 = vadd.f32 %v1697_v53, %v1693_v59 }
 0x859   : > { %1925 = vst [vmem:[%s584_s22] sm:$0xff] %v1694_v60 }
 0x85a   : > { %v1732_v47 = vpack.c.bf16 %v1699_v62, %v1698_v61  ;;  %1926 = vst [vmem:[%s584_s22 + $0x8] sm:$0xff] %v1695_v50 }
 0x85c   : > { %1869 = vmatmul.bf16.vlgmr.msrb.gmra.mxu0 %v1732_v47  ;;  %1883 = vmatmul.bf16.vlgmr.msrb.gmra.mxu1 %v1732_v47 }
 0x85d   : > { %1897 = vmatmul.bf16.vlgmr.msrb.gmra.mxu2 %v1732_v47 }
 0x85e   : > { %3223 = shalt.err (!%p3220_p8)
}
 0x85f   : > { %s3334_s15 = smov 128   ;;  %s3335_s14 = smov 8  }
 0x860   : > { %2771 = dma.vmem_to_hbm [thread:$0]  (%p3529_p4), %s1948_s30, 256, %s1950_s28, %s1930_s6, %s3334_s15, %s3334_s15, %s3335_s14  }
 0x861   : > { %s3860_s26 = sld [smem:[#allocation40_spill]]  ;;  %s591_s8 = scalar_lea.vmem [#allocation20], %s3591_s21 }
 0x862   : > { %s1964_s30 = sshll.u32 %s591_s8, 4  ;;  %s1935_s24 = scalar_lea.sflag [#allocation21], %s3588_s5  ;;  %s1965_s30 = int_to_ptr.vmem [resolvable:$true] %s1964_s30 }
 0x867   : > { %s1963_s7 = scalar_lea.hbm %s3860_s26, %s2730_s12  ;;  %s3244_s4 = scalar_lea.hbm %s3860_s26, 32 }
 0x868   : > { %s1966_s28 = sshll.u32 %s1963_s7, 4  ;;  %s1967_s28 = int_to_ptr.hbm [resolvable:$true] %s1966_s28 }
 0x869   : > { %s3238_s12 = sshra.s32 %s1967_s28, 4  ;;  %s3239_s12 = int_to_ptr.hbm [resolvable:$true] %s3238_s12 }
 0x86a   : > { %s3240_s6 = scalar_lea.hbm %s3239_s12, 16  ;;  %p3245_p0 = scmp.lt.s32.totalorder %s3239_s12, %s3860_s26 }
 0x86b   : > { %p3241_p10 = scmp.ne.s32.totalorder %s3239_s12, %s3240_s6  ;;  %p3246_p2 = scmp.lt.s32.totalorder %s3244_s4, %s3240_s6 }
 0x86d   : > { %p3242_p13 = pnand %p3241_p10, %p3529_p4  ;;  %p3247_p1 = por %p3246_p2, %p3245_p0 }
 0x86f   : > { %p3243_p11 = pneg %p3242_p13 }
 0x871   : > { %p3248_p3 = pnand %p3247_p1, %p3243_p11 }
 0x8d9   : > { %v1870_v27 = vpop.f32.mrf.mxu0  ;;  %v1884_v30 = vpop.f32.mrf.mxu1 }
 0x8da   : > { %v1907_v48 = vrot.slane %v1870_v27, 7 }
 0x8e0   : > { %v1898_v51 = vpop.f32.mrf.mxu2 }
 0x8e1   : > { %v1872_v52 = vpop.f32.mrf.mxu0  ;;  %v1916_v3 = vrot.slane %v1898_v51, 1  ;;  %v1886_v4 = vpop.f32.mrf.mxu1 }
 0x8e2   : > { %v1904_v63 = vrot.slane %v1872_v52, 7 }
 0x8e4   : > { %v1911_v0 = vsel %vm992_vm2, %v1904_v63, %v1907_v48  ;;  %v1908_v1 = vsel %vm992_vm2, %v1907_v48, %v1904_v63 }
 0x8e5   : > { %v1912_v6 = vadd.f32 %v1911_v0, %v1884_v30  ;;  %v1913_v7 = vadd.f32 %v1908_v1, %v1886_v4 }
 0x8e8   : > { %v1900_v2 = vpop.f32.mrf.mxu2 }
 0x8e9   : > { %v1917_v5 = vrot.slane %v1900_v2, 1 }
 0x8eb   : > { %v1918_v8 = vsel %vm978_vm1, %v1916_v3, %v1917_v5  ;;  %v1922_v9 = vsel %vm978_vm1, %v1917_v5, %v1916_v3 }
 0x8ec   : > { %v1923_v10 = vadd.f32 %v1918_v8, %v1912_v6  ;;  %v1924_v11 = vadd.f32 %v1922_v9, %v1913_v7 }
 0x8ee   : > { %1927 = vst [vmem:[%s591_s8] sm:$0xff] %v1923_v10 }
 0x8ef   : > { %1928 = vst [vmem:[%s591_s8 + $0x8] sm:$0xff] %v1924_v11 }
 0x8f0   : > { %3251 = shalt.err (!%p3248_p3)
}
 0x8f1   : > { %2772 = dma.vmem_to_hbm [thread:$0]  (%p3529_p4), %s1965_s30, 256, %s1967_s28, %s1935_s24, %s3334_s15, %s3334_s15, %s3335_s14  }
 0x8f2 PF: > { %s1981_s5 = sand.u32 1, %s3306_s17   ;;  %p3861_p12 = scmp.ge.s32.totalorder %s3318_s20, 2 }
 0x8f3   : > { %s1982_s13 = scalar_lea.sflag [#allocation4], %s1981_s5 }
 0x8f4   : > { %p2808_p7 = pnand %p3861_p12, %p3533_p6 }
 0x8f6   : > { %p2809_p9 = pneg %p2808_p7 }
 0x8f8   : > { %3297 = dma.done.wait (%p2809_p9), %s1982_s13, 256  }
 0x8f9   : > { %3299 = vsyncadd (%p2809_p9), %s1982_s13, 4294967040  ;;  %s1992_s16 = scalar_lea.sflag [#allocation21], %s1981_s5 }
 0x8fa   : > { %3301 = dma.done.wait (%p2809_p9), %s1992_s16, 256  }
 0x8fb   : > { %3303 = vsyncadd (%p2809_p9), %s1992_s16, 4294967040  ;;  %s3862_s11 = sld [smem:[#allocation31_spill]]  ;;  %p35_p4 = scmp.ge.s32.totalorder %s3501_s3, 4  }
 0x8fc   : > { %s3863_s17 = smov %s3310_s18  ;;  %s3864_s18 = smov %s3314_s19 }
 0x8fd   : > { %s3866_s20 = smov %s3501_s3  ;;  %37 = sbr.rel (!%p35_p4) target bundleno = 23 (0x17), region = 167 }
 0x901   : > { %s3865_s19 = smov %s3862_s11 }
 0x902   :  { %1998 = vsyncpa [#allocation3], 1 }
 0x903   :  { %2000 = vsyncpa [#allocation3 + $0x1], 1 }
 0x904   :  { %2001 = vsyncpa [#allocation6], 1 }
 0x905   :  { %2003 = vsyncpa [#allocation6 + $0x1], 1 }
 0x906   :  { %2004 = vsyncpa [#allocation9], 1 }
 0x907   :  { %2005 = vsyncpa [#allocation12], 1 }
 0x908   :  { %2006 = vsyncpa [#allocation15], 1 }
 0x909   :  { %2007 = vsyncpa [#allocation18], 1 }
 0x90a   :  { %2008 = vsyncpa [#allocation4], 1 }
 0x90b   :  { %2010 = vsyncpa [#allocation4 + $0x1], 1 }
 0x90c   :  { %2011 = vsyncpa [#allocation21], 1 }
 0x90d   :  { %2013 = vsyncpa [#allocation21 + $0x1], 1 }

</bundles_post_ra>
